<compile_context>
chip_gen: v6e
topology: v6e:2x2x1
jax: 0.10.0
libtpu: 0.0.40
codegen_flags: <defaults>
</compile_context>

<pallas_src>
import functools

import jax
import jax.numpy as jnp
from jax.experimental import pallas as pl
from jax.experimental.pallas import tpu as pltpu


def coxph_kernel(idx_ref, fold_ref, w2_ref, o_ref, *, seq_len: int, vocab1: int):
    """One batch tile, batch along lanes.

    idx_ref : (S, tile_b) int32 -- token ids (batch on the lane axis)
    fold_ref: (H, S*V1)   f32   -- folded emb @ W1 table, b1 folded into the p==0 plane
    w2_ref  : (H, 1)      f32   -- linear_2 weight column
    o_ref   : (1, tile_b) f32   -- exp(linear_2(relu(linear_1(emb)))) without the b2 factor
    """
    idx = idx_ref[...]                       # (S, tile_b) int32
    foldT = fold_ref[...]                    # (H, K), K = S * V1
    w2 = w2_ref[...]                         # (H, 1)
    H = foldT.shape[0]
    tile_b = idx.shape[1]

    # Vectorized gather-as-select (exact, pure VPU/XLU, lanes fully occupied):
    #   z1[:, b] = b1 + sum_p fold[p, idx[p, b], :]
    # Two independent partial accumulators break the serial add dependency chain.
    acc0 = jnp.zeros((H, tile_b), jnp.float32)
    acc1 = jnp.zeros((H, tile_b), jnp.float32)
    it = 0
    for p in range(seq_len):                               # static, small S
        tok_p = idx[p:p + 1, :]                            # (1, tile_b)
        for v in range(vocab1):                            # static, small V+1
            k = p * vocab1 + v
            col = foldT[:, k:k + 1]                        # (H, 1) static lane slice
            contrib = jnp.where(tok_p == v, col, 0.0)      # (H, tile_b) full-vreg select
            if it % 2 == 0:
                acc0 = acc0 + contrib
            else:
                acc1 = acc1 + contrib
            it += 1
    z1 = acc0 + acc1                                       # linear_1 output (+ b1)

    a1 = jnp.maximum(z1, 0.0)                              # ReLU            (H, tile_b)
    z2 = jnp.sum(a1 * w2, axis=0, keepdims=True)           # linear_2 (N=1)  (1, tile_b)
    o_ref[...] = jnp.exp(z2)                               # one vector exp; lane-dense store


def coxph_forward(batch_1, emb_table, w1, b1, w2, b2, *, tile_b: int = 128):
    """batch_1: (B, S) int32 token ids. Returns (B, 1) f32 = exp(l2(relu(l1(emb))))."""
    B, S = batch_1.shape
    V1, E = emb_table.shape                  # V1 = vocab + 1
    H = w1.shape[1]
    K = S * V1
    f32 = jnp.float32

    # Fold nn.Embedding, linear_1 and b1 into a tiny lookup table:
    #   fold[p, v, :] = emb_table[v, :] @ w1[p*E:(p+1)*E, :]        -> (S, V1, H)
    # Exactly one row per p-plane is selected per sample, so adding b1 to the
    # p==0 plane accounts for the bias exactly once.
    fold = jnp.einsum("ve,peh->pvh",
                      emb_table.astype(f32),
                      w1.astype(f32).reshape(S, E, H))
    fold = fold.at[0].add(b1.astype(f32)[None, :])
    foldT = fold.reshape(K, H).T             # (H, K): H on sublanes, K on lanes

    w2_col = w2.astype(f32).reshape(H, 1)

    num_tiles = pl.cdiv(B, tile_b)
    Bp = num_tiles * tile_b
    idx = batch_1.astype(jnp.int32)
    if Bp != B:
        idx = jnp.pad(idx, ((0, Bp - B), (0, 0)))   # pad rows with token 0 (valid id)
    idxT = idx.T                                    # (S, Bp): batch on the lane axis

    kernel = functools.partial(coxph_kernel, seq_len=S, vocab1=V1)

    cost = pl.CostEstimate(
        flops=2 * Bp * K * H + 4 * Bp * H,          # select-accumulate + linear_2 reduce
        transcendentals=Bp,                         # one exp per (padded) sample
        bytes_accessed=4 * (idxT.size + foldT.size + w2_col.size + Bp),
    )

    out = pl.pallas_call(
        kernel,
        out_shape=jax.ShapeDtypeStruct((1, Bp), f32),
        grid_spec=pltpu.PrefetchScalarGridSpec(
            num_scalar_prefetch=0,
            grid=(num_tiles,),
            in_specs=[
                pl.BlockSpec((S, tile_b), lambda i: (0, i)),   # ids: batch tile on lanes
                pl.BlockSpec((H, K), lambda i: (0, 0)),        # folded table, VMEM-resident
                pl.BlockSpec((H, 1), lambda i: (0, 0)),        # linear_2 weights, resident
            ],
            out_specs=pl.BlockSpec((1, tile_b), lambda i: (0, i)),  # lane-dense output row
        ),
        compiler_params=pltpu.CompilerParams(
            dimension_semantics=("parallel",)),     # megacore over batch tiles when B > 128
        cost_estimate=cost,
    )(idxT, foldT, w2_col)

    # exp(z2 + b2) == exp(b2) * exp(z2): apply the scalar output bias in the wrapper.
    row = out[0] * jnp.exp(b2.astype(f32).reshape(()))
    return row[:B].reshape(B, 1)


if __name__ == "__main__":
    # Module hyper-params (small, consistent with __init__):
    input_size_0 = 10    # vocab size (embedding has input_size_0 + 1 rows)
    input_size_1 = 8     # sequence length S
    embedding_size = 5
    out_size = 16
    B = 2                # batch

    key = jax.random.PRNGKey(0)
    k_emb, k_w1, k_b1, k_w2, k_b2, k_idx = jax.random.split(key, 6)

    emb_table = jax.random.normal(k_emb, (input_size_0 + 1, embedding_size),
                                  dtype=jnp.float32)
    # Linear weights stored already transposed: (in, out).
    w1 = jax.random.normal(k_w1, (input_size_1 * embedding_size, out_size),
                           dtype=jnp.float32) * 0.1
    b1 = jax.random.normal(k_b1, (out_size,), dtype=jnp.float32) * 0.1
    w2 = jax.random.normal(k_w2, (out_size, 1), dtype=jnp.float32) * 0.1
    b2 = jax.random.normal(k_b2, (1,), dtype=jnp.float32) * 0.1

    # Example integer input batch (B, S) with values in [0, input_size_0].
    batch_1 = jax.random.randint(k_idx, (B, input_size_1), 0, input_size_0 + 1,
                                 dtype=jnp.int32)

    fwd = jax.jit(coxph_forward)
    out = jax.block_until_ready(fwd(batch_1, emb_table, w1, b1, w2, b2))

    # Pure-JAX reference of the original module's forward.
    h_ref = jnp.take(emb_table, batch_1, axis=0).reshape(B, -1)
    ref = jnp.exp(jnp.maximum(h_ref @ w1 + b1, 0.0) @ w2 + b2)
    assert out.shape == (B, 1)
    assert jnp.allclose(out, ref, rtol=1e-5, atol=1e-5), (out, ref)

    print("KERNEL_OK")
</pallas_src>

<mosaic_0001>
module attributes {stable_mosaic.version = 11 : i64} {
  func.func @coxph_kernel(%arg0: i32, %arg1: memref<8x128xi32, #tpu.memory_space<vmem>>, %arg2: memref<16x88xf32, #tpu.memory_space<vmem>>, %arg3: memref<16x1xf32, #tpu.memory_space<vmem>>, %arg4: memref<1x128xf32, #tpu.memory_space<vmem>>) attributes {dimension_semantics = [#tpu.dimension_semantics<parallel>], iteration_bounds = array<i64: 1>, scalar_prefetch = 0 : i64, scratch_operands = 0 : i64, tpu.core_type = #tpu.core_type<tc>, window_params = [{transform_indices = @transform_0, window_bounds = array<i64: 8, 128>}, {pipeline_mode = #tpu.pipeline_mode<synchronous>, transform_indices = @transform_1, window_bounds = array<i64: 16, 88>}, {pipeline_mode = #tpu.pipeline_mode<synchronous>, transform_indices = @transform_2, window_bounds = array<i64: 16, 1>}, {transform_indices = @transform_3, window_bounds = array<i64: 1, 128>}]} {
    %c0 = arith.constant 0 : index
    %c0_0 = arith.constant 0 : index
    %0 = vector.load %arg1[%c0, %c0_0] : memref<8x128xi32, #tpu.memory_space<vmem>>, vector<8x128xi32>
    %c0_1 = arith.constant 0 : index
    %c0_2 = arith.constant 0 : index
    %1 = vector.load %arg2[%c0_1, %c0_2] : memref<16x88xf32, #tpu.memory_space<vmem>>, vector<16x88xf32>
    %c0_3 = arith.constant 0 : index
    %c0_4 = arith.constant 0 : index
    %2 = vector.load %arg3[%c0_3, %c0_4] : memref<16x1xf32, #tpu.memory_space<vmem>>, vector<16x1xf32>
    %cst = arith.constant 0.000000e+00 : f32
    %3 = vector.broadcast %cst : f32 to vector<16x128xf32>
    %cst_5 = arith.constant 0.000000e+00 : f32
    %4 = vector.broadcast %cst_5 : f32 to vector<16x128xf32>
    %5 = vector.extract_strided_slice %0 {offsets = [0, 0], sizes = [1, 128], strides = [1, 1]} : vector<8x128xi32> to vector<1x128xi32>
    %6 = vector.extract_strided_slice %1 {offsets = [0, 0], sizes = [16, 1], strides = [1, 1]} : vector<16x88xf32> to vector<16x1xf32>
    %c0_i32 = arith.constant 0 : i32
    %7 = vector.broadcast %c0_i32 : i32 to vector<1x128xi32>
    %8 = arith.cmpi eq, %5, %7 : vector<1x128xi32>
    %cst_6 = arith.constant 0.000000e+00 : f32
    %9 = vector.shape_cast %8 : vector<1x128xi1> to vector<1x128xi1>
    %10 = vector.broadcast %9 : vector<1x128xi1> to vector<16x128xi1>
    %11 = vector.shape_cast %6 : vector<16x1xf32> to vector<16x1xf32>
    %12 = vector.broadcast %11 : vector<16x1xf32> to vector<16x128xf32>
    %13 = vector.broadcast %cst_6 : f32 to vector<16x128xf32>
    %14 = arith.select %10, %12, %13 : vector<16x128xi1>, vector<16x128xf32>
    %15 = arith.addf %3, %14 : vector<16x128xf32>
    %16 = vector.extract_strided_slice %1 {offsets = [0, 1], sizes = [16, 1], strides = [1, 1]} : vector<16x88xf32> to vector<16x1xf32>
    %c1_i32 = arith.constant 1 : i32
    %17 = vector.broadcast %c1_i32 : i32 to vector<1x128xi32>
    %18 = arith.cmpi eq, %5, %17 : vector<1x128xi32>
    %cst_7 = arith.constant 0.000000e+00 : f32
    %19 = vector.shape_cast %18 : vector<1x128xi1> to vector<1x128xi1>
    %20 = vector.broadcast %19 : vector<1x128xi1> to vector<16x128xi1>
    %21 = vector.shape_cast %16 : vector<16x1xf32> to vector<16x1xf32>
    %22 = vector.broadcast %21 : vector<16x1xf32> to vector<16x128xf32>
    %23 = vector.broadcast %cst_7 : f32 to vector<16x128xf32>
    %24 = arith.select %20, %22, %23 : vector<16x128xi1>, vector<16x128xf32>
    %25 = arith.addf %4, %24 : vector<16x128xf32>
    %26 = vector.extract_strided_slice %1 {offsets = [0, 2], sizes = [16, 1], strides = [1, 1]} : vector<16x88xf32> to vector<16x1xf32>
    %c2_i32 = arith.constant 2 : i32
    %27 = vector.broadcast %c2_i32 : i32 to vector<1x128xi32>
    %28 = arith.cmpi eq, %5, %27 : vector<1x128xi32>
    %cst_8 = arith.constant 0.000000e+00 : f32
    %29 = vector.shape_cast %28 : vector<1x128xi1> to vector<1x128xi1>
    %30 = vector.broadcast %29 : vector<1x128xi1> to vector<16x128xi1>
    %31 = vector.shape_cast %26 : vector<16x1xf32> to vector<16x1xf32>
    %32 = vector.broadcast %31 : vector<16x1xf32> to vector<16x128xf32>
    %33 = vector.broadcast %cst_8 : f32 to vector<16x128xf32>
    %34 = arith.select %30, %32, %33 : vector<16x128xi1>, vector<16x128xf32>
    %35 = arith.addf %15, %34 : vector<16x128xf32>
    %36 = vector.extract_strided_slice %1 {offsets = [0, 3], sizes = [16, 1], strides = [1, 1]} : vector<16x88xf32> to vector<16x1xf32>
    %c3_i32 = arith.constant 3 : i32
    %37 = vector.broadcast %c3_i32 : i32 to vector<1x128xi32>
    %38 = arith.cmpi eq, %5, %37 : vector<1x128xi32>
    %cst_9 = arith.constant 0.000000e+00 : f32
    %39 = vector.shape_cast %38 : vector<1x128xi1> to vector<1x128xi1>
    %40 = vector.broadcast %39 : vector<1x128xi1> to vector<16x128xi1>
    %41 = vector.shape_cast %36 : vector<16x1xf32> to vector<16x1xf32>
    %42 = vector.broadcast %41 : vector<16x1xf32> to vector<16x128xf32>
    %43 = vector.broadcast %cst_9 : f32 to vector<16x128xf32>
    %44 = arith.select %40, %42, %43 : vector<16x128xi1>, vector<16x128xf32>
    %45 = arith.addf %25, %44 : vector<16x128xf32>
    %46 = vector.extract_strided_slice %1 {offsets = [0, 4], sizes = [16, 1], strides = [1, 1]} : vector<16x88xf32> to vector<16x1xf32>
    %c4_i32 = arith.constant 4 : i32
    %47 = vector.broadcast %c4_i32 : i32 to vector<1x128xi32>
    %48 = arith.cmpi eq, %5, %47 : vector<1x128xi32>
    %cst_10 = arith.constant 0.000000e+00 : f32
    %49 = vector.shape_cast %48 : vector<1x128xi1> to vector<1x128xi1>
    %50 = vector.broadcast %49 : vector<1x128xi1> to vector<16x128xi1>
    %51 = vector.shape_cast %46 : vector<16x1xf32> to vector<16x1xf32>
    %52 = vector.broadcast %51 : vector<16x1xf32> to vector<16x128xf32>
    %53 = vector.broadcast %cst_10 : f32 to vector<16x128xf32>
    %54 = arith.select %50, %52, %53 : vector<16x128xi1>, vector<16x128xf32>
    %55 = arith.addf %35, %54 : vector<16x128xf32>
    %56 = vector.extract_strided_slice %1 {offsets = [0, 5], sizes = [16, 1], strides = [1, 1]} : vector<16x88xf32> to vector<16x1xf32>
    %c5_i32 = arith.constant 5 : i32
    %57 = vector.broadcast %c5_i32 : i32 to vector<1x128xi32>
    %58 = arith.cmpi eq, %5, %57 : vector<1x128xi32>
    %cst_11 = arith.constant 0.000000e+00 : f32
    %59 = vector.shape_cast %58 : vector<1x128xi1> to vector<1x128xi1>
    %60 = vector.broadcast %59 : vector<1x128xi1> to vector<16x128xi1>
    %61 = vector.shape_cast %56 : vector<16x1xf32> to vector<16x1xf32>
    %62 = vector.broadcast %61 : vector<16x1xf32> to vector<16x128xf32>
    %63 = vector.broadcast %cst_11 : f32 to vector<16x128xf32>
    %64 = arith.select %60, %62, %63 : vector<16x128xi1>, vector<16x128xf32>
    %65 = arith.addf %45, %64 : vector<16x128xf32>
    %66 = vector.extract_strided_slice %1 {offsets = [0, 6], sizes = [16, 1], strides = [1, 1]} : vector<16x88xf32> to vector<16x1xf32>
    %c6_i32 = arith.constant 6 : i32
    %67 = vector.broadcast %c6_i32 : i32 to vector<1x128xi32>
    %68 = arith.cmpi eq, %5, %67 : vector<1x128xi32>
    %cst_12 = arith.constant 0.000000e+00 : f32
    %69 = vector.shape_cast %68 : vector<1x128xi1> to vector<1x128xi1>
    %70 = vector.broadcast %69 : vector<1x128xi1> to vector<16x128xi1>
    %71 = vector.shape_cast %66 : vector<16x1xf32> to vector<16x1xf32>
    %72 = vector.broadcast %71 : vector<16x1xf32> to vector<16x128xf32>
    %73 = vector.broadcast %cst_12 : f32 to vector<16x128xf32>
    %74 = arith.select %70, %72, %73 : vector<16x128xi1>, vector<16x128xf32>
    %75 = arith.addf %55, %74 : vector<16x128xf32>
    %76 = vector.extract_strided_slice %1 {offsets = [0, 7], sizes = [16, 1], strides = [1, 1]} : vector<16x88xf32> to vector<16x1xf32>
    %c7_i32 = arith.constant 7 : i32
    %77 = vector.broadcast %c7_i32 : i32 to vector<1x128xi32>
    %78 = arith.cmpi eq, %5, %77 : vector<1x128xi32>
    %cst_13 = arith.constant 0.000000e+00 : f32
    %79 = vector.shape_cast %78 : vector<1x128xi1> to vector<1x128xi1>
    %80 = vector.broadcast %79 : vector<1x128xi1> to vector<16x128xi1>
    %81 = vector.shape_cast %76 : vector<16x1xf32> to vector<16x1xf32>
    %82 = vector.broadcast %81 : vector<16x1xf32> to vector<16x128xf32>
    %83 = vector.broadcast %cst_13 : f32 to vector<16x128xf32>
    %84 = arith.select %80, %82, %83 : vector<16x128xi1>, vector<16x128xf32>
    %85 = arith.addf %65, %84 : vector<16x128xf32>
    %86 = vector.extract_strided_slice %1 {offsets = [0, 8], sizes = [16, 1], strides = [1, 1]} : vector<16x88xf32> to vector<16x1xf32>
    %c8_i32 = arith.constant 8 : i32
    %87 = vector.broadcast %c8_i32 : i32 to vector<1x128xi32>
    %88 = arith.cmpi eq, %5, %87 : vector<1x128xi32>
    %cst_14 = arith.constant 0.000000e+00 : f32
    %89 = vector.shape_cast %88 : vector<1x128xi1> to vector<1x128xi1>
    %90 = vector.broadcast %89 : vector<1x128xi1> to vector<16x128xi1>
    %91 = vector.shape_cast %86 : vector<16x1xf32> to vector<16x1xf32>
    %92 = vector.broadcast %91 : vector<16x1xf32> to vector<16x128xf32>
    %93 = vector.broadcast %cst_14 : f32 to vector<16x128xf32>
    %94 = arith.select %90, %92, %93 : vector<16x128xi1>, vector<16x128xf32>
    %95 = arith.addf %75, %94 : vector<16x128xf32>
    %96 = vector.extract_strided_slice %1 {offsets = [0, 9], sizes = [16, 1], strides = [1, 1]} : vector<16x88xf32> to vector<16x1xf32>
    %c9_i32 = arith.constant 9 : i32
    %97 = vector.broadcast %c9_i32 : i32 to vector<1x128xi32>
    %98 = arith.cmpi eq, %5, %97 : vector<1x128xi32>
    %cst_15 = arith.constant 0.000000e+00 : f32
    %99 = vector.shape_cast %98 : vector<1x128xi1> to vector<1x128xi1>
    %100 = vector.broadcast %99 : vector<1x128xi1> to vector<16x128xi1>
    %101 = vector.shape_cast %96 : vector<16x1xf32> to vector<16x1xf32>
    %102 = vector.broadcast %101 : vector<16x1xf32> to vector<16x128xf32>
    %103 = vector.broadcast %cst_15 : f32 to vector<16x128xf32>
    %104 = arith.select %100, %102, %103 : vector<16x128xi1>, vector<16x128xf32>
    %105 = arith.addf %85, %104 : vector<16x128xf32>
    %106 = vector.extract_strided_slice %1 {offsets = [0, 10], sizes = [16, 1], strides = [1, 1]} : vector<16x88xf32> to vector<16x1xf32>
    %c10_i32 = arith.constant 10 : i32
    %107 = vector.broadcast %c10_i32 : i32 to vector<1x128xi32>
    %108 = arith.cmpi eq, %5, %107 : vector<1x128xi32>
    %cst_16 = arith.constant 0.000000e+00 : f32
    %109 = vector.shape_cast %108 : vector<1x128xi1> to vector<1x128xi1>
    %110 = vector.broadcast %109 : vector<1x128xi1> to vector<16x128xi1>
    %111 = vector.shape_cast %106 : vector<16x1xf32> to vector<16x1xf32>
    %112 = vector.broadcast %111 : vector<16x1xf32> to vector<16x128xf32>
    %113 = vector.broadcast %cst_16 : f32 to vector<16x128xf32>
    %114 = arith.select %110, %112, %113 : vector<16x128xi1>, vector<16x128xf32>
    %115 = arith.addf %95, %114 : vector<16x128xf32>
    %116 = vector.extract_strided_slice %0 {offsets = [1, 0], sizes = [1, 128], strides = [1, 1]} : vector<8x128xi32> to vector<1x128xi32>
    %117 = vector.extract_strided_slice %1 {offsets = [0, 11], sizes = [16, 1], strides = [1, 1]} : vector<16x88xf32> to vector<16x1xf32>
    %c0_i32_17 = arith.constant 0 : i32
    %118 = vector.broadcast %c0_i32_17 : i32 to vector<1x128xi32>
    %119 = arith.cmpi eq, %116, %118 : vector<1x128xi32>
    %cst_18 = arith.constant 0.000000e+00 : f32
    %120 = vector.shape_cast %119 : vector<1x128xi1> to vector<1x128xi1>
    %121 = vector.broadcast %120 : vector<1x128xi1> to vector<16x128xi1>
    %122 = vector.shape_cast %117 : vector<16x1xf32> to vector<16x1xf32>
    %123 = vector.broadcast %122 : vector<16x1xf32> to vector<16x128xf32>
    %124 = vector.broadcast %cst_18 : f32 to vector<16x128xf32>
    %125 = arith.select %121, %123, %124 : vector<16x128xi1>, vector<16x128xf32>
    %126 = arith.addf %105, %125 : vector<16x128xf32>
    %127 = vector.extract_strided_slice %1 {offsets = [0, 12], sizes = [16, 1], strides = [1, 1]} : vector<16x88xf32> to vector<16x1xf32>
    %c1_i32_19 = arith.constant 1 : i32
    %128 = vector.broadcast %c1_i32_19 : i32 to vector<1x128xi32>
    %129 = arith.cmpi eq, %116, %128 : vector<1x128xi32>
    %cst_20 = arith.constant 0.000000e+00 : f32
    %130 = vector.shape_cast %129 : vector<1x128xi1> to vector<1x128xi1>
    %131 = vector.broadcast %130 : vector<1x128xi1> to vector<16x128xi1>
    %132 = vector.shape_cast %127 : vector<16x1xf32> to vector<16x1xf32>
    %133 = vector.broadcast %132 : vector<16x1xf32> to vector<16x128xf32>
    %134 = vector.broadcast %cst_20 : f32 to vector<16x128xf32>
    %135 = arith.select %131, %133, %134 : vector<16x128xi1>, vector<16x128xf32>
    %136 = arith.addf %115, %135 : vector<16x128xf32>
    %137 = vector.extract_strided_slice %1 {offsets = [0, 13], sizes = [16, 1], strides = [1, 1]} : vector<16x88xf32> to vector<16x1xf32>
    %c2_i32_21 = arith.constant 2 : i32
    %138 = vector.broadcast %c2_i32_21 : i32 to vector<1x128xi32>
    %139 = arith.cmpi eq, %116, %138 : vector<1x128xi32>
    %cst_22 = arith.constant 0.000000e+00 : f32
    %140 = vector.shape_cast %139 : vector<1x128xi1> to vector<1x128xi1>
    %141 = vector.broadcast %140 : vector<1x128xi1> to vector<16x128xi1>
    %142 = vector.shape_cast %137 : vector<16x1xf32> to vector<16x1xf32>
    %143 = vector.broadcast %142 : vector<16x1xf32> to vector<16x128xf32>
    %144 = vector.broadcast %cst_22 : f32 to vector<16x128xf32>
    %145 = arith.select %141, %143, %144 : vector<16x128xi1>, vector<16x128xf32>
    %146 = arith.addf %126, %145 : vector<16x128xf32>
    %147 = vector.extract_strided_slice %1 {offsets = [0, 14], sizes = [16, 1], strides = [1, 1]} : vector<16x88xf32> to vector<16x1xf32>
    %c3_i32_23 = arith.constant 3 : i32
    %148 = vector.broadcast %c3_i32_23 : i32 to vector<1x128xi32>
    %149 = arith.cmpi eq, %116, %148 : vector<1x128xi32>
    %cst_24 = arith.constant 0.000000e+00 : f32
    %150 = vector.shape_cast %149 : vector<1x128xi1> to vector<1x128xi1>
    %151 = vector.broadcast %150 : vector<1x128xi1> to vector<16x128xi1>
    %152 = vector.shape_cast %147 : vector<16x1xf32> to vector<16x1xf32>
    %153 = vector.broadcast %152 : vector<16x1xf32> to vector<16x128xf32>
    %154 = vector.broadcast %cst_24 : f32 to vector<16x128xf32>
    %155 = arith.select %151, %153, %154 : vector<16x128xi1>, vector<16x128xf32>
    %156 = arith.addf %136, %155 : vector<16x128xf32>
    %157 = vector.extract_strided_slice %1 {offsets = [0, 15], sizes = [16, 1], strides = [1, 1]} : vector<16x88xf32> to vector<16x1xf32>
    %c4_i32_25 = arith.constant 4 : i32
    %158 = vector.broadcast %c4_i32_25 : i32 to vector<1x128xi32>
    %159 = arith.cmpi eq, %116, %158 : vector<1x128xi32>
    %cst_26 = arith.constant 0.000000e+00 : f32
    %160 = vector.shape_cast %159 : vector<1x128xi1> to vector<1x128xi1>
    %161 = vector.broadcast %160 : vector<1x128xi1> to vector<16x128xi1>
    %162 = vector.shape_cast %157 : vector<16x1xf32> to vector<16x1xf32>
    %163 = vector.broadcast %162 : vector<16x1xf32> to vector<16x128xf32>
    %164 = vector.broadcast %cst_26 : f32 to vector<16x128xf32>
    %165 = arith.select %161, %163, %164 : vector<16x128xi1>, vector<16x128xf32>
    %166 = arith.addf %146, %165 : vector<16x128xf32>
    %167 = vector.extract_strided_slice %1 {offsets = [0, 16], sizes = [16, 1], strides = [1, 1]} : vector<16x88xf32> to vector<16x1xf32>
    %c5_i32_27 = arith.constant 5 : i32
    %168 = vector.broadcast %c5_i32_27 : i32 to vector<1x128xi32>
    %169 = arith.cmpi eq, %116, %168 : vector<1x128xi32>
    %cst_28 = arith.constant 0.000000e+00 : f32
    %170 = vector.shape_cast %169 : vector<1x128xi1> to vector<1x128xi1>
    %171 = vector.broadcast %170 : vector<1x128xi1> to vector<16x128xi1>
    %172 = vector.shape_cast %167 : vector<16x1xf32> to vector<16x1xf32>
    %173 = vector.broadcast %172 : vector<16x1xf32> to vector<16x128xf32>
    %174 = vector.broadcast %cst_28 : f32 to vector<16x128xf32>
    %175 = arith.select %171, %173, %174 : vector<16x128xi1>, vector<16x128xf32>
    %176 = arith.addf %156, %175 : vector<16x128xf32>
    %177 = vector.extract_strided_slice %1 {offsets = [0, 17], sizes = [16, 1], strides = [1, 1]} : vector<16x88xf32> to vector<16x1xf32>
    %c6_i32_29 = arith.constant 6 : i32
    %178 = vector.broadcast %c6_i32_29 : i32 to vector<1x128xi32>
    %179 = arith.cmpi eq, %116, %178 : vector<1x128xi32>
    %cst_30 = arith.constant 0.000000e+00 : f32
    %180 = vector.shape_cast %179 : vector<1x128xi1> to vector<1x128xi1>
    %181 = vector.broadcast %180 : vector<1x128xi1> to vector<16x128xi1>
    %182 = vector.shape_cast %177 : vector<16x1xf32> to vector<16x1xf32>
    %183 = vector.broadcast %182 : vector<16x1xf32> to vector<16x128xf32>
    %184 = vector.broadcast %cst_30 : f32 to vector<16x128xf32>
    %185 = arith.select %181, %183, %184 : vector<16x128xi1>, vector<16x128xf32>
    %186 = arith.addf %166, %185 : vector<16x128xf32>
    %187 = vector.extract_strided_slice %1 {offsets = [0, 18], sizes = [16, 1], strides = [1, 1]} : vector<16x88xf32> to vector<16x1xf32>
    %c7_i32_31 = arith.constant 7 : i32
    %188 = vector.broadcast %c7_i32_31 : i32 to vector<1x128xi32>
    %189 = arith.cmpi eq, %116, %188 : vector<1x128xi32>
    %cst_32 = arith.constant 0.000000e+00 : f32
    %190 = vector.shape_cast %189 : vector<1x128xi1> to vector<1x128xi1>
    %191 = vector.broadcast %190 : vector<1x128xi1> to vector<16x128xi1>
    %192 = vector.shape_cast %187 : vector<16x1xf32> to vector<16x1xf32>
    %193 = vector.broadcast %192 : vector<16x1xf32> to vector<16x128xf32>
    %194 = vector.broadcast %cst_32 : f32 to vector<16x128xf32>
    %195 = arith.select %191, %193, %194 : vector<16x128xi1>, vector<16x128xf32>
    %196 = arith.addf %176, %195 : vector<16x128xf32>
    %197 = vector.extract_strided_slice %1 {offsets = [0, 19], sizes = [16, 1], strides = [1, 1]} : vector<16x88xf32> to vector<16x1xf32>
    %c8_i32_33 = arith.constant 8 : i32
    %198 = vector.broadcast %c8_i32_33 : i32 to vector<1x128xi32>
    %199 = arith.cmpi eq, %116, %198 : vector<1x128xi32>
    %cst_34 = arith.constant 0.000000e+00 : f32
    %200 = vector.shape_cast %199 : vector<1x128xi1> to vector<1x128xi1>
    %201 = vector.broadcast %200 : vector<1x128xi1> to vector<16x128xi1>
    %202 = vector.shape_cast %197 : vector<16x1xf32> to vector<16x1xf32>
    %203 = vector.broadcast %202 : vector<16x1xf32> to vector<16x128xf32>
    %204 = vector.broadcast %cst_34 : f32 to vector<16x128xf32>
    %205 = arith.select %201, %203, %204 : vector<16x128xi1>, vector<16x128xf32>
    %206 = arith.addf %186, %205 : vector<16x128xf32>
    %207 = vector.extract_strided_slice %1 {offsets = [0, 20], sizes = [16, 1], strides = [1, 1]} : vector<16x88xf32> to vector<16x1xf32>
    %c9_i32_35 = arith.constant 9 : i32
    %208 = vector.broadcast %c9_i32_35 : i32 to vector<1x128xi32>
    %209 = arith.cmpi eq, %116, %208 : vector<1x128xi32>
    %cst_36 = arith.constant 0.000000e+00 : f32
    %210 = vector.shape_cast %209 : vector<1x128xi1> to vector<1x128xi1>
    %211 = vector.broadcast %210 : vector<1x128xi1> to vector<16x128xi1>
    %212 = vector.shape_cast %207 : vector<16x1xf32> to vector<16x1xf32>
    %213 = vector.broadcast %212 : vector<16x1xf32> to vector<16x128xf32>
    %214 = vector.broadcast %cst_36 : f32 to vector<16x128xf32>
    %215 = arith.select %211, %213, %214 : vector<16x128xi1>, vector<16x128xf32>
    %216 = arith.addf %196, %215 : vector<16x128xf32>
    %217 = vector.extract_strided_slice %1 {offsets = [0, 21], sizes = [16, 1], strides = [1, 1]} : vector<16x88xf32> to vector<16x1xf32>
    %c10_i32_37 = arith.constant 10 : i32
    %218 = vector.broadcast %c10_i32_37 : i32 to vector<1x128xi32>
    %219 = arith.cmpi eq, %116, %218 : vector<1x128xi32>
    %cst_38 = arith.constant 0.000000e+00 : f32
    %220 = vector.shape_cast %219 : vector<1x128xi1> to vector<1x128xi1>
    %221 = vector.broadcast %220 : vector<1x128xi1> to vector<16x128xi1>
    %222 = vector.shape_cast %217 : vector<16x1xf32> to vector<16x1xf32>
    %223 = vector.broadcast %222 : vector<16x1xf32> to vector<16x128xf32>
    %224 = vector.broadcast %cst_38 : f32 to vector<16x128xf32>
    %225 = arith.select %221, %223, %224 : vector<16x128xi1>, vector<16x128xf32>
    %226 = arith.addf %206, %225 : vector<16x128xf32>
    %227 = vector.extract_strided_slice %0 {offsets = [2, 0], sizes = [1, 128], strides = [1, 1]} : vector<8x128xi32> to vector<1x128xi32>
    %228 = vector.extract_strided_slice %1 {offsets = [0, 22], sizes = [16, 1], strides = [1, 1]} : vector<16x88xf32> to vector<16x1xf32>
    %c0_i32_39 = arith.constant 0 : i32
    %229 = vector.broadcast %c0_i32_39 : i32 to vector<1x128xi32>
    %230 = arith.cmpi eq, %227, %229 : vector<1x128xi32>
    %cst_40 = arith.constant 0.000000e+00 : f32
    %231 = vector.shape_cast %230 : vector<1x128xi1> to vector<1x128xi1>
    %232 = vector.broadcast %231 : vector<1x128xi1> to vector<16x128xi1>
    %233 = vector.shape_cast %228 : vector<16x1xf32> to vector<16x1xf32>
    %234 = vector.broadcast %233 : vector<16x1xf32> to vector<16x128xf32>
    %235 = vector.broadcast %cst_40 : f32 to vector<16x128xf32>
    %236 = arith.select %232, %234, %235 : vector<16x128xi1>, vector<16x128xf32>
    %237 = arith.addf %216, %236 : vector<16x128xf32>
    %238 = vector.extract_strided_slice %1 {offsets = [0, 23], sizes = [16, 1], strides = [1, 1]} : vector<16x88xf32> to vector<16x1xf32>
    %c1_i32_41 = arith.constant 1 : i32
    %239 = vector.broadcast %c1_i32_41 : i32 to vector<1x128xi32>
    %240 = arith.cmpi eq, %227, %239 : vector<1x128xi32>
    %cst_42 = arith.constant 0.000000e+00 : f32
    %241 = vector.shape_cast %240 : vector<1x128xi1> to vector<1x128xi1>
    %242 = vector.broadcast %241 : vector<1x128xi1> to vector<16x128xi1>
    %243 = vector.shape_cast %238 : vector<16x1xf32> to vector<16x1xf32>
    %244 = vector.broadcast %243 : vector<16x1xf32> to vector<16x128xf32>
    %245 = vector.broadcast %cst_42 : f32 to vector<16x128xf32>
    %246 = arith.select %242, %244, %245 : vector<16x128xi1>, vector<16x128xf32>
    %247 = arith.addf %226, %246 : vector<16x128xf32>
    %248 = vector.extract_strided_slice %1 {offsets = [0, 24], sizes = [16, 1], strides = [1, 1]} : vector<16x88xf32> to vector<16x1xf32>
    %c2_i32_43 = arith.constant 2 : i32
    %249 = vector.broadcast %c2_i32_43 : i32 to vector<1x128xi32>
    %250 = arith.cmpi eq, %227, %249 : vector<1x128xi32>
    %cst_44 = arith.constant 0.000000e+00 : f32
    %251 = vector.shape_cast %250 : vector<1x128xi1> to vector<1x128xi1>
    %252 = vector.broadcast %251 : vector<1x128xi1> to vector<16x128xi1>
    %253 = vector.shape_cast %248 : vector<16x1xf32> to vector<16x1xf32>
    %254 = vector.broadcast %253 : vector<16x1xf32> to vector<16x128xf32>
    %255 = vector.broadcast %cst_44 : f32 to vector<16x128xf32>
    %256 = arith.select %252, %254, %255 : vector<16x128xi1>, vector<16x128xf32>
    %257 = arith.addf %237, %256 : vector<16x128xf32>
    %258 = vector.extract_strided_slice %1 {offsets = [0, 25], sizes = [16, 1], strides = [1, 1]} : vector<16x88xf32> to vector<16x1xf32>
    %c3_i32_45 = arith.constant 3 : i32
    %259 = vector.broadcast %c3_i32_45 : i32 to vector<1x128xi32>
    %260 = arith.cmpi eq, %227, %259 : vector<1x128xi32>
    %cst_46 = arith.constant 0.000000e+00 : f32
    %261 = vector.shape_cast %260 : vector<1x128xi1> to vector<1x128xi1>
    %262 = vector.broadcast %261 : vector<1x128xi1> to vector<16x128xi1>
    %263 = vector.shape_cast %258 : vector<16x1xf32> to vector<16x1xf32>
    %264 = vector.broadcast %263 : vector<16x1xf32> to vector<16x128xf32>
    %265 = vector.broadcast %cst_46 : f32 to vector<16x128xf32>
    %266 = arith.select %262, %264, %265 : vector<16x128xi1>, vector<16x128xf32>
    %267 = arith.addf %247, %266 : vector<16x128xf32>
    %268 = vector.extract_strided_slice %1 {offsets = [0, 26], sizes = [16, 1], strides = [1, 1]} : vector<16x88xf32> to vector<16x1xf32>
    %c4_i32_47 = arith.constant 4 : i32
    %269 = vector.broadcast %c4_i32_47 : i32 to vector<1x128xi32>
    %270 = arith.cmpi eq, %227, %269 : vector<1x128xi32>
    %cst_48 = arith.constant 0.000000e+00 : f32
    %271 = vector.shape_cast %270 : vector<1x128xi1> to vector<1x128xi1>
    %272 = vector.broadcast %271 : vector<1x128xi1> to vector<16x128xi1>
    %273 = vector.shape_cast %268 : vector<16x1xf32> to vector<16x1xf32>
    %274 = vector.broadcast %273 : vector<16x1xf32> to vector<16x128xf32>
    %275 = vector.broadcast %cst_48 : f32 to vector<16x128xf32>
    %276 = arith.select %272, %274, %275 : vector<16x128xi1>, vector<16x128xf32>
    %277 = arith.addf %257, %276 : vector<16x128xf32>
    %278 = vector.extract_strided_slice %1 {offsets = [0, 27], sizes = [16, 1], strides = [1, 1]} : vector<16x88xf32> to vector<16x1xf32>
    %c5_i32_49 = arith.constant 5 : i32
    %279 = vector.broadcast %c5_i32_49 : i32 to vector<1x128xi32>
    %280 = arith.cmpi eq, %227, %279 : vector<1x128xi32>
    %cst_50 = arith.constant 0.000000e+00 : f32
    %281 = vector.shape_cast %280 : vector<1x128xi1> to vector<1x128xi1>
    %282 = vector.broadcast %281 : vector<1x128xi1> to vector<16x128xi1>
    %283 = vector.shape_cast %278 : vector<16x1xf32> to vector<16x1xf32>
    %284 = vector.broadcast %283 : vector<16x1xf32> to vector<16x128xf32>
    %285 = vector.broadcast %cst_50 : f32 to vector<16x128xf32>
    %286 = arith.select %282, %284, %285 : vector<16x128xi1>, vector<16x128xf32>
    %287 = arith.addf %267, %286 : vector<16x128xf32>
    %288 = vector.extract_strided_slice %1 {offsets = [0, 28], sizes = [16, 1], strides = [1, 1]} : vector<16x88xf32> to vector<16x1xf32>
    %c6_i32_51 = arith.constant 6 : i32
    %289 = vector.broadcast %c6_i32_51 : i32 to vector<1x128xi32>
    %290 = arith.cmpi eq, %227, %289 : vector<1x128xi32>
    %cst_52 = arith.constant 0.000000e+00 : f32
    %291 = vector.shape_cast %290 : vector<1x128xi1> to vector<1x128xi1>
    %292 = vector.broadcast %291 : vector<1x128xi1> to vector<16x128xi1>
    %293 = vector.shape_cast %288 : vector<16x1xf32> to vector<16x1xf32>
    %294 = vector.broadcast %293 : vector<16x1xf32> to vector<16x128xf32>
    %295 = vector.broadcast %cst_52 : f32 to vector<16x128xf32>
    %296 = arith.select %292, %294, %295 : vector<16x128xi1>, vector<16x128xf32>
    %297 = arith.addf %277, %296 : vector<16x128xf32>
    %298 = vector.extract_strided_slice %1 {offsets = [0, 29], sizes = [16, 1], strides = [1, 1]} : vector<16x88xf32> to vector<16x1xf32>
    %c7_i32_53 = arith.constant 7 : i32
    %299 = vector.broadcast %c7_i32_53 : i32 to vector<1x128xi32>
    %300 = arith.cmpi eq, %227, %299 : vector<1x128xi32>
    %cst_54 = arith.constant 0.000000e+00 : f32
    %301 = vector.shape_cast %300 : vector<1x128xi1> to vector<1x128xi1>
    %302 = vector.broadcast %301 : vector<1x128xi1> to vector<16x128xi1>
    %303 = vector.shape_cast %298 : vector<16x1xf32> to vector<16x1xf32>
    %304 = vector.broadcast %303 : vector<16x1xf32> to vector<16x128xf32>
    %305 = vector.broadcast %cst_54 : f32 to vector<16x128xf32>
    %306 = arith.select %302, %304, %305 : vector<16x128xi1>, vector<16x128xf32>
    %307 = arith.addf %287, %306 : vector<16x128xf32>
    %308 = vector.extract_strided_slice %1 {offsets = [0, 30], sizes = [16, 1], strides = [1, 1]} : vector<16x88xf32> to vector<16x1xf32>
    %c8_i32_55 = arith.constant 8 : i32
    %309 = vector.broadcast %c8_i32_55 : i32 to vector<1x128xi32>
    %310 = arith.cmpi eq, %227, %309 : vector<1x128xi32>
    %cst_56 = arith.constant 0.000000e+00 : f32
    %311 = vector.shape_cast %310 : vector<1x128xi1> to vector<1x128xi1>
    %312 = vector.broadcast %311 : vector<1x128xi1> to vector<16x128xi1>
    %313 = vector.shape_cast %308 : vector<16x1xf32> to vector<16x1xf32>
    %314 = vector.broadcast %313 : vector<16x1xf32> to vector<16x128xf32>
    %315 = vector.broadcast %cst_56 : f32 to vector<16x128xf32>
    %316 = arith.select %312, %314, %315 : vector<16x128xi1>, vector<16x128xf32>
    %317 = arith.addf %297, %316 : vector<16x128xf32>
    %318 = vector.extract_strided_slice %1 {offsets = [0, 31], sizes = [16, 1], strides = [1, 1]} : vector<16x88xf32> to vector<16x1xf32>
    %c9_i32_57 = arith.constant 9 : i32
    %319 = vector.broadcast %c9_i32_57 : i32 to vector<1x128xi32>
    %320 = arith.cmpi eq, %227, %319 : vector<1x128xi32>
    %cst_58 = arith.constant 0.000000e+00 : f32
    %321 = vector.shape_cast %320 : vector<1x128xi1> to vector<1x128xi1>
    %322 = vector.broadcast %321 : vector<1x128xi1> to vector<16x128xi1>
    %323 = vector.shape_cast %318 : vector<16x1xf32> to vector<16x1xf32>
    %324 = vector.broadcast %323 : vector<16x1xf32> to vector<16x128xf32>
    %325 = vector.broadcast %cst_58 : f32 to vector<16x128xf32>
    %326 = arith.select %322, %324, %325 : vector<16x128xi1>, vector<16x128xf32>
    %327 = arith.addf %307, %326 : vector<16x128xf32>
    %328 = vector.extract_strided_slice %1 {offsets = [0, 32], sizes = [16, 1], strides = [1, 1]} : vector<16x88xf32> to vector<16x1xf32>
    %c10_i32_59 = arith.constant 10 : i32
    %329 = vector.broadcast %c10_i32_59 : i32 to vector<1x128xi32>
    %330 = arith.cmpi eq, %227, %329 : vector<1x128xi32>
    %cst_60 = arith.constant 0.000000e+00 : f32
    %331 = vector.shape_cast %330 : vector<1x128xi1> to vector<1x128xi1>
    %332 = vector.broadcast %331 : vector<1x128xi1> to vector<16x128xi1>
    %333 = vector.shape_cast %328 : vector<16x1xf32> to vector<16x1xf32>
    %334 = vector.broadcast %333 : vector<16x1xf32> to vector<16x128xf32>
    %335 = vector.broadcast %cst_60 : f32 to vector<16x128xf32>
    %336 = arith.select %332, %334, %335 : vector<16x128xi1>, vector<16x128xf32>
    %337 = arith.addf %317, %336 : vector<16x128xf32>
    %338 = vector.extract_strided_slice %0 {offsets = [3, 0], sizes = [1, 128], strides = [1, 1]} : vector<8x128xi32> to vector<1x128xi32>
    %339 = vector.extract_strided_slice %1 {offsets = [0, 33], sizes = [16, 1], strides = [1, 1]} : vector<16x88xf32> to vector<16x1xf32>
    %c0_i32_61 = arith.constant 0 : i32
    %340 = vector.broadcast %c0_i32_61 : i32 to vector<1x128xi32>
    %341 = arith.cmpi eq, %338, %340 : vector<1x128xi32>
    %cst_62 = arith.constant 0.000000e+00 : f32
    %342 = vector.shape_cast %341 : vector<1x128xi1> to vector<1x128xi1>
    %343 = vector.broadcast %342 : vector<1x128xi1> to vector<16x128xi1>
    %344 = vector.shape_cast %339 : vector<16x1xf32> to vector<16x1xf32>
    %345 = vector.broadcast %344 : vector<16x1xf32> to vector<16x128xf32>
    %346 = vector.broadcast %cst_62 : f32 to vector<16x128xf32>
    %347 = arith.select %343, %345, %346 : vector<16x128xi1>, vector<16x128xf32>
    %348 = arith.addf %327, %347 : vector<16x128xf32>
    %349 = vector.extract_strided_slice %1 {offsets = [0, 34], sizes = [16, 1], strides = [1, 1]} : vector<16x88xf32> to vector<16x1xf32>
    %c1_i32_63 = arith.constant 1 : i32
    %350 = vector.broadcast %c1_i32_63 : i32 to vector<1x128xi32>
    %351 = arith.cmpi eq, %338, %350 : vector<1x128xi32>
    %cst_64 = arith.constant 0.000000e+00 : f32
    %352 = vector.shape_cast %351 : vector<1x128xi1> to vector<1x128xi1>
    %353 = vector.broadcast %352 : vector<1x128xi1> to vector<16x128xi1>
    %354 = vector.shape_cast %349 : vector<16x1xf32> to vector<16x1xf32>
    %355 = vector.broadcast %354 : vector<16x1xf32> to vector<16x128xf32>
    %356 = vector.broadcast %cst_64 : f32 to vector<16x128xf32>
    %357 = arith.select %353, %355, %356 : vector<16x128xi1>, vector<16x128xf32>
    %358 = arith.addf %337, %357 : vector<16x128xf32>
    %359 = vector.extract_strided_slice %1 {offsets = [0, 35], sizes = [16, 1], strides = [1, 1]} : vector<16x88xf32> to vector<16x1xf32>
    %c2_i32_65 = arith.constant 2 : i32
    %360 = vector.broadcast %c2_i32_65 : i32 to vector<1x128xi32>
    %361 = arith.cmpi eq, %338, %360 : vector<1x128xi32>
    %cst_66 = arith.constant 0.000000e+00 : f32
    %362 = vector.shape_cast %361 : vector<1x128xi1> to vector<1x128xi1>
    %363 = vector.broadcast %362 : vector<1x128xi1> to vector<16x128xi1>
    %364 = vector.shape_cast %359 : vector<16x1xf32> to vector<16x1xf32>
    %365 = vector.broadcast %364 : vector<16x1xf32> to vector<16x128xf32>
    %366 = vector.broadcast %cst_66 : f32 to vector<16x128xf32>
    %367 = arith.select %363, %365, %366 : vector<16x128xi1>, vector<16x128xf32>
    %368 = arith.addf %348, %367 : vector<16x128xf32>
    %369 = vector.extract_strided_slice %1 {offsets = [0, 36], sizes = [16, 1], strides = [1, 1]} : vector<16x88xf32> to vector<16x1xf32>
    %c3_i32_67 = arith.constant 3 : i32
    %370 = vector.broadcast %c3_i32_67 : i32 to vector<1x128xi32>
    %371 = arith.cmpi eq, %338, %370 : vector<1x128xi32>
    %cst_68 = arith.constant 0.000000e+00 : f32
    %372 = vector.shape_cast %371 : vector<1x128xi1> to vector<1x128xi1>
    %373 = vector.broadcast %372 : vector<1x128xi1> to vector<16x128xi1>
    %374 = vector.shape_cast %369 : vector<16x1xf32> to vector<16x1xf32>
    %375 = vector.broadcast %374 : vector<16x1xf32> to vector<16x128xf32>
    %376 = vector.broadcast %cst_68 : f32 to vector<16x128xf32>
    %377 = arith.select %373, %375, %376 : vector<16x128xi1>, vector<16x128xf32>
    %378 = arith.addf %358, %377 : vector<16x128xf32>
    %379 = vector.extract_strided_slice %1 {offsets = [0, 37], sizes = [16, 1], strides = [1, 1]} : vector<16x88xf32> to vector<16x1xf32>
    %c4_i32_69 = arith.constant 4 : i32
    %380 = vector.broadcast %c4_i32_69 : i32 to vector<1x128xi32>
    %381 = arith.cmpi eq, %338, %380 : vector<1x128xi32>
    %cst_70 = arith.constant 0.000000e+00 : f32
    %382 = vector.shape_cast %381 : vector<1x128xi1> to vector<1x128xi1>
    %383 = vector.broadcast %382 : vector<1x128xi1> to vector<16x128xi1>
    %384 = vector.shape_cast %379 : vector<16x1xf32> to vector<16x1xf32>
    %385 = vector.broadcast %384 : vector<16x1xf32> to vector<16x128xf32>
    %386 = vector.broadcast %cst_70 : f32 to vector<16x128xf32>
    %387 = arith.select %383, %385, %386 : vector<16x128xi1>, vector<16x128xf32>
    %388 = arith.addf %368, %387 : vector<16x128xf32>
    %389 = vector.extract_strided_slice %1 {offsets = [0, 38], sizes = [16, 1], strides = [1, 1]} : vector<16x88xf32> to vector<16x1xf32>
    %c5_i32_71 = arith.constant 5 : i32
    %390 = vector.broadcast %c5_i32_71 : i32 to vector<1x128xi32>
    %391 = arith.cmpi eq, %338, %390 : vector<1x128xi32>
    %cst_72 = arith.constant 0.000000e+00 : f32
    %392 = vector.shape_cast %391 : vector<1x128xi1> to vector<1x128xi1>
    %393 = vector.broadcast %392 : vector<1x128xi1> to vector<16x128xi1>
    %394 = vector.shape_cast %389 : vector<16x1xf32> to vector<16x1xf32>
    %395 = vector.broadcast %394 : vector<16x1xf32> to vector<16x128xf32>
    %396 = vector.broadcast %cst_72 : f32 to vector<16x128xf32>
    %397 = arith.select %393, %395, %396 : vector<16x128xi1>, vector<16x128xf32>
    %398 = arith.addf %378, %397 : vector<16x128xf32>
    %399 = vector.extract_strided_slice %1 {offsets = [0, 39], sizes = [16, 1], strides = [1, 1]} : vector<16x88xf32> to vector<16x1xf32>
    %c6_i32_73 = arith.constant 6 : i32
    %400 = vector.broadcast %c6_i32_73 : i32 to vector<1x128xi32>
    %401 = arith.cmpi eq, %338, %400 : vector<1x128xi32>
    %cst_74 = arith.constant 0.000000e+00 : f32
    %402 = vector.shape_cast %401 : vector<1x128xi1> to vector<1x128xi1>
    %403 = vector.broadcast %402 : vector<1x128xi1> to vector<16x128xi1>
    %404 = vector.shape_cast %399 : vector<16x1xf32> to vector<16x1xf32>
    %405 = vector.broadcast %404 : vector<16x1xf32> to vector<16x128xf32>
    %406 = vector.broadcast %cst_74 : f32 to vector<16x128xf32>
    %407 = arith.select %403, %405, %406 : vector<16x128xi1>, vector<16x128xf32>
    %408 = arith.addf %388, %407 : vector<16x128xf32>
    %409 = vector.extract_strided_slice %1 {offsets = [0, 40], sizes = [16, 1], strides = [1, 1]} : vector<16x88xf32> to vector<16x1xf32>
    %c7_i32_75 = arith.constant 7 : i32
    %410 = vector.broadcast %c7_i32_75 : i32 to vector<1x128xi32>
    %411 = arith.cmpi eq, %338, %410 : vector<1x128xi32>
    %cst_76 = arith.constant 0.000000e+00 : f32
    %412 = vector.shape_cast %411 : vector<1x128xi1> to vector<1x128xi1>
    %413 = vector.broadcast %412 : vector<1x128xi1> to vector<16x128xi1>
    %414 = vector.shape_cast %409 : vector<16x1xf32> to vector<16x1xf32>
    %415 = vector.broadcast %414 : vector<16x1xf32> to vector<16x128xf32>
    %416 = vector.broadcast %cst_76 : f32 to vector<16x128xf32>
    %417 = arith.select %413, %415, %416 : vector<16x128xi1>, vector<16x128xf32>
    %418 = arith.addf %398, %417 : vector<16x128xf32>
    %419 = vector.extract_strided_slice %1 {offsets = [0, 41], sizes = [16, 1], strides = [1, 1]} : vector<16x88xf32> to vector<16x1xf32>
    %c8_i32_77 = arith.constant 8 : i32
    %420 = vector.broadcast %c8_i32_77 : i32 to vector<1x128xi32>
    %421 = arith.cmpi eq, %338, %420 : vector<1x128xi32>
    %cst_78 = arith.constant 0.000000e+00 : f32
    %422 = vector.shape_cast %421 : vector<1x128xi1> to vector<1x128xi1>
    %423 = vector.broadcast %422 : vector<1x128xi1> to vector<16x128xi1>
    %424 = vector.shape_cast %419 : vector<16x1xf32> to vector<16x1xf32>
    %425 = vector.broadcast %424 : vector<16x1xf32> to vector<16x128xf32>
    %426 = vector.broadcast %cst_78 : f32 to vector<16x128xf32>
    %427 = arith.select %423, %425, %426 : vector<16x128xi1>, vector<16x128xf32>
    %428 = arith.addf %408, %427 : vector<16x128xf32>
    %429 = vector.extract_strided_slice %1 {offsets = [0, 42], sizes = [16, 1], strides = [1, 1]} : vector<16x88xf32> to vector<16x1xf32>
    %c9_i32_79 = arith.constant 9 : i32
    %430 = vector.broadcast %c9_i32_79 : i32 to vector<1x128xi32>
    %431 = arith.cmpi eq, %338, %430 : vector<1x128xi32>
    %cst_80 = arith.constant 0.000000e+00 : f32
    %432 = vector.shape_cast %431 : vector<1x128xi1> to vector<1x128xi1>
    %433 = vector.broadcast %432 : vector<1x128xi1> to vector<16x128xi1>
    %434 = vector.shape_cast %429 : vector<16x1xf32> to vector<16x1xf32>
    %435 = vector.broadcast %434 : vector<16x1xf32> to vector<16x128xf32>
    %436 = vector.broadcast %cst_80 : f32 to vector<16x128xf32>
    %437 = arith.select %433, %435, %436 : vector<16x128xi1>, vector<16x128xf32>
    %438 = arith.addf %418, %437 : vector<16x128xf32>
    %439 = vector.extract_strided_slice %1 {offsets = [0, 43], sizes = [16, 1], strides = [1, 1]} : vector<16x88xf32> to vector<16x1xf32>
    %c10_i32_81 = arith.constant 10 : i32
    %440 = vector.broadcast %c10_i32_81 : i32 to vector<1x128xi32>
    %441 = arith.cmpi eq, %338, %440 : vector<1x128xi32>
    %cst_82 = arith.constant 0.000000e+00 : f32
    %442 = vector.shape_cast %441 : vector<1x128xi1> to vector<1x128xi1>
    %443 = vector.broadcast %442 : vector<1x128xi1> to vector<16x128xi1>
    %444 = vector.shape_cast %439 : vector<16x1xf32> to vector<16x1xf32>
    %445 = vector.broadcast %444 : vector<16x1xf32> to vector<16x128xf32>
    %446 = vector.broadcast %cst_82 : f32 to vector<16x128xf32>
    %447 = arith.select %443, %445, %446 : vector<16x128xi1>, vector<16x128xf32>
    %448 = arith.addf %428, %447 : vector<16x128xf32>
    %449 = vector.extract_strided_slice %0 {offsets = [4, 0], sizes = [1, 128], strides = [1, 1]} : vector<8x128xi32> to vector<1x128xi32>
    %450 = vector.extract_strided_slice %1 {offsets = [0, 44], sizes = [16, 1], strides = [1, 1]} : vector<16x88xf32> to vector<16x1xf32>
    %c0_i32_83 = arith.constant 0 : i32
    %451 = vector.broadcast %c0_i32_83 : i32 to vector<1x128xi32>
    %452 = arith.cmpi eq, %449, %451 : vector<1x128xi32>
    %cst_84 = arith.constant 0.000000e+00 : f32
    %453 = vector.shape_cast %452 : vector<1x128xi1> to vector<1x128xi1>
    %454 = vector.broadcast %453 : vector<1x128xi1> to vector<16x128xi1>
    %455 = vector.shape_cast %450 : vector<16x1xf32> to vector<16x1xf32>
    %456 = vector.broadcast %455 : vector<16x1xf32> to vector<16x128xf32>
    %457 = vector.broadcast %cst_84 : f32 to vector<16x128xf32>
    %458 = arith.select %454, %456, %457 : vector<16x128xi1>, vector<16x128xf32>
    %459 = arith.addf %438, %458 : vector<16x128xf32>
    %460 = vector.extract_strided_slice %1 {offsets = [0, 45], sizes = [16, 1], strides = [1, 1]} : vector<16x88xf32> to vector<16x1xf32>
    %c1_i32_85 = arith.constant 1 : i32
    %461 = vector.broadcast %c1_i32_85 : i32 to vector<1x128xi32>
    %462 = arith.cmpi eq, %449, %461 : vector<1x128xi32>
    %cst_86 = arith.constant 0.000000e+00 : f32
    %463 = vector.shape_cast %462 : vector<1x128xi1> to vector<1x128xi1>
    %464 = vector.broadcast %463 : vector<1x128xi1> to vector<16x128xi1>
    %465 = vector.shape_cast %460 : vector<16x1xf32> to vector<16x1xf32>
    %466 = vector.broadcast %465 : vector<16x1xf32> to vector<16x128xf32>
    %467 = vector.broadcast %cst_86 : f32 to vector<16x128xf32>
    %468 = arith.select %464, %466, %467 : vector<16x128xi1>, vector<16x128xf32>
    %469 = arith.addf %448, %468 : vector<16x128xf32>
    %470 = vector.extract_strided_slice %1 {offsets = [0, 46], sizes = [16, 1], strides = [1, 1]} : vector<16x88xf32> to vector<16x1xf32>
    %c2_i32_87 = arith.constant 2 : i32
    %471 = vector.broadcast %c2_i32_87 : i32 to vector<1x128xi32>
    %472 = arith.cmpi eq, %449, %471 : vector<1x128xi32>
    %cst_88 = arith.constant 0.000000e+00 : f32
    %473 = vector.shape_cast %472 : vector<1x128xi1> to vector<1x128xi1>
    %474 = vector.broadcast %473 : vector<1x128xi1> to vector<16x128xi1>
    %475 = vector.shape_cast %470 : vector<16x1xf32> to vector<16x1xf32>
    %476 = vector.broadcast %475 : vector<16x1xf32> to vector<16x128xf32>
    %477 = vector.broadcast %cst_88 : f32 to vector<16x128xf32>
    %478 = arith.select %474, %476, %477 : vector<16x128xi1>, vector<16x128xf32>
    %479 = arith.addf %459, %478 : vector<16x128xf32>
    %480 = vector.extract_strided_slice %1 {offsets = [0, 47], sizes = [16, 1], strides = [1, 1]} : vector<16x88xf32> to vector<16x1xf32>
    %c3_i32_89 = arith.constant 3 : i32
    %481 = vector.broadcast %c3_i32_89 : i32 to vector<1x128xi32>
    %482 = arith.cmpi eq, %449, %481 : vector<1x128xi32>
    %cst_90 = arith.constant 0.000000e+00 : f32
    %483 = vector.shape_cast %482 : vector<1x128xi1> to vector<1x128xi1>
    %484 = vector.broadcast %483 : vector<1x128xi1> to vector<16x128xi1>
    %485 = vector.shape_cast %480 : vector<16x1xf32> to vector<16x1xf32>
    %486 = vector.broadcast %485 : vector<16x1xf32> to vector<16x128xf32>
    %487 = vector.broadcast %cst_90 : f32 to vector<16x128xf32>
    %488 = arith.select %484, %486, %487 : vector<16x128xi1>, vector<16x128xf32>
    %489 = arith.addf %469, %488 : vector<16x128xf32>
    %490 = vector.extract_strided_slice %1 {offsets = [0, 48], sizes = [16, 1], strides = [1, 1]} : vector<16x88xf32> to vector<16x1xf32>
    %c4_i32_91 = arith.constant 4 : i32
    %491 = vector.broadcast %c4_i32_91 : i32 to vector<1x128xi32>
    %492 = arith.cmpi eq, %449, %491 : vector<1x128xi32>
    %cst_92 = arith.constant 0.000000e+00 : f32
    %493 = vector.shape_cast %492 : vector<1x128xi1> to vector<1x128xi1>
    %494 = vector.broadcast %493 : vector<1x128xi1> to vector<16x128xi1>
    %495 = vector.shape_cast %490 : vector<16x1xf32> to vector<16x1xf32>
    %496 = vector.broadcast %495 : vector<16x1xf32> to vector<16x128xf32>
    %497 = vector.broadcast %cst_92 : f32 to vector<16x128xf32>
    %498 = arith.select %494, %496, %497 : vector<16x128xi1>, vector<16x128xf32>
    %499 = arith.addf %479, %498 : vector<16x128xf32>
    %500 = vector.extract_strided_slice %1 {offsets = [0, 49], sizes = [16, 1], strides = [1, 1]} : vector<16x88xf32> to vector<16x1xf32>
    %c5_i32_93 = arith.constant 5 : i32
    %501 = vector.broadcast %c5_i32_93 : i32 to vector<1x128xi32>
    %502 = arith.cmpi eq, %449, %501 : vector<1x128xi32>
    %cst_94 = arith.constant 0.000000e+00 : f32
    %503 = vector.shape_cast %502 : vector<1x128xi1> to vector<1x128xi1>
    %504 = vector.broadcast %503 : vector<1x128xi1> to vector<16x128xi1>
    %505 = vector.shape_cast %500 : vector<16x1xf32> to vector<16x1xf32>
    %506 = vector.broadcast %505 : vector<16x1xf32> to vector<16x128xf32>
    %507 = vector.broadcast %cst_94 : f32 to vector<16x128xf32>
    %508 = arith.select %504, %506, %507 : vector<16x128xi1>, vector<16x128xf32>
    %509 = arith.addf %489, %508 : vector<16x128xf32>
    %510 = vector.extract_strided_slice %1 {offsets = [0, 50], sizes = [16, 1], strides = [1, 1]} : vector<16x88xf32> to vector<16x1xf32>
    %c6_i32_95 = arith.constant 6 : i32
    %511 = vector.broadcast %c6_i32_95 : i32 to vector<1x128xi32>
    %512 = arith.cmpi eq, %449, %511 : vector<1x128xi32>
    %cst_96 = arith.constant 0.000000e+00 : f32
    %513 = vector.shape_cast %512 : vector<1x128xi1> to vector<1x128xi1>
    %514 = vector.broadcast %513 : vector<1x128xi1> to vector<16x128xi1>
    %515 = vector.shape_cast %510 : vector<16x1xf32> to vector<16x1xf32>
    %516 = vector.broadcast %515 : vector<16x1xf32> to vector<16x128xf32>
    %517 = vector.broadcast %cst_96 : f32 to vector<16x128xf32>
    %518 = arith.select %514, %516, %517 : vector<16x128xi1>, vector<16x128xf32>
    %519 = arith.addf %499, %518 : vector<16x128xf32>
    %520 = vector.extract_strided_slice %1 {offsets = [0, 51], sizes = [16, 1], strides = [1, 1]} : vector<16x88xf32> to vector<16x1xf32>
    %c7_i32_97 = arith.constant 7 : i32
    %521 = vector.broadcast %c7_i32_97 : i32 to vector<1x128xi32>
    %522 = arith.cmpi eq, %449, %521 : vector<1x128xi32>
    %cst_98 = arith.constant 0.000000e+00 : f32
    %523 = vector.shape_cast %522 : vector<1x128xi1> to vector<1x128xi1>
    %524 = vector.broadcast %523 : vector<1x128xi1> to vector<16x128xi1>
    %525 = vector.shape_cast %520 : vector<16x1xf32> to vector<16x1xf32>
    %526 = vector.broadcast %525 : vector<16x1xf32> to vector<16x128xf32>
    %527 = vector.broadcast %cst_98 : f32 to vector<16x128xf32>
    %528 = arith.select %524, %526, %527 : vector<16x128xi1>, vector<16x128xf32>
    %529 = arith.addf %509, %528 : vector<16x128xf32>
    %530 = vector.extract_strided_slice %1 {offsets = [0, 52], sizes = [16, 1], strides = [1, 1]} : vector<16x88xf32> to vector<16x1xf32>
    %c8_i32_99 = arith.constant 8 : i32
    %531 = vector.broadcast %c8_i32_99 : i32 to vector<1x128xi32>
    %532 = arith.cmpi eq, %449, %531 : vector<1x128xi32>
    %cst_100 = arith.constant 0.000000e+00 : f32
    %533 = vector.shape_cast %532 : vector<1x128xi1> to vector<1x128xi1>
    %534 = vector.broadcast %533 : vector<1x128xi1> to vector<16x128xi1>
    %535 = vector.shape_cast %530 : vector<16x1xf32> to vector<16x1xf32>
    %536 = vector.broadcast %535 : vector<16x1xf32> to vector<16x128xf32>
    %537 = vector.broadcast %cst_100 : f32 to vector<16x128xf32>
    %538 = arith.select %534, %536, %537 : vector<16x128xi1>, vector<16x128xf32>
    %539 = arith.addf %519, %538 : vector<16x128xf32>
    %540 = vector.extract_strided_slice %1 {offsets = [0, 53], sizes = [16, 1], strides = [1, 1]} : vector<16x88xf32> to vector<16x1xf32>
    %c9_i32_101 = arith.constant 9 : i32
    %541 = vector.broadcast %c9_i32_101 : i32 to vector<1x128xi32>
    %542 = arith.cmpi eq, %449, %541 : vector<1x128xi32>
    %cst_102 = arith.constant 0.000000e+00 : f32
    %543 = vector.shape_cast %542 : vector<1x128xi1> to vector<1x128xi1>
    %544 = vector.broadcast %543 : vector<1x128xi1> to vector<16x128xi1>
    %545 = vector.shape_cast %540 : vector<16x1xf32> to vector<16x1xf32>
    %546 = vector.broadcast %545 : vector<16x1xf32> to vector<16x128xf32>
    %547 = vector.broadcast %cst_102 : f32 to vector<16x128xf32>
    %548 = arith.select %544, %546, %547 : vector<16x128xi1>, vector<16x128xf32>
    %549 = arith.addf %529, %548 : vector<16x128xf32>
    %550 = vector.extract_strided_slice %1 {offsets = [0, 54], sizes = [16, 1], strides = [1, 1]} : vector<16x88xf32> to vector<16x1xf32>
    %c10_i32_103 = arith.constant 10 : i32
    %551 = vector.broadcast %c10_i32_103 : i32 to vector<1x128xi32>
    %552 = arith.cmpi eq, %449, %551 : vector<1x128xi32>
    %cst_104 = arith.constant 0.000000e+00 : f32
    %553 = vector.shape_cast %552 : vector<1x128xi1> to vector<1x128xi1>
    %554 = vector.broadcast %553 : vector<1x128xi1> to vector<16x128xi1>
    %555 = vector.shape_cast %550 : vector<16x1xf32> to vector<16x1xf32>
    %556 = vector.broadcast %555 : vector<16x1xf32> to vector<16x128xf32>
    %557 = vector.broadcast %cst_104 : f32 to vector<16x128xf32>
    %558 = arith.select %554, %556, %557 : vector<16x128xi1>, vector<16x128xf32>
    %559 = arith.addf %539, %558 : vector<16x128xf32>
    %560 = vector.extract_strided_slice %0 {offsets = [5, 0], sizes = [1, 128], strides = [1, 1]} : vector<8x128xi32> to vector<1x128xi32>
    %561 = vector.extract_strided_slice %1 {offsets = [0, 55], sizes = [16, 1], strides = [1, 1]} : vector<16x88xf32> to vector<16x1xf32>
    %c0_i32_105 = arith.constant 0 : i32
    %562 = vector.broadcast %c0_i32_105 : i32 to vector<1x128xi32>
    %563 = arith.cmpi eq, %560, %562 : vector<1x128xi32>
    %cst_106 = arith.constant 0.000000e+00 : f32
    %564 = vector.shape_cast %563 : vector<1x128xi1> to vector<1x128xi1>
    %565 = vector.broadcast %564 : vector<1x128xi1> to vector<16x128xi1>
    %566 = vector.shape_cast %561 : vector<16x1xf32> to vector<16x1xf32>
    %567 = vector.broadcast %566 : vector<16x1xf32> to vector<16x128xf32>
    %568 = vector.broadcast %cst_106 : f32 to vector<16x128xf32>
    %569 = arith.select %565, %567, %568 : vector<16x128xi1>, vector<16x128xf32>
    %570 = arith.addf %549, %569 : vector<16x128xf32>
    %571 = vector.extract_strided_slice %1 {offsets = [0, 56], sizes = [16, 1], strides = [1, 1]} : vector<16x88xf32> to vector<16x1xf32>
    %c1_i32_107 = arith.constant 1 : i32
    %572 = vector.broadcast %c1_i32_107 : i32 to vector<1x128xi32>
    %573 = arith.cmpi eq, %560, %572 : vector<1x128xi32>
    %cst_108 = arith.constant 0.000000e+00 : f32
    %574 = vector.shape_cast %573 : vector<1x128xi1> to vector<1x128xi1>
    %575 = vector.broadcast %574 : vector<1x128xi1> to vector<16x128xi1>
    %576 = vector.shape_cast %571 : vector<16x1xf32> to vector<16x1xf32>
    %577 = vector.broadcast %576 : vector<16x1xf32> to vector<16x128xf32>
    %578 = vector.broadcast %cst_108 : f32 to vector<16x128xf32>
    %579 = arith.select %575, %577, %578 : vector<16x128xi1>, vector<16x128xf32>
    %580 = arith.addf %559, %579 : vector<16x128xf32>
    %581 = vector.extract_strided_slice %1 {offsets = [0, 57], sizes = [16, 1], strides = [1, 1]} : vector<16x88xf32> to vector<16x1xf32>
    %c2_i32_109 = arith.constant 2 : i32
    %582 = vector.broadcast %c2_i32_109 : i32 to vector<1x128xi32>
    %583 = arith.cmpi eq, %560, %582 : vector<1x128xi32>
    %cst_110 = arith.constant 0.000000e+00 : f32
    %584 = vector.shape_cast %583 : vector<1x128xi1> to vector<1x128xi1>
    %585 = vector.broadcast %584 : vector<1x128xi1> to vector<16x128xi1>
    %586 = vector.shape_cast %581 : vector<16x1xf32> to vector<16x1xf32>
    %587 = vector.broadcast %586 : vector<16x1xf32> to vector<16x128xf32>
    %588 = vector.broadcast %cst_110 : f32 to vector<16x128xf32>
    %589 = arith.select %585, %587, %588 : vector<16x128xi1>, vector<16x128xf32>
    %590 = arith.addf %570, %589 : vector<16x128xf32>
    %591 = vector.extract_strided_slice %1 {offsets = [0, 58], sizes = [16, 1], strides = [1, 1]} : vector<16x88xf32> to vector<16x1xf32>
    %c3_i32_111 = arith.constant 3 : i32
    %592 = vector.broadcast %c3_i32_111 : i32 to vector<1x128xi32>
    %593 = arith.cmpi eq, %560, %592 : vector<1x128xi32>
    %cst_112 = arith.constant 0.000000e+00 : f32
    %594 = vector.shape_cast %593 : vector<1x128xi1> to vector<1x128xi1>
    %595 = vector.broadcast %594 : vector<1x128xi1> to vector<16x128xi1>
    %596 = vector.shape_cast %591 : vector<16x1xf32> to vector<16x1xf32>
    %597 = vector.broadcast %596 : vector<16x1xf32> to vector<16x128xf32>
    %598 = vector.broadcast %cst_112 : f32 to vector<16x128xf32>
    %599 = arith.select %595, %597, %598 : vector<16x128xi1>, vector<16x128xf32>
    %600 = arith.addf %580, %599 : vector<16x128xf32>
    %601 = vector.extract_strided_slice %1 {offsets = [0, 59], sizes = [16, 1], strides = [1, 1]} : vector<16x88xf32> to vector<16x1xf32>
    %c4_i32_113 = arith.constant 4 : i32
    %602 = vector.broadcast %c4_i32_113 : i32 to vector<1x128xi32>
    %603 = arith.cmpi eq, %560, %602 : vector<1x128xi32>
    %cst_114 = arith.constant 0.000000e+00 : f32
    %604 = vector.shape_cast %603 : vector<1x128xi1> to vector<1x128xi1>
    %605 = vector.broadcast %604 : vector<1x128xi1> to vector<16x128xi1>
    %606 = vector.shape_cast %601 : vector<16x1xf32> to vector<16x1xf32>
    %607 = vector.broadcast %606 : vector<16x1xf32> to vector<16x128xf32>
    %608 = vector.broadcast %cst_114 : f32 to vector<16x128xf32>
    %609 = arith.select %605, %607, %608 : vector<16x128xi1>, vector<16x128xf32>
    %610 = arith.addf %590, %609 : vector<16x128xf32>
    %611 = vector.extract_strided_slice %1 {offsets = [0, 60], sizes = [16, 1], strides = [1, 1]} : vector<16x88xf32> to vector<16x1xf32>
    %c5_i32_115 = arith.constant 5 : i32
    %612 = vector.broadcast %c5_i32_115 : i32 to vector<1x128xi32>
    %613 = arith.cmpi eq, %560, %612 : vector<1x128xi32>
    %cst_116 = arith.constant 0.000000e+00 : f32
    %614 = vector.shape_cast %613 : vector<1x128xi1> to vector<1x128xi1>
    %615 = vector.broadcast %614 : vector<1x128xi1> to vector<16x128xi1>
    %616 = vector.shape_cast %611 : vector<16x1xf32> to vector<16x1xf32>
    %617 = vector.broadcast %616 : vector<16x1xf32> to vector<16x128xf32>
    %618 = vector.broadcast %cst_116 : f32 to vector<16x128xf32>
    %619 = arith.select %615, %617, %618 : vector<16x128xi1>, vector<16x128xf32>
    %620 = arith.addf %600, %619 : vector<16x128xf32>
    %621 = vector.extract_strided_slice %1 {offsets = [0, 61], sizes = [16, 1], strides = [1, 1]} : vector<16x88xf32> to vector<16x1xf32>
    %c6_i32_117 = arith.constant 6 : i32
    %622 = vector.broadcast %c6_i32_117 : i32 to vector<1x128xi32>
    %623 = arith.cmpi eq, %560, %622 : vector<1x128xi32>
    %cst_118 = arith.constant 0.000000e+00 : f32
    %624 = vector.shape_cast %623 : vector<1x128xi1> to vector<1x128xi1>
    %625 = vector.broadcast %624 : vector<1x128xi1> to vector<16x128xi1>
    %626 = vector.shape_cast %621 : vector<16x1xf32> to vector<16x1xf32>
    %627 = vector.broadcast %626 : vector<16x1xf32> to vector<16x128xf32>
    %628 = vector.broadcast %cst_118 : f32 to vector<16x128xf32>
    %629 = arith.select %625, %627, %628 : vector<16x128xi1>, vector<16x128xf32>
    %630 = arith.addf %610, %629 : vector<16x128xf32>
    %631 = vector.extract_strided_slice %1 {offsets = [0, 62], sizes = [16, 1], strides = [1, 1]} : vector<16x88xf32> to vector<16x1xf32>
    %c7_i32_119 = arith.constant 7 : i32
    %632 = vector.broadcast %c7_i32_119 : i32 to vector<1x128xi32>
    %633 = arith.cmpi eq, %560, %632 : vector<1x128xi32>
    %cst_120 = arith.constant 0.000000e+00 : f32
    %634 = vector.shape_cast %633 : vector<1x128xi1> to vector<1x128xi1>
    %635 = vector.broadcast %634 : vector<1x128xi1> to vector<16x128xi1>
    %636 = vector.shape_cast %631 : vector<16x1xf32> to vector<16x1xf32>
    %637 = vector.broadcast %636 : vector<16x1xf32> to vector<16x128xf32>
    %638 = vector.broadcast %cst_120 : f32 to vector<16x128xf32>
    %639 = arith.select %635, %637, %638 : vector<16x128xi1>, vector<16x128xf32>
    %640 = arith.addf %620, %639 : vector<16x128xf32>
    %641 = vector.extract_strided_slice %1 {offsets = [0, 63], sizes = [16, 1], strides = [1, 1]} : vector<16x88xf32> to vector<16x1xf32>
    %c8_i32_121 = arith.constant 8 : i32
    %642 = vector.broadcast %c8_i32_121 : i32 to vector<1x128xi32>
    %643 = arith.cmpi eq, %560, %642 : vector<1x128xi32>
    %cst_122 = arith.constant 0.000000e+00 : f32
    %644 = vector.shape_cast %643 : vector<1x128xi1> to vector<1x128xi1>
    %645 = vector.broadcast %644 : vector<1x128xi1> to vector<16x128xi1>
    %646 = vector.shape_cast %641 : vector<16x1xf32> to vector<16x1xf32>
    %647 = vector.broadcast %646 : vector<16x1xf32> to vector<16x128xf32>
    %648 = vector.broadcast %cst_122 : f32 to vector<16x128xf32>
    %649 = arith.select %645, %647, %648 : vector<16x128xi1>, vector<16x128xf32>
    %650 = arith.addf %630, %649 : vector<16x128xf32>
    %651 = vector.extract_strided_slice %1 {offsets = [0, 64], sizes = [16, 1], strides = [1, 1]} : vector<16x88xf32> to vector<16x1xf32>
    %c9_i32_123 = arith.constant 9 : i32
    %652 = vector.broadcast %c9_i32_123 : i32 to vector<1x128xi32>
    %653 = arith.cmpi eq, %560, %652 : vector<1x128xi32>
    %cst_124 = arith.constant 0.000000e+00 : f32
    %654 = vector.shape_cast %653 : vector<1x128xi1> to vector<1x128xi1>
    %655 = vector.broadcast %654 : vector<1x128xi1> to vector<16x128xi1>
    %656 = vector.shape_cast %651 : vector<16x1xf32> to vector<16x1xf32>
    %657 = vector.broadcast %656 : vector<16x1xf32> to vector<16x128xf32>
    %658 = vector.broadcast %cst_124 : f32 to vector<16x128xf32>
    %659 = arith.select %655, %657, %658 : vector<16x128xi1>, vector<16x128xf32>
    %660 = arith.addf %640, %659 : vector<16x128xf32>
    %661 = vector.extract_strided_slice %1 {offsets = [0, 65], sizes = [16, 1], strides = [1, 1]} : vector<16x88xf32> to vector<16x1xf32>
    %c10_i32_125 = arith.constant 10 : i32
    %662 = vector.broadcast %c10_i32_125 : i32 to vector<1x128xi32>
    %663 = arith.cmpi eq, %560, %662 : vector<1x128xi32>
    %cst_126 = arith.constant 0.000000e+00 : f32
    %664 = vector.shape_cast %663 : vector<1x128xi1> to vector<1x128xi1>
    %665 = vector.broadcast %664 : vector<1x128xi1> to vector<16x128xi1>
    %666 = vector.shape_cast %661 : vector<16x1xf32> to vector<16x1xf32>
    %667 = vector.broadcast %666 : vector<16x1xf32> to vector<16x128xf32>
    %668 = vector.broadcast %cst_126 : f32 to vector<16x128xf32>
    %669 = arith.select %665, %667, %668 : vector<16x128xi1>, vector<16x128xf32>
    %670 = arith.addf %650, %669 : vector<16x128xf32>
    %671 = vector.extract_strided_slice %0 {offsets = [6, 0], sizes = [1, 128], strides = [1, 1]} : vector<8x128xi32> to vector<1x128xi32>
    %672 = vector.extract_strided_slice %1 {offsets = [0, 66], sizes = [16, 1], strides = [1, 1]} : vector<16x88xf32> to vector<16x1xf32>
    %c0_i32_127 = arith.constant 0 : i32
    %673 = vector.broadcast %c0_i32_127 : i32 to vector<1x128xi32>
    %674 = arith.cmpi eq, %671, %673 : vector<1x128xi32>
    %cst_128 = arith.constant 0.000000e+00 : f32
    %675 = vector.shape_cast %674 : vector<1x128xi1> to vector<1x128xi1>
    %676 = vector.broadcast %675 : vector<1x128xi1> to vector<16x128xi1>
    %677 = vector.shape_cast %672 : vector<16x1xf32> to vector<16x1xf32>
    %678 = vector.broadcast %677 : vector<16x1xf32> to vector<16x128xf32>
    %679 = vector.broadcast %cst_128 : f32 to vector<16x128xf32>
    %680 = arith.select %676, %678, %679 : vector<16x128xi1>, vector<16x128xf32>
    %681 = arith.addf %660, %680 : vector<16x128xf32>
    %682 = vector.extract_strided_slice %1 {offsets = [0, 67], sizes = [16, 1], strides = [1, 1]} : vector<16x88xf32> to vector<16x1xf32>
    %c1_i32_129 = arith.constant 1 : i32
    %683 = vector.broadcast %c1_i32_129 : i32 to vector<1x128xi32>
    %684 = arith.cmpi eq, %671, %683 : vector<1x128xi32>
    %cst_130 = arith.constant 0.000000e+00 : f32
    %685 = vector.shape_cast %684 : vector<1x128xi1> to vector<1x128xi1>
    %686 = vector.broadcast %685 : vector<1x128xi1> to vector<16x128xi1>
    %687 = vector.shape_cast %682 : vector<16x1xf32> to vector<16x1xf32>
    %688 = vector.broadcast %687 : vector<16x1xf32> to vector<16x128xf32>
    %689 = vector.broadcast %cst_130 : f32 to vector<16x128xf32>
    %690 = arith.select %686, %688, %689 : vector<16x128xi1>, vector<16x128xf32>
    %691 = arith.addf %670, %690 : vector<16x128xf32>
    %692 = vector.extract_strided_slice %1 {offsets = [0, 68], sizes = [16, 1], strides = [1, 1]} : vector<16x88xf32> to vector<16x1xf32>
    %c2_i32_131 = arith.constant 2 : i32
    %693 = vector.broadcast %c2_i32_131 : i32 to vector<1x128xi32>
    %694 = arith.cmpi eq, %671, %693 : vector<1x128xi32>
    %cst_132 = arith.constant 0.000000e+00 : f32
    %695 = vector.shape_cast %694 : vector<1x128xi1> to vector<1x128xi1>
    %696 = vector.broadcast %695 : vector<1x128xi1> to vector<16x128xi1>
    %697 = vector.shape_cast %692 : vector<16x1xf32> to vector<16x1xf32>
    %698 = vector.broadcast %697 : vector<16x1xf32> to vector<16x128xf32>
    %699 = vector.broadcast %cst_132 : f32 to vector<16x128xf32>
    %700 = arith.select %696, %698, %699 : vector<16x128xi1>, vector<16x128xf32>
    %701 = arith.addf %681, %700 : vector<16x128xf32>
    %702 = vector.extract_strided_slice %1 {offsets = [0, 69], sizes = [16, 1], strides = [1, 1]} : vector<16x88xf32> to vector<16x1xf32>
    %c3_i32_133 = arith.constant 3 : i32
    %703 = vector.broadcast %c3_i32_133 : i32 to vector<1x128xi32>
    %704 = arith.cmpi eq, %671, %703 : vector<1x128xi32>
    %cst_134 = arith.constant 0.000000e+00 : f32
    %705 = vector.shape_cast %704 : vector<1x128xi1> to vector<1x128xi1>
    %706 = vector.broadcast %705 : vector<1x128xi1> to vector<16x128xi1>
    %707 = vector.shape_cast %702 : vector<16x1xf32> to vector<16x1xf32>
    %708 = vector.broadcast %707 : vector<16x1xf32> to vector<16x128xf32>
    %709 = vector.broadcast %cst_134 : f32 to vector<16x128xf32>
    %710 = arith.select %706, %708, %709 : vector<16x128xi1>, vector<16x128xf32>
    %711 = arith.addf %691, %710 : vector<16x128xf32>
    %712 = vector.extract_strided_slice %1 {offsets = [0, 70], sizes = [16, 1], strides = [1, 1]} : vector<16x88xf32> to vector<16x1xf32>
    %c4_i32_135 = arith.constant 4 : i32
    %713 = vector.broadcast %c4_i32_135 : i32 to vector<1x128xi32>
    %714 = arith.cmpi eq, %671, %713 : vector<1x128xi32>
    %cst_136 = arith.constant 0.000000e+00 : f32
    %715 = vector.shape_cast %714 : vector<1x128xi1> to vector<1x128xi1>
    %716 = vector.broadcast %715 : vector<1x128xi1> to vector<16x128xi1>
    %717 = vector.shape_cast %712 : vector<16x1xf32> to vector<16x1xf32>
    %718 = vector.broadcast %717 : vector<16x1xf32> to vector<16x128xf32>
    %719 = vector.broadcast %cst_136 : f32 to vector<16x128xf32>
    %720 = arith.select %716, %718, %719 : vector<16x128xi1>, vector<16x128xf32>
    %721 = arith.addf %701, %720 : vector<16x128xf32>
    %722 = vector.extract_strided_slice %1 {offsets = [0, 71], sizes = [16, 1], strides = [1, 1]} : vector<16x88xf32> to vector<16x1xf32>
    %c5_i32_137 = arith.constant 5 : i32
    %723 = vector.broadcast %c5_i32_137 : i32 to vector<1x128xi32>
    %724 = arith.cmpi eq, %671, %723 : vector<1x128xi32>
    %cst_138 = arith.constant 0.000000e+00 : f32
    %725 = vector.shape_cast %724 : vector<1x128xi1> to vector<1x128xi1>
    %726 = vector.broadcast %725 : vector<1x128xi1> to vector<16x128xi1>
    %727 = vector.shape_cast %722 : vector<16x1xf32> to vector<16x1xf32>
    %728 = vector.broadcast %727 : vector<16x1xf32> to vector<16x128xf32>
    %729 = vector.broadcast %cst_138 : f32 to vector<16x128xf32>
    %730 = arith.select %726, %728, %729 : vector<16x128xi1>, vector<16x128xf32>
    %731 = arith.addf %711, %730 : vector<16x128xf32>
    %732 = vector.extract_strided_slice %1 {offsets = [0, 72], sizes = [16, 1], strides = [1, 1]} : vector<16x88xf32> to vector<16x1xf32>
    %c6_i32_139 = arith.constant 6 : i32
    %733 = vector.broadcast %c6_i32_139 : i32 to vector<1x128xi32>
    %734 = arith.cmpi eq, %671, %733 : vector<1x128xi32>
    %cst_140 = arith.constant 0.000000e+00 : f32
    %735 = vector.shape_cast %734 : vector<1x128xi1> to vector<1x128xi1>
    %736 = vector.broadcast %735 : vector<1x128xi1> to vector<16x128xi1>
    %737 = vector.shape_cast %732 : vector<16x1xf32> to vector<16x1xf32>
    %738 = vector.broadcast %737 : vector<16x1xf32> to vector<16x128xf32>
    %739 = vector.broadcast %cst_140 : f32 to vector<16x128xf32>
    %740 = arith.select %736, %738, %739 : vector<16x128xi1>, vector<16x128xf32>
    %741 = arith.addf %721, %740 : vector<16x128xf32>
    %742 = vector.extract_strided_slice %1 {offsets = [0, 73], sizes = [16, 1], strides = [1, 1]} : vector<16x88xf32> to vector<16x1xf32>
    %c7_i32_141 = arith.constant 7 : i32
    %743 = vector.broadcast %c7_i32_141 : i32 to vector<1x128xi32>
    %744 = arith.cmpi eq, %671, %743 : vector<1x128xi32>
    %cst_142 = arith.constant 0.000000e+00 : f32
    %745 = vector.shape_cast %744 : vector<1x128xi1> to vector<1x128xi1>
    %746 = vector.broadcast %745 : vector<1x128xi1> to vector<16x128xi1>
    %747 = vector.shape_cast %742 : vector<16x1xf32> to vector<16x1xf32>
    %748 = vector.broadcast %747 : vector<16x1xf32> to vector<16x128xf32>
    %749 = vector.broadcast %cst_142 : f32 to vector<16x128xf32>
    %750 = arith.select %746, %748, %749 : vector<16x128xi1>, vector<16x128xf32>
    %751 = arith.addf %731, %750 : vector<16x128xf32>
    %752 = vector.extract_strided_slice %1 {offsets = [0, 74], sizes = [16, 1], strides = [1, 1]} : vector<16x88xf32> to vector<16x1xf32>
    %c8_i32_143 = arith.constant 8 : i32
    %753 = vector.broadcast %c8_i32_143 : i32 to vector<1x128xi32>
    %754 = arith.cmpi eq, %671, %753 : vector<1x128xi32>
    %cst_144 = arith.constant 0.000000e+00 : f32
    %755 = vector.shape_cast %754 : vector<1x128xi1> to vector<1x128xi1>
    %756 = vector.broadcast %755 : vector<1x128xi1> to vector<16x128xi1>
    %757 = vector.shape_cast %752 : vector<16x1xf32> to vector<16x1xf32>
    %758 = vector.broadcast %757 : vector<16x1xf32> to vector<16x128xf32>
    %759 = vector.broadcast %cst_144 : f32 to vector<16x128xf32>
    %760 = arith.select %756, %758, %759 : vector<16x128xi1>, vector<16x128xf32>
    %761 = arith.addf %741, %760 : vector<16x128xf32>
    %762 = vector.extract_strided_slice %1 {offsets = [0, 75], sizes = [16, 1], strides = [1, 1]} : vector<16x88xf32> to vector<16x1xf32>
    %c9_i32_145 = arith.constant 9 : i32
    %763 = vector.broadcast %c9_i32_145 : i32 to vector<1x128xi32>
    %764 = arith.cmpi eq, %671, %763 : vector<1x128xi32>
    %cst_146 = arith.constant 0.000000e+00 : f32
    %765 = vector.shape_cast %764 : vector<1x128xi1> to vector<1x128xi1>
    %766 = vector.broadcast %765 : vector<1x128xi1> to vector<16x128xi1>
    %767 = vector.shape_cast %762 : vector<16x1xf32> to vector<16x1xf32>
    %768 = vector.broadcast %767 : vector<16x1xf32> to vector<16x128xf32>
    %769 = vector.broadcast %cst_146 : f32 to vector<16x128xf32>
    %770 = arith.select %766, %768, %769 : vector<16x128xi1>, vector<16x128xf32>
    %771 = arith.addf %751, %770 : vector<16x128xf32>
    %772 = vector.extract_strided_slice %1 {offsets = [0, 76], sizes = [16, 1], strides = [1, 1]} : vector<16x88xf32> to vector<16x1xf32>
    %c10_i32_147 = arith.constant 10 : i32
    %773 = vector.broadcast %c10_i32_147 : i32 to vector<1x128xi32>
    %774 = arith.cmpi eq, %671, %773 : vector<1x128xi32>
    %cst_148 = arith.constant 0.000000e+00 : f32
    %775 = vector.shape_cast %774 : vector<1x128xi1> to vector<1x128xi1>
    %776 = vector.broadcast %775 : vector<1x128xi1> to vector<16x128xi1>
    %777 = vector.shape_cast %772 : vector<16x1xf32> to vector<16x1xf32>
    %778 = vector.broadcast %777 : vector<16x1xf32> to vector<16x128xf32>
    %779 = vector.broadcast %cst_148 : f32 to vector<16x128xf32>
    %780 = arith.select %776, %778, %779 : vector<16x128xi1>, vector<16x128xf32>
    %781 = arith.addf %761, %780 : vector<16x128xf32>
    %782 = vector.extract_strided_slice %0 {offsets = [7, 0], sizes = [1, 128], strides = [1, 1]} : vector<8x128xi32> to vector<1x128xi32>
    %783 = vector.extract_strided_slice %1 {offsets = [0, 77], sizes = [16, 1], strides = [1, 1]} : vector<16x88xf32> to vector<16x1xf32>
    %c0_i32_149 = arith.constant 0 : i32
    %784 = vector.broadcast %c0_i32_149 : i32 to vector<1x128xi32>
    %785 = arith.cmpi eq, %782, %784 : vector<1x128xi32>
    %cst_150 = arith.constant 0.000000e+00 : f32
    %786 = vector.shape_cast %785 : vector<1x128xi1> to vector<1x128xi1>
    %787 = vector.broadcast %786 : vector<1x128xi1> to vector<16x128xi1>
    %788 = vector.shape_cast %783 : vector<16x1xf32> to vector<16x1xf32>
    %789 = vector.broadcast %788 : vector<16x1xf32> to vector<16x128xf32>
    %790 = vector.broadcast %cst_150 : f32 to vector<16x128xf32>
    %791 = arith.select %787, %789, %790 : vector<16x128xi1>, vector<16x128xf32>
    %792 = arith.addf %771, %791 : vector<16x128xf32>
    %793 = vector.extract_strided_slice %1 {offsets = [0, 78], sizes = [16, 1], strides = [1, 1]} : vector<16x88xf32> to vector<16x1xf32>
    %c1_i32_151 = arith.constant 1 : i32
    %794 = vector.broadcast %c1_i32_151 : i32 to vector<1x128xi32>
    %795 = arith.cmpi eq, %782, %794 : vector<1x128xi32>
    %cst_152 = arith.constant 0.000000e+00 : f32
    %796 = vector.shape_cast %795 : vector<1x128xi1> to vector<1x128xi1>
    %797 = vector.broadcast %796 : vector<1x128xi1> to vector<16x128xi1>
    %798 = vector.shape_cast %793 : vector<16x1xf32> to vector<16x1xf32>
    %799 = vector.broadcast %798 : vector<16x1xf32> to vector<16x128xf32>
    %800 = vector.broadcast %cst_152 : f32 to vector<16x128xf32>
    %801 = arith.select %797, %799, %800 : vector<16x128xi1>, vector<16x128xf32>
    %802 = arith.addf %781, %801 : vector<16x128xf32>
    %803 = vector.extract_strided_slice %1 {offsets = [0, 79], sizes = [16, 1], strides = [1, 1]} : vector<16x88xf32> to vector<16x1xf32>
    %c2_i32_153 = arith.constant 2 : i32
    %804 = vector.broadcast %c2_i32_153 : i32 to vector<1x128xi32>
    %805 = arith.cmpi eq, %782, %804 : vector<1x128xi32>
    %cst_154 = arith.constant 0.000000e+00 : f32
    %806 = vector.shape_cast %805 : vector<1x128xi1> to vector<1x128xi1>
    %807 = vector.broadcast %806 : vector<1x128xi1> to vector<16x128xi1>
    %808 = vector.shape_cast %803 : vector<16x1xf32> to vector<16x1xf32>
    %809 = vector.broadcast %808 : vector<16x1xf32> to vector<16x128xf32>
    %810 = vector.broadcast %cst_154 : f32 to vector<16x128xf32>
    %811 = arith.select %807, %809, %810 : vector<16x128xi1>, vector<16x128xf32>
    %812 = arith.addf %792, %811 : vector<16x128xf32>
    %813 = vector.extract_strided_slice %1 {offsets = [0, 80], sizes = [16, 1], strides = [1, 1]} : vector<16x88xf32> to vector<16x1xf32>
    %c3_i32_155 = arith.constant 3 : i32
    %814 = vector.broadcast %c3_i32_155 : i32 to vector<1x128xi32>
    %815 = arith.cmpi eq, %782, %814 : vector<1x128xi32>
    %cst_156 = arith.constant 0.000000e+00 : f32
    %816 = vector.shape_cast %815 : vector<1x128xi1> to vector<1x128xi1>
    %817 = vector.broadcast %816 : vector<1x128xi1> to vector<16x128xi1>
    %818 = vector.shape_cast %813 : vector<16x1xf32> to vector<16x1xf32>
    %819 = vector.broadcast %818 : vector<16x1xf32> to vector<16x128xf32>
    %820 = vector.broadcast %cst_156 : f32 to vector<16x128xf32>
    %821 = arith.select %817, %819, %820 : vector<16x128xi1>, vector<16x128xf32>
    %822 = arith.addf %802, %821 : vector<16x128xf32>
    %823 = vector.extract_strided_slice %1 {offsets = [0, 81], sizes = [16, 1], strides = [1, 1]} : vector<16x88xf32> to vector<16x1xf32>
    %c4_i32_157 = arith.constant 4 : i32
    %824 = vector.broadcast %c4_i32_157 : i32 to vector<1x128xi32>
    %825 = arith.cmpi eq, %782, %824 : vector<1x128xi32>
    %cst_158 = arith.constant 0.000000e+00 : f32
    %826 = vector.shape_cast %825 : vector<1x128xi1> to vector<1x128xi1>
    %827 = vector.broadcast %826 : vector<1x128xi1> to vector<16x128xi1>
    %828 = vector.shape_cast %823 : vector<16x1xf32> to vector<16x1xf32>
    %829 = vector.broadcast %828 : vector<16x1xf32> to vector<16x128xf32>
    %830 = vector.broadcast %cst_158 : f32 to vector<16x128xf32>
    %831 = arith.select %827, %829, %830 : vector<16x128xi1>, vector<16x128xf32>
    %832 = arith.addf %812, %831 : vector<16x128xf32>
    %833 = vector.extract_strided_slice %1 {offsets = [0, 82], sizes = [16, 1], strides = [1, 1]} : vector<16x88xf32> to vector<16x1xf32>
    %c5_i32_159 = arith.constant 5 : i32
    %834 = vector.broadcast %c5_i32_159 : i32 to vector<1x128xi32>
    %835 = arith.cmpi eq, %782, %834 : vector<1x128xi32>
    %cst_160 = arith.constant 0.000000e+00 : f32
    %836 = vector.shape_cast %835 : vector<1x128xi1> to vector<1x128xi1>
    %837 = vector.broadcast %836 : vector<1x128xi1> to vector<16x128xi1>
    %838 = vector.shape_cast %833 : vector<16x1xf32> to vector<16x1xf32>
    %839 = vector.broadcast %838 : vector<16x1xf32> to vector<16x128xf32>
    %840 = vector.broadcast %cst_160 : f32 to vector<16x128xf32>
    %841 = arith.select %837, %839, %840 : vector<16x128xi1>, vector<16x128xf32>
    %842 = arith.addf %822, %841 : vector<16x128xf32>
    %843 = vector.extract_strided_slice %1 {offsets = [0, 83], sizes = [16, 1], strides = [1, 1]} : vector<16x88xf32> to vector<16x1xf32>
    %c6_i32_161 = arith.constant 6 : i32
    %844 = vector.broadcast %c6_i32_161 : i32 to vector<1x128xi32>
    %845 = arith.cmpi eq, %782, %844 : vector<1x128xi32>
    %cst_162 = arith.constant 0.000000e+00 : f32
    %846 = vector.shape_cast %845 : vector<1x128xi1> to vector<1x128xi1>
    %847 = vector.broadcast %846 : vector<1x128xi1> to vector<16x128xi1>
    %848 = vector.shape_cast %843 : vector<16x1xf32> to vector<16x1xf32>
    %849 = vector.broadcast %848 : vector<16x1xf32> to vector<16x128xf32>
    %850 = vector.broadcast %cst_162 : f32 to vector<16x128xf32>
    %851 = arith.select %847, %849, %850 : vector<16x128xi1>, vector<16x128xf32>
    %852 = arith.addf %832, %851 : vector<16x128xf32>
    %853 = vector.extract_strided_slice %1 {offsets = [0, 84], sizes = [16, 1], strides = [1, 1]} : vector<16x88xf32> to vector<16x1xf32>
    %c7_i32_163 = arith.constant 7 : i32
    %854 = vector.broadcast %c7_i32_163 : i32 to vector<1x128xi32>
    %855 = arith.cmpi eq, %782, %854 : vector<1x128xi32>
    %cst_164 = arith.constant 0.000000e+00 : f32
    %856 = vector.shape_cast %855 : vector<1x128xi1> to vector<1x128xi1>
    %857 = vector.broadcast %856 : vector<1x128xi1> to vector<16x128xi1>
    %858 = vector.shape_cast %853 : vector<16x1xf32> to vector<16x1xf32>
    %859 = vector.broadcast %858 : vector<16x1xf32> to vector<16x128xf32>
    %860 = vector.broadcast %cst_164 : f32 to vector<16x128xf32>
    %861 = arith.select %857, %859, %860 : vector<16x128xi1>, vector<16x128xf32>
    %862 = arith.addf %842, %861 : vector<16x128xf32>
    %863 = vector.extract_strided_slice %1 {offsets = [0, 85], sizes = [16, 1], strides = [1, 1]} : vector<16x88xf32> to vector<16x1xf32>
    %c8_i32_165 = arith.constant 8 : i32
    %864 = vector.broadcast %c8_i32_165 : i32 to vector<1x128xi32>
    %865 = arith.cmpi eq, %782, %864 : vector<1x128xi32>
    %cst_166 = arith.constant 0.000000e+00 : f32
    %866 = vector.shape_cast %865 : vector<1x128xi1> to vector<1x128xi1>
    %867 = vector.broadcast %866 : vector<1x128xi1> to vector<16x128xi1>
    %868 = vector.shape_cast %863 : vector<16x1xf32> to vector<16x1xf32>
    %869 = vector.broadcast %868 : vector<16x1xf32> to vector<16x128xf32>
    %870 = vector.broadcast %cst_166 : f32 to vector<16x128xf32>
    %871 = arith.select %867, %869, %870 : vector<16x128xi1>, vector<16x128xf32>
    %872 = arith.addf %852, %871 : vector<16x128xf32>
    %873 = vector.extract_strided_slice %1 {offsets = [0, 86], sizes = [16, 1], strides = [1, 1]} : vector<16x88xf32> to vector<16x1xf32>
    %c9_i32_167 = arith.constant 9 : i32
    %874 = vector.broadcast %c9_i32_167 : i32 to vector<1x128xi32>
    %875 = arith.cmpi eq, %782, %874 : vector<1x128xi32>
    %cst_168 = arith.constant 0.000000e+00 : f32
    %876 = vector.shape_cast %875 : vector<1x128xi1> to vector<1x128xi1>
    %877 = vector.broadcast %876 : vector<1x128xi1> to vector<16x128xi1>
    %878 = vector.shape_cast %873 : vector<16x1xf32> to vector<16x1xf32>
    %879 = vector.broadcast %878 : vector<16x1xf32> to vector<16x128xf32>
    %880 = vector.broadcast %cst_168 : f32 to vector<16x128xf32>
    %881 = arith.select %877, %879, %880 : vector<16x128xi1>, vector<16x128xf32>
    %882 = arith.addf %862, %881 : vector<16x128xf32>
    %883 = vector.extract_strided_slice %1 {offsets = [0, 87], sizes = [16, 1], strides = [1, 1]} : vector<16x88xf32> to vector<16x1xf32>
    %c10_i32_169 = arith.constant 10 : i32
    %884 = vector.broadcast %c10_i32_169 : i32 to vector<1x128xi32>
    %885 = arith.cmpi eq, %782, %884 : vector<1x128xi32>
    %cst_170 = arith.constant 0.000000e+00 : f32
    %886 = vector.shape_cast %885 : vector<1x128xi1> to vector<1x128xi1>
    %887 = vector.broadcast %886 : vector<1x128xi1> to vector<16x128xi1>
    %888 = vector.shape_cast %883 : vector<16x1xf32> to vector<16x1xf32>
    %889 = vector.broadcast %888 : vector<16x1xf32> to vector<16x128xf32>
    %890 = vector.broadcast %cst_170 : f32 to vector<16x128xf32>
    %891 = arith.select %887, %889, %890 : vector<16x128xi1>, vector<16x128xf32>
    %892 = arith.addf %872, %891 : vector<16x128xf32>
    %893 = arith.addf %882, %892 : vector<16x128xf32>
    %cst_171 = arith.constant 0.000000e+00 : f32
    %894 = vector.broadcast %cst_171 : f32 to vector<16x128xf32>
    %895 = arith.maximumf %893, %894 : vector<16x128xf32>
    %896 = vector.broadcast %2 : vector<16x1xf32> to vector<16x128xf32>
    %897 = arith.mulf %895, %896 : vector<16x128xf32>
    %cst_172 = arith.constant dense<0.000000e+00> : vector<128xf32>
    %898 = vector.multi_reduction <add>, %897, %cst_172 [0] : vector<16x128xf32> to vector<128xf32>
    %899 = vector.shape_cast %898 : vector<128xf32> to vector<1x128xf32>
    %900 = math.exp %899 : vector<1x128xf32>
    %c0_173 = arith.constant 0 : index
    %c0_174 = arith.constant 0 : index
    %901 = vector.load %arg4[%c0_173, %c0_174] : memref<1x128xf32, #tpu.memory_space<vmem>>, vector<1x128xf32>
    tpu.vector_store %arg4[%c0_173, %c0_174], %900 {strides = array<i32>} : memref<1x128xf32, #tpu.memory_space<vmem>>, vector<1x128xf32>,
    return
  }
  func.func @transform_0(%arg0: i32) -> (i32, i32) {
    %c0_i32 = arith.constant 0 : i32
    %c0_i32_0 = arith.constant 0 : i32
    return %c0_i32, %arg0 : i32, i32
  }
  func.func @transform_1(%arg0: i32) -> (i32, i32) {
    %c0_i32 = arith.constant 0 : i32
    %c0_i32_0 = arith.constant 0 : i32
    %c0_i32_1 = arith.constant 0 : i32
    return %c0_i32, %c0_i32_0 : i32, i32
  }
  func.func @transform_2(%arg0: i32) -> (i32, i32) {
    %c0_i32 = arith.constant 0 : i32
    %c0_i32_0 = arith.constant 0 : i32
    %c0_i32_1 = arith.constant 0 : i32
    return %c0_i32, %c0_i32_0 : i32, i32
  }
  func.func @transform_3(%arg0: i32) -> (i32, i32) {
    %c0_i32 = arith.constant 0 : i32
    %c0_i32_0 = arith.constant 0 : i32
    return %c0_i32, %arg0 : i32, i32
  }
}

</mosaic_0001>

<bundles_post_ra>
// kernel: coxph_forward.1
= control target key start
LH: loop header
LB: loop body
LE: loop exit
PB: predicated region body
PF: predicated region fallthrough
CT: control target
= control target key end

     0   :  { %v1809_v0 = vmov 1   ;;  %v3357_v1 = vmov 0   ;;  %v1811_v4 = vmov 2   ;;  %v1812_v5 = vmov 3   ;;  %s3340_s1 = inlined_call_operand.vmem [shape: f32[16,88], index: 1, kind: input, shape index: {}]   ;;  %s3341_s0 = inlined_call_operand.vmem [shape: s32[8,128], index: 0, kind: input, shape index: {}]   ;;  %s3342_s2 = inlined_call_operand.vmem [shape: f32[16,1], index: 2, kind: input, shape index: {}]   ;;  %s3343_s3 = inlined_call_operand.vmem [shape: f32[1,128], index: 3, kind: output, shape index: {}]  }
   0x1   :  { %1658 = vset.pattern.permute.xlu1 %v1809_v0  ;;  %1657 = vset.pattern.permute.xlu0 %v3357_v1  ;;  %v1921_v2 = vld [vmem:[%s3340_s1] sm:$0xff]  ;;  %v1928_v3 = vld [vmem:[%s3340_s1 + $0x8] sm:$0xff]  ;;  %v1813_v6 = vmov 4   ;;  %v1814_v7 = vmov 5   ;;  %v1815_v8 = vmov 6   ;;  %v1816_v9 = vmov 8  }
   0x2   :  { %48 = vperm.xlu1 %1658, %v1921_v2   ;;  %28 = vperm.xlu0 %1657, %v1921_v2   ;;  %v1817_v10 = vmov 9   ;;  %v1818_v11 = vmov 7   ;;  %v1819_v12 = vmov 11   ;;  %v1820_v13 = vmov 12  }
   0x3   :  { %v1821_v14 = vmov 14   ;;  %v1822_v15 = vmov 15   ;;  %v1823_v16 = vmov 10   ;;  %v1824_v17 = vmov 17  }
   0x4   :  { %v1825_v18 = vmov 18   ;;  %v1826_v19 = vmov 20   ;;  %v1827_v20 = vmov 21   ;;  %v1828_v21 = vmov 13  }
   0x5   :  { %v1829_v22 = vmov 23   ;;  %v1830_v23 = vmov 24   ;;  %v1831_v24 = vmov 26   ;;  %v1832_v25 = vmov 27  }
   0x6   :  { %52 = vperm.xlu1 %1658, %v1928_v3   ;;  %33 = vperm.xlu0 %1657, %v1928_v3   ;;  %v1833_v26 = vmov 16   ;;  %v1834_v27 = vmov 29   ;;  %v1835_v28 = vmov 30   ;;  %v1836_v29 = vmov 32  }
   0x7   :  { %v1837_v30 = vmov 19   ;;  %v1838_v31 = vmov 33   ;;  %v1839_v32 = vmov 35   ;;  %v1840_v34 = vmov 36  }
   0x8   :  { %v3359_v36 = vmov 38   ;;  %v1842_v37 = vmov 22   ;;  %v3356_v39 = vmov 39   ;;  %v3355_v41 = vmov 41  }
   0x9   :  { %v3354_v43 = vmov 42   ;;  %v3353_v45 = vmov 44   ;;  %v1847_v46 = vmov 25   ;;  %v3352_v48 = vmov 45  }
   0xa   :  { %1660 = vset.pattern.permute.xlu1 %v1811_v4  ;;  %1659 = vset.pattern.permute.xlu0 %v1811_v4  ;;  %v3351_v50 = vmov 47   ;;  %v3350_v52 = vmov 48   ;;  %v1851_v54 = vmov 28   ;;  %v3349_v57 = vmov 50  }
   0xb   :  { %71 = vperm.xlu1 %1660, %v1928_v3   ;;  %67 = vperm.xlu0 %1659, %v1921_v2   ;;  %v3347_v61 = vmov 51   ;;  %v1854_v4 = vmov 31  }
   0xf   :  { %1661 = vset.pattern.permute.xlu1 %v1812_v5  ;;  %1662 = vset.pattern.permute.xlu0 %v1812_v5 }
  0x10   :  { %86 = vperm.xlu1 %1661, %v1921_v2   ;;  %90 = vperm.xlu0 %1662, %v1928_v3  }
  0x14   :  { %1663 = vset.pattern.permute.xlu1 %v1813_v6  ;;  %1664 = vset.pattern.permute.xlu0 %v1814_v7  ;;  %v3346_v6 = vmov 53  }
  0x15   :  { %105 = vperm.xlu1 %1663, %v1921_v2   ;;  %124 = vperm.xlu0 %1664, %v1921_v2  }
  0x19   :  { %109 = vperm.xlu1 %1663, %v1928_v3   ;;  %1667 = vset.pattern.permute.xlu0 %v1815_v8 }
  0x1a   :  { %147 = vperm.xlu0 %1667, %v1928_v3  }
  0x1d   :  { %1665 = vset.pattern.permute.xlu1 %v1814_v7 }
  0x1e   :  { %128 = vperm.xlu1 %1665, %v1928_v3   ;;  %1669 = vset.pattern.permute.xlu0 %v1816_v9 }
  0x1f   :  { %181 = vperm.xlu0 %1669, %v1921_v2  }
  0x22   :  { %1666 = vset.pattern.permute.xlu1 %v1815_v8 }
  0x23   :  { %143 = vperm.xlu1 %1666, %v1921_v2   ;;  %1672 = vset.pattern.permute.xlu0 %v1817_v10 }
  0x24   :  { %204 = vperm.xlu0 %1672, %v1928_v3  }
  0x27   :  { %1668 = vset.pattern.permute.xlu1 %v1818_v11  ;;  %v3345_v11 = vmov 54  }
  0x28   :  { %162 = vperm.xlu1 %1668, %v1921_v2   ;;  %1674 = vset.pattern.permute.xlu0 %v1819_v12 }
  0x29   :  { %236 = vperm.xlu0 %1674, %v1921_v2  }
  0x2c   :  { %166 = vperm.xlu1 %1668, %v1928_v3  }
  0x2d   :  { %1677 = vset.pattern.permute.xlu0 %v1820_v13 }
  0x2e   :  { %257 = vperm.xlu0 %1677, %v1928_v3  }
  0x30   :  { %1670 = vset.pattern.permute.xlu1 %v1816_v9 }
  0x31   :  { %185 = vperm.xlu1 %1670, %v1928_v3  }
  0x32   :  { %1679 = vset.pattern.permute.xlu0 %v1821_v14 }
  0x33   :  { %287 = vperm.xlu0 %1679, %v1921_v2  }
  0x35   :  { %1671 = vset.pattern.permute.xlu1 %v1817_v10 }
  0x36   :  { %200 = vperm.xlu1 %1671, %v1921_v2  }
  0x37   :  { %1682 = vset.pattern.permute.xlu0 %v1822_v15 }
  0x38   :  { %308 = vperm.xlu0 %1682, %v1928_v3  }
  0x3a   :  { %1673 = vset.pattern.permute.xlu1 %v1823_v16 }
  0x3b   :  { %219 = vperm.xlu1 %1673, %v1921_v2  }
  0x3c   :  { %1684 = vset.pattern.permute.xlu0 %v1824_v17 }
  0x3d   :  { %338 = vperm.xlu0 %1684, %v1921_v2  }
  0x3f   :  { %223 = vperm.xlu1 %1673, %v1928_v3  }
  0x41   :  { %1687 = vset.pattern.permute.xlu0 %v1825_v18 }
  0x42   :  { %359 = vperm.xlu0 %1687, %v1928_v3  }
  0x43   :  { %1675 = vset.pattern.permute.xlu1 %v1819_v12  ;;  %v21_v12 = vlaneseq }
  0x44   :  { %240 = vperm.xlu1 %1675, %v1928_v3  }
  0x45   :  { %v2095_v16 = vshrl.u32 %v21_v12, 7 }
  0x46   :  { %1689 = vset.pattern.permute.xlu0 %v1826_v19 }
  0x47   :  { %389 = vperm.xlu0 %1689, %v1921_v2  }
  0x48   :  { %1676 = vset.pattern.permute.xlu1 %v1820_v13 }
  0x49   :  { %253 = vperm.xlu1 %1676, %v1921_v2  }
  0x4b   :  { %1692 = vset.pattern.permute.xlu0 %v1827_v20 }
  0x4c   :  { %410 = vperm.xlu0 %1692, %v1928_v3  }
  0x4d   :  { %1678 = vset.pattern.permute.xlu1 %v1828_v21  ;;  %v3344_v21 = vmov 56  }
  0x4e   :  { %270 = vperm.xlu1 %1678, %v1921_v2  }
  0x50   :  { %1694 = vset.pattern.permute.xlu0 %v1829_v22 }
  0x51   :  { %440 = vperm.xlu0 %1694, %v1921_v2  }
  0x52   :  { %274 = vperm.xlu1 %1678, %v1928_v3  }
  0x55   :  { %1697 = vset.pattern.permute.xlu0 %v1830_v23 }
  0x56   :  { %1680 = vset.pattern.permute.xlu1 %v1821_v14  ;;  %461 = vperm.xlu0 %1697, %v1928_v3  }
  0x57   :  { %291 = vperm.xlu1 %1680, %v1928_v3  }
  0x5a   :  { %1699 = vset.pattern.permute.xlu0 %v1831_v24 }
  0x5b   :  { %1681 = vset.pattern.permute.xlu1 %v1822_v15  ;;  %491 = vperm.xlu0 %1699, %v1921_v2   ;;  %v2093_v15 = vld [vmem:[%s3341_s0] sm:$0xff] }
  0x5c   :  { %304 = vperm.xlu1 %1681, %v1921_v2   ;;  %vm78_vm0 = vcmp.eq.s32.totalorder %v2093_v15, 3  ;;  %vm40_vm1 = vcmp.eq.s32.totalorder %v2093_v15, 1  ;;  %vm116_vm2 = vcmp.eq.s32.totalorder %v2093_v15, 5  ;;  %vm154_vm3 = vcmp.eq.s32.totalorder %v2093_v15, 7 }
  0x5d   :  { %vm192_vm4 = vcmp.eq.s32.totalorder %v2093_v15, 9  ;;  %vm19_vm5 = vcmp.eq.s32.totalorder %v2093_v15, 0  ;;  %vm59_vm7 = vcmp.eq.s32.totalorder %v2093_v15, 2  ;;  %vm97_vm10 = vcmp.eq.s32.totalorder %v2093_v15, 4 }
  0x5e   :  { %vm135_vm11 = vcmp.eq.s32.totalorder %v2093_v15, 6  ;;  %vm173_vm13 = vcmp.eq.s32.totalorder %v2093_v15, 8  ;;  %vm211_vm14 = vcmp.eq.s32.totalorder %v2093_v15, 10 }
  0x5f   :  { %1702 = vset.pattern.permute.xlu0 %v1832_v25  ;;  %v2222_v15 = vsel %vm173_vm13, 1, %v3357_v1 }
  0x60   :  { %1683 = vset.pattern.permute.xlu1 %v1833_v26  ;;  %512 = vperm.xlu0 %1702, %v1928_v3   ;;  %v2122_v26 = vsel %vm40_vm1, 1, %v3357_v1 }
  0x61   :  { %321 = vperm.xlu1 %1683, %v1921_v2  }
  0x64   :  { %1704 = vset.pattern.permute.xlu0 %v1834_v27 }
  0x65   :  { %325 = vperm.xlu1 %1683, %v1928_v3   ;;  %542 = vperm.xlu0 %1704, %v1921_v2  }
  0x69   :  { %1685 = vset.pattern.permute.xlu1 %v1824_v17  ;;  %1707 = vset.pattern.permute.xlu0 %v1835_v28 }
  0x6a   :  { %342 = vperm.xlu1 %1685, %v1928_v3   ;;  %563 = vperm.xlu0 %1707, %v1928_v3  }
  0x6e   :  { %1686 = vset.pattern.permute.xlu1 %v1825_v18  ;;  %1709 = vset.pattern.permute.xlu0 %v1836_v29  ;;  %v1857_v18 = vmov 34  }
  0x6f   :  { %355 = vperm.xlu1 %1686, %v1921_v2   ;;  %593 = vperm.xlu0 %1709, %v1921_v2  }
  0x73   :  { %1688 = vset.pattern.permute.xlu1 %v1837_v30  ;;  %1712 = vset.pattern.permute.xlu0 %v1838_v31 }
  0x74   :  { %372 = vperm.xlu1 %1688, %v1921_v2   ;;  %614 = vperm.xlu0 %1712, %v1928_v3  }
  0x78   :  { %376 = vperm.xlu1 %1688, %v1928_v3   ;;  %1714 = vset.pattern.permute.xlu0 %v1839_v32 }
  0x79   :  { %644 = vperm.xlu0 %1714, %v1921_v2  }
  0x7c   :  { %1690 = vset.pattern.permute.xlu1 %v1826_v19 }
  0x7d   :  { %393 = vperm.xlu1 %1690, %v1928_v3   ;;  %v1989_v33 = vpop.permute.xlu1 %48  ;;  %1717 = vset.pattern.permute.xlu0 %v1840_v34  ;;  %v2042_v56 = vpop.permute.xlu0 %28 }
  0x7e   :  { %665 = vperm.xlu0 %1717, %v1928_v3  }
  0x81   :  { %1691 = vset.pattern.permute.xlu1 %v1827_v20  ;;  %v1993_v35 = vpop.permute.xlu1 %52  ;;  %v2050_v59 = vpop.permute.xlu0 %33  ;;  %v2104_v20 = vsel %vm78_vm0, 1, %v3357_v1 }
  0x82   :  { %406 = vperm.xlu1 %1691, %v1921_v2   ;;  %1719 = vset.pattern.permute.xlu0 %v3359_v36 }
  0x83   :  { %695 = vperm.xlu0 %1719, %v1921_v2  }
  0x86   :  { %1693 = vset.pattern.permute.xlu1 %v1842_v37  ;;  %v1998_v38 = vpop.permute.xlu1 %71  ;;  %v2058_v62 = vpop.permute.xlu0 %67 }
  0x87   :  { %423 = vperm.xlu1 %1693, %v1921_v2   ;;  %1722 = vset.pattern.permute.xlu0 %v3356_v39 }
  0x88   :  { %716 = vperm.xlu0 %1722, %v1928_v3  }
  0x8b   :  { %427 = vperm.xlu1 %1693, %v1928_v3   ;;  %v2004_v40 = vpop.permute.xlu1 %86  ;;  %v2064_v0 = vpop.permute.xlu0 %90 }
  0x8c   :  { %1724 = vset.pattern.permute.xlu0 %v3355_v41 }
  0x8d   :  { %746 = vperm.xlu0 %1724, %v1921_v2  }
  0x8f   :  { %1695 = vset.pattern.permute.xlu1 %v1829_v22  ;;  %v2108_v22 = vsub.s32 0, %v2095_v16 }
  0x90   :  { %444 = vperm.xlu1 %1695, %v1928_v3   ;;  %v2010_v42 = vpop.permute.xlu1 %105  ;;  %v2074_v8 = vpop.permute.xlu0 %124 }
  0x91   :  { %1727 = vset.pattern.permute.xlu0 %v3354_v43  ;;  %v45_v30 = vrot.slane %v2122_v26, %v2108_v22  ;;  %v1860_v43 = vmov 37  }
  0x92   :  { %767 = vperm.xlu0 %1727, %v1928_v3  }
  0x93   :  { %vm2162_vm8 = vcmp.eq.s32.totalorder %v45_v30, 1  ;;  %v2181_v30 = vsel %vm59_vm7, 1, %v3357_v1 }
  0x94   :  { %1696 = vset.pattern.permute.xlu1 %v1830_v23  ;;  %v2015_v44 = vpop.permute.xlu1 %109 }
  0x95   :  { %457 = vperm.xlu1 %1696, %v1921_v2   ;;  %v2077_v9 = vpop.permute.xlu0 %147 }
  0x96   :  { %1729 = vset.pattern.permute.xlu0 %v3353_v45  ;;  %v2216_v45 = vsel %vm97_vm10, 1, %v3357_v1 }
  0x97   :  { %797 = vperm.xlu0 %1729, %v1921_v2   ;;  %3377 = vst [vmem:[#allocation4_spill] sm:$0xff] %v2216_v45 }
  0x99   :  { %1698 = vset.pattern.permute.xlu1 %v1847_v46  ;;  %v2020_v47 = vpop.permute.xlu1 %128  ;;  %v2144_v46 = vsel %vm192_vm4, 1, %v3357_v1 }
  0x9a   :  { %474 = vperm.xlu1 %1698, %v1921_v2   ;;  %v2084_v13 = vpop.permute.xlu0 %181 }
  0x9b   :  { %1732 = vset.pattern.permute.xlu0 %v3352_v48 }
  0x9c   :  { %818 = vperm.xlu0 %1732, %v1928_v3  }
  0x9e   :  { %478 = vperm.xlu1 %1698, %v1928_v3   ;;  %v2026_v49 = vpop.permute.xlu1 %143 }
  0x9f   :  { %v2098_v17 = vpop.permute.xlu0 %204 }
  0xa0   :  { %1734 = vset.pattern.permute.xlu0 %v3351_v50 }
  0xa1   :  { %848 = vperm.xlu0 %1734, %v1921_v2  }
  0xa2   :  { %1700 = vset.pattern.permute.xlu1 %v1831_v24  ;;  %v83_v24 = vrot.slane %v2104_v20, %v2108_v22 }
  0xa3   :  { %495 = vperm.xlu1 %1700, %v1928_v3   ;;  %v2032_v51 = vpop.permute.xlu1 %162 }
  0xa4   :  { %v2112_v23 = vpop.permute.xlu0 %236  ;;  %vm2136_vm6 = vcmp.eq.s32.totalorder %v83_v24, 1  ;;  %v3348_v24 = vmov 57  }
  0xa5   :  { %1737 = vset.pattern.permute.xlu0 %v3350_v52  ;;  %v93_v39 = vsel %vm2136_vm6, %v2004_v40, 0.0 }
  0xa6   :  { %869 = vperm.xlu0 %1737, %v1928_v3  }
  0xa7   :  { %1701 = vset.pattern.permute.xlu1 %v1832_v25  ;;  %v2037_v53 = vpop.permute.xlu1 %166 }
  0xa8   :  { %508 = vperm.xlu1 %1701, %v1921_v2  }
  0xaa   :  { %1739 = vset.pattern.permute.xlu0 %v3349_v57 }
  0xab   :  { %899 = vperm.xlu0 %1739, %v1921_v2  }
  0xac   :  { %1703 = vset.pattern.permute.xlu1 %v1851_v54  ;;  %v2040_v55 = vpop.permute.xlu1 %185 }
  0xad   :  { %525 = vperm.xlu1 %1703, %v1921_v2  }
  0xaf   :  { %1742 = vset.pattern.permute.xlu0 %v3347_v61  ;;  %v2173_v61 = vsub.s32 1, %v2095_v16 }
  0xb0   :  { %920 = vperm.xlu0 %1742, %v1928_v3  }
  0xb1   :  { %529 = vperm.xlu1 %1703, %v1928_v3   ;;  %v2048_v58 = vpop.permute.xlu1 %200 }
  0xb4   :  { %1744 = vset.pattern.permute.xlu0 %v3346_v6  ;;  %v197_v6 = vrot.slane %v2144_v46, %v2108_v22 }
  0xb5   :  { %1705 = vset.pattern.permute.xlu1 %v1834_v27  ;;  %950 = vperm.xlu0 %1744, %v1921_v2   ;;  %v2125_v27 = vsel %vm116_vm2, 1, %v3357_v1 }
  0xb6   :  { %546 = vperm.xlu1 %1705, %v1928_v3   ;;  %v2054_v60 = vpop.permute.xlu1 %219  ;;  %v121_v37 = vrot.slane %v2125_v27, %v2108_v22  ;;  %vm2205_vm15 = vcmp.eq.s32.totalorder %v197_v6, 1  ;;  %v2225_v6 = vsel %vm211_vm14, 1, %v3357_v1 }
  0xb8   :  { %vm2166_vm9 = vcmp.eq.s32.totalorder %v121_v37, 1 }
  0xb9   :  { %1747 = vset.pattern.permute.xlu0 %v3345_v11  ;;  %v132_v37 = vsel %vm2166_vm9, %v2020_v47, 0.0  ;;  %v64_v47 = vrot.slane %v2181_v30, %v2108_v22  ;;  %v131_v36 = vsel %vm2166_vm9, %v2074_v8, 0.0 }
  0xba   :  { %1706 = vset.pattern.permute.xlu1 %v1835_v28  ;;  %v2061_v63 = vpop.permute.xlu1 %223  ;;  %971 = vperm.xlu0 %1747, %v1928_v3   ;;  %v2128_v28 = vpop.permute.xlu0 %257 }
  0xbb   :  { %559 = vperm.xlu1 %1706, %v1921_v2   ;;  %vm2242_vm1 = vcmp.eq.s32.totalorder %v64_v47, 1  ;;  %v55_v47 = vsel %vm2162_vm8, %v1989_v33, 0.0 }
  0xbe   :  { %1749 = vset.pattern.permute.xlu0 %v3344_v21 }
  0xbf   :  { %1708 = vset.pattern.permute.xlu1 %v1854_v4  ;;  %v2066_v5 = vpop.permute.xlu1 %240  ;;  %1001 = vperm.xlu0 %1749, %v1921_v2   ;;  %v2150_v4 = vsel %vm19_vm5, 1, %v3357_v1 }
  0xc0   :  { %576 = vperm.xlu1 %1708, %v1921_v2  }
  0xc3   :  { %1752 = vset.pattern.permute.xlu0 %v3348_v24  ;;  %v24_v24 = vrot.slane %v2150_v4, %v2108_v22 }
  0xc4   :  { %580 = vperm.xlu1 %1708, %v1928_v3   ;;  %v2072_v7 = vpop.permute.xlu1 %253  ;;  %1022 = vperm.xlu0 %1752, %v1928_v3  }
  0xc5   :  { %vm2211_vm0 = vcmp.eq.s32.totalorder %v24_v24, 1 }
  0xc6   :  { %v37_v50 = vsel %vm2211_vm0, %v2050_v59, 0.0  ;;  %v207_v59 = vsel %vm2205_vm15, %v2048_v58, 0.0 }
  0xc8   :  { %1710 = vset.pattern.permute.xlu1 %v1836_v29  ;;  %v2132_v29 = vsel %vm154_vm3, 1, %v3357_v1 }
  0xc9   :  { %597 = vperm.xlu1 %1710, %v1928_v3   ;;  %v2080_v10 = vpop.permute.xlu1 %270  ;;  %v159_v12 = vrot.slane %v2132_v29, %v2108_v22 }
  0xcb   :  { %vm2191_vm12 = vcmp.eq.s32.totalorder %v159_v12, 1  ;;  %v3394_v12 = vmov 38  }
  0xcc   :  { %v169_v8 = vsel %vm2191_vm12, %v2032_v51, 0.0  ;;  %v75_v51 = vsel %vm2242_vm1, %v1998_v38, 0.0 }
  0xcd   :  { %1711 = vset.pattern.permute.xlu1 %v1838_v31  ;;  %v2087_v14 = vpop.permute.xlu1 %274 }
  0xce   :  { %610 = vperm.xlu1 %1711, %v1921_v2  }
  0xd2   :  { %1713 = vset.pattern.permute.xlu1 %v1857_v18  ;;  %v2100_v19 = vpop.permute.xlu1 %291  ;;  %v2155_v18 = vpop.permute.xlu0 %287 }
  0xd3   :  { %627 = vperm.xlu1 %1713, %v1921_v2   ;;  %3366 = vst [vmem:[#allocation3_spill] sm:$0xff] %v2155_v18 }
  0xd7   :  { %631 = vperm.xlu1 %1713, %v1928_v3   ;;  %v2119_v25 = vpop.permute.xlu1 %304 }
  0xdb   :  { %1715 = vset.pattern.permute.xlu1 %v1839_v32  ;;  %v94_v32 = vsel %vm2136_vm6, %v2064_v0, 0.0  ;;  %v56_v0 = vsel %vm2162_vm8, %v1993_v35, 0.0  ;;  %v2195_v35 = vpop.permute.xlu0 %308 }
  0xdc   :  { %648 = vperm.xlu1 %1715, %v1928_v3   ;;  %v2147_v54 = vpop.permute.xlu1 %321  ;;  %v96_v52 = vadd.f32 %v94_v32, %v56_v0  ;;  %v233_v0 = vrot.slane %v2150_v4, %v2173_v61 }
  0xdd   :  { %3365 = vst [vmem:[#allocation2_spill] sm:$0xff] %v2147_v54  ;;  %v95_v54 = vadd.f32 %v93_v39, %v55_v47  ;;  %v36_v47 = vsel %vm2211_vm0, %v2042_v56, 0.0  ;;  %v1862_v56 = vmov 60  }
  0xde   :  { %v134_v32 = vadd.f32 %v132_v37, %v96_v52  ;;  %v267_v37 = vrot.slane %v2181_v30, %v2173_v61  ;;  %vm2250_vm2 = vcmp.eq.s32.totalorder %v233_v0, 1 }
  0xdf   :  { %v2229_v24 = vpop.permute.xlu0 %338  ;;  %v244_v0 = vsel %vm2250_vm2, %v2066_v5, 0.0 }
  0xe0   :  { %1716 = vset.pattern.permute.xlu1 %v1840_v34  ;;  %v2187_v57 = vpop.permute.xlu1 %325  ;;  %v170_v34 = vsel %vm2191_vm12, %v2037_v53, 0.0  ;;  %v2219_v53 = vsel %vm135_vm11, 1, %v3357_v1  ;;  %vm2269_vm3 = vcmp.eq.s32.totalorder %v267_v37, 1  ;;  %v250_v1 = vrot.slane %v2122_v26, %v2173_v61 }
  0xe1   :  { %661 = vperm.xlu1 %1716, %v1921_v2   ;;  %v172_v52 = vadd.f32 %v170_v34, %v134_v32  ;;  %v208_v34 = vsel %vm2205_vm15, %v2098_v17, 0.0  ;;  %v301_v32 = vrot.slane %v2216_v45, %v2173_v61  ;;  %v140_v31 = vrot.slane %v2219_v53, %v2108_v22 }
  0xe2   :  { %v3362_v17 = vmov 59   ;;  %v278_v5 = vsel %vm2269_vm3, %v2087_v14, 0.0  ;;  %v335_v21 = vrot.slane %v2219_v53, %v2173_v61  ;;  %v133_v14 = vadd.f32 %v131_v36, %v95_v54 }
  0xe3   :  { %1754 = vset.pattern.permute.xlu0 %v3362_v17  ;;  %v210_v18 = vadd.f32 %v208_v34, %v172_v52  ;;  %v216_v17 = vrot.slane %v2225_v6, %v2108_v22  ;;  %v2273_v11 = vpop.permute.xlu0 %359  ;;  %vm2281_vm4 = vcmp.eq.s32.totalorder %v301_v32, 1  ;;  %vm2300_vm6 = vcmp.eq.s32.totalorder %v140_v31, 1 }
  0xe4   :  { %1052 = vperm.xlu0 %1754, %v1921_v2   ;;  %v171_v38 = vadd.f32 %v169_v8, %v133_v14  ;;  %v77_v31 = vadd.f32 %v75_v51, %v37_v50  ;;  %v312_v58 = vsel %vm2281_vm4, %v2195_v35, 0.0  ;;  %vm2331_vm9 = vcmp.eq.s32.totalorder %v335_v21, 1 }
  0xe5   :  { %1718 = vset.pattern.permute.xlu1 %v1860_v43  ;;  %v2231_v41 = vpop.permute.xlu1 %342  ;;  %v102_v43 = vrot.slane %v2216_v45, %v2108_v22  ;;  %v178_v45 = vrot.slane %v2222_v15, %v2108_v22  ;;  %v246_v52 = vadd.f32 %v244_v0, %v210_v18  ;;  %vm2318_vm8 = vcmp.eq.s32.totalorder %v216_v17, 1 }
  0xe6   :  { %678 = vperm.xlu1 %1718, %v1921_v2   ;;  %v209_v0 = vadd.f32 %v207_v59, %v171_v38  ;;  %v74_v35 = vsel %vm2242_vm1, %v2058_v62, 0.0  ;;  %v243_v50 = vsel %vm2250_vm2, %v2112_v23, 0.0  ;;  %v346_v48 = vsel %vm2331_vm9, %v2231_v41, 0.0  ;;  %v3422_v23 = vld [vmem:[#allocation4_spill] sm:$0xff] }
  0xe7   :  { %vm2296_vm5 = vcmp.eq.s32.totalorder %v102_v43, 1  ;;  %vm2304_vm7 = vcmp.eq.s32.totalorder %v178_v45, 1  ;;  %v280_v54 = vadd.f32 %v278_v5, %v246_v52  ;;  %v2314_v18 = vpop.permute.xlu0 %389  ;;  %v403_v43 = vrot.slane %v2225_v6, %v2173_v61 }
  0xe8   :  { %v113_v36 = vsel %vm2296_vm5, %v2015_v44, 0.0  ;;  %v369_v44 = vrot.slane %v2222_v15, %v2173_v61  ;;  %1757 = vset.pattern.permute.xlu0 %v1862_v56  ;;  %v151_v21 = vsel %vm2300_vm6, %v2077_v9, 0.0  ;;  %v277_v41 = vsel %vm2269_vm3, %v2080_v10, 0.0 }
  0xe9   :  { %v115_v5 = vadd.f32 %v113_v36, %v77_v31  ;;  %v314_v62 = vadd.f32 %v312_v58, %v280_v54  ;;  %vm2353_vm10 = vcmp.eq.s32.totalorder %v403_v43, 1  ;;  %1073 = vperm.xlu0 %1757, %v1928_v3   ;;  %v2366_v9 = vsub.s32 2, %v2095_v16 }
  0xea   :  { %682 = vperm.xlu1 %1718, %v1928_v3   ;;  %v2288_v22 = vpop.permute.xlu1 %355  ;;  %vm2361_vm11 = vcmp.eq.s32.totalorder %v369_v44, 1  ;;  %v76_v40 = vadd.f32 %v74_v35, %v36_v47  ;;  %v189_v52 = vsel %vm2304_vm7, %v2040_v55, 0.0  ;;  %v245_v59 = vadd.f32 %v243_v50, %v209_v0 }
  0xeb   :  { %v411_v51 = vpop.permute.xlu0 %410  ;;  %v348_v36 = vadd.f32 %v346_v48, %v314_v62  ;;  %v3401_v38 = vmov 39   ;;  %v153_v43 = vadd.f32 %v151_v21, %v115_v5  ;;  %v311_v10 = vsel %vm2281_vm4, %v2119_v25, 0.0 }
  0xec   :  { %v414_v31 = vsel %vm2353_vm10, %v411_v51, 0.0  ;;  %v112_v55 = vsel %vm2296_vm5, %v2010_v42, 0.0  ;;  %v227_v58 = vsel %vm2318_vm8, %v2061_v63, 0.0  ;;  %vm2386_vm12 = vcmp.eq.s32.totalorder %v250_v1, 1 }
  0xed   :  { %v191_v39 = vadd.f32 %v189_v52, %v153_v43  ;;  %v284_v47 = vrot.slane %v2104_v20, %v2173_v61  ;;  %v318_v0 = vrot.slane %v2125_v27, %v2173_v61  ;;  %v150_v42 = vsel %vm2300_vm6, %v2026_v49, 0.0 }
  0xee   :  { %1720 = vset.pattern.permute.xlu1 %v3394_v12  ;;  %v279_v12 = vadd.f32 %v277_v41, %v245_v59  ;;  %v437_v63 = vrot.slane %v2122_v26, %v2366_v9  ;;  %v114_v5 = vadd.f32 %v112_v55, %v76_v40  ;;  %v345_v48 = vsel %vm2331_vm9, %v2229_v24, 0.0 }
  0xef   :  { %699 = vperm.xlu1 %1720, %v1928_v3   ;;  %v2336_v17 = vpop.permute.xlu1 %372  ;;  %v229_v50 = vadd.f32 %v227_v58, %v191_v39  ;;  %v352_v21 = vrot.slane %v2132_v29, %v2173_v61  ;;  %v1863_v1 = vmov 40   ;;  %v261_v49 = vsel %vm2386_vm12, %v2128_v28, 0.0  ;;  %v441_v52 = vpop.permute.xlu0 %440 }
  0xf0   :  { %v313_v37 = vadd.f32 %v311_v10, %v279_v12  ;;  %v152_v34 = vadd.f32 %v150_v42, %v114_v5  ;;  %vm2410_vm13 = vcmp.eq.s32.totalorder %v284_v47, 1  ;;  %v379_v24 = vsel %vm2361_vm11, %v2336_v17, 0.0  ;;  %v3415_v47 = vld [vmem:[#allocation3_spill] sm:$0xff] }
  0xf1   :  { %v1864_v8 = vmov 62   ;;  %v188_v41 = vsel %vm2304_vm7, %v2084_v13, 0.0  ;;  %v295_v28 = vsel %vm2410_vm13, %v2100_v19, 0.0  ;;  %vm2424_vm14 = vcmp.eq.s32.totalorder %v437_v63, 1 }
  0xf2   :  { %1759 = vset.pattern.permute.xlu0 %v1864_v8  ;;  %v347_v40 = vadd.f32 %v345_v48, %v313_v37  ;;  %v263_v17 = vadd.f32 %v261_v49, %v229_v50  ;;  %vm2429_vm15 = vcmp.eq.s32.totalorder %v318_v0, 1  ;;  %vm2433_vm0 = vcmp.eq.s32.totalorder %v352_v21, 1  ;;  %v3418_v50 = vld [vmem:[#allocation2_spill] sm:$0xff] }
  0xf3   :  { %1721 = vset.pattern.permute.xlu1 %v3401_v38  ;;  %v377_v54 = vpop.permute.xlu1 %376  ;;  %1103 = vperm.xlu0 %1759, %v1921_v2   ;;  %v226_v13 = vsel %vm2318_vm8, %v2054_v60, 0.0  ;;  %v329_v19 = vsel %vm2429_vm15, %v2187_v57, 0.0  ;;  %v190_v43 = vadd.f32 %v188_v41, %v152_v34  ;;  %v447_v45 = vsel %vm2424_vm14, %v441_v52, 0.0  ;;  %v462_v63 = vpop.permute.xlu0 %461 }
  0xf4   :  { %v380_v33 = vsel %vm2361_vm11, %v377_v54, 0.0  ;;  %712 = vperm.xlu1 %1721, %v1921_v2   ;;  %v381_v38 = vadd.f32 %v379_v24, %v347_v40  ;;  %v297_v10 = vadd.f32 %v295_v28, %v263_v17  ;;  %v260_v60 = vsel %vm2386_vm12, %v2072_v7, 0.0 }
  0xf5   :  { %v382_v44 = vadd.f32 %v380_v33, %v348_v36  ;;  %v386_v36 = vrot.slane %v2144_v46, %v2173_v61  ;;  %v454_v61 = vrot.slane %v2181_v30, %v2366_v9  ;;  %v363_v58 = vsel %vm2433_vm0, %v2273_v11, 0.0 }
  0xf6   :  { %v331_v55 = vadd.f32 %v329_v19, %v297_v10  ;;  %v3412_v14 = vmov 41   ;;  %v420_v25 = vrot.slane %v2150_v4, %v2366_v9  ;;  %v294_v0 = vsel %vm2410_vm13, %v3415_v47, 0.0 }
  0xf7   :  { %v2397_v35 = vadd.f32 %v414_v31, %v382_v44  ;;  %v228_v31 = vadd.f32 %v226_v13, %v190_v43  ;;  %vm2461_vm1 = vcmp.eq.s32.totalorder %v386_v36, 1  ;;  %v1865_v42 = vmov 63   ;;  %v492_v43 = vpop.permute.xlu0 %491 }
  0xf8   :  { %1723 = vset.pattern.permute.xlu1 %v1863_v1  ;;  %v394_v62 = vpop.permute.xlu1 %393  ;;  %1762 = vset.pattern.permute.xlu0 %v1865_v42  ;;  %v365_v37 = vadd.f32 %v363_v58, %v331_v55  ;;  %vm2474_vm2 = vcmp.eq.s32.totalorder %v454_v61, 1  ;;  %v328_v48 = vsel %vm2429_vm15, %v3418_v50, 0.0  ;;  %vm2482_vm3 = vcmp.eq.s32.totalorder %v420_v25, 1 }
  0xf9   :  { %729 = vperm.xlu1 %1723, %v1921_v2   ;;  %v262_v44 = vadd.f32 %v260_v60, %v228_v31  ;;  %v397_v11 = vsel %vm2461_vm1, %v394_v62, 0.0  ;;  %1124 = vperm.xlu0 %1762, %v1928_v3   ;;  %v3421_v62 = vmov 42   ;;  %v362_v51 = vsel %vm2433_vm0, %v2288_v22, 0.0 }
  0xfa   :  { %v399_v1 = vadd.f32 %v397_v11, %v365_v37  ;;  %v465_v41 = vsel %vm2474_vm2, %v462_v63, 0.0  ;;  %v488_v13 = vrot.slane %v3422_v23, %v2366_v9  ;;  %v396_v22 = vsel %vm2461_vm1, %v2314_v18, 0.0 }
  0xfb   :  { %v296_v21 = vadd.f32 %v294_v0, %v262_v44  ;;  %v1866_v32 = vmov 43   ;;  %v505_v31 = vrot.slane %v2125_v27, %v2366_v9  ;;  %v3425_v61 = vmov 44  }
  0xfc   :  { %vm2506_vm4 = vcmp.eq.s32.totalorder %v488_v13, 1  ;;  %v1868_v39 = vmov 66   ;;  %v3430_v11 = vmov 45   ;;  %v1870_v49 = vmov 68  }
  0xfd   :  { %733 = vperm.xlu1 %1723, %v1928_v3   ;;  %v407_v54 = vpop.permute.xlu1 %406  ;;  %v330_v28 = vadd.f32 %v328_v48, %v296_v21  ;;  %v498_v60 = vsel %vm2506_vm4, %v492_v43, 0.0  ;;  %vm2527_vm5 = vcmp.eq.s32.totalorder %v505_v31, 1  ;;  %v1869_v48 = vmov 46  }
  0xfe   :  { %v413_v33 = vsel %vm2353_vm10, %v407_v54, 0.0  ;;  %v2613_v0 = vsub.s32 3, %v2095_v16 }
  0xff   :  { %v415_v57 = vadd.f32 %v413_v33, %v381_v38  ;;  %v364_v52 = vadd.f32 %v362_v51, %v330_v28  ;;  %v1867_v38 = vmov 65  }
 0x100   :  { %1764 = vset.pattern.permute.xlu0 %v1867_v38 }
 0x101   :  { %v2458_v12 = vadd.f32 %v447_v45, %v415_v57  ;;  %1725 = vset.pattern.permute.xlu1 %v3412_v14  ;;  %v398_v54 = vadd.f32 %v396_v22, %v364_v52  ;;  %1154 = vperm.xlu0 %1764, %v1921_v2   ;;  %v471_v14 = vrot.slane %v2104_v20, %v2366_v9  ;;  %v3433_v22 = vmov 47  }
 0x102   :  { %750 = vperm.xlu1 %1725, %v1928_v3   ;;  %v424_v7 = vpop.permute.xlu1 %423  ;;  %v556_v52 = vrot.slane %v2222_v15, %v2366_v9 }
 0x103   :  { %v430_v36 = vsel %vm2482_vm3, %v424_v7, 0.0  ;;  %v513_v7 = vpop.permute.xlu0 %512  ;;  %vm2533_vm6 = vcmp.eq.s32.totalorder %v471_v14, 1 }
 0x104   :  { %v432_v18 = vadd.f32 %v430_v36, %v398_v54  ;;  %v516_v63 = vsel %vm2527_vm5, %v513_v7, 0.0  ;;  %vm2578_vm8 = vcmp.eq.s32.totalorder %v556_v52, 1  ;;  %v1873_v7 = vmov 71  }
 0x105   :  { %1767 = vset.pattern.permute.xlu0 %v1868_v39 }
 0x106   :  { %1726 = vset.pattern.permute.xlu1 %v3421_v62  ;;  %v428_v34 = vpop.permute.xlu1 %427  ;;  %1175 = vperm.xlu0 %1767, %v1928_v3  }
 0x107   :  { %v431_v24 = vsel %vm2482_vm3, %v428_v34, 0.0  ;;  %763 = vperm.xlu1 %1726, %v1921_v2   ;;  %v543_v62 = vpop.permute.xlu0 %542 }
 0x108   :  { %v433_v40 = vadd.f32 %v431_v24, %v399_v1 }
 0x10a   :  { %v2495_v17 = vadd.f32 %v465_v41, %v433_v40  ;;  %1769 = vset.pattern.permute.xlu0 %v1870_v49 }
 0x10b   :  { %1728 = vset.pattern.permute.xlu1 %v1866_v32  ;;  %v445_v19 = vpop.permute.xlu1 %444  ;;  %1205 = vperm.xlu0 %1769, %v1921_v2   ;;  %v564_v36 = vpop.permute.xlu0 %563 }
 0x10c   :  { %780 = vperm.xlu1 %1728, %v1921_v2   ;;  %v448_v44 = vsel %vm2424_vm14, %v445_v19, 0.0  ;;  %v1871_v19 = vmov 69  }
 0x10d   :  { %v450_v47 = vadd.f32 %v448_v44, %v2397_v35  ;;  %v539_v35 = vrot.slane %v2132_v29, %v2366_v9 }
 0x10f   :  { %vm2551_vm7 = vcmp.eq.s32.totalorder %v539_v35, 1  ;;  %1772 = vset.pattern.permute.xlu0 %v1871_v19  ;;  %v594_v25 = vpop.permute.xlu0 %593  ;;  %v607_v35 = vrot.slane %v2150_v4, %v2613_v0 }
 0x110   :  { %784 = vperm.xlu1 %1728, %v1928_v3   ;;  %v458_v33 = vpop.permute.xlu1 %457  ;;  %v549_v28 = vsel %vm2551_vm7, %v543_v62, 0.0 }
 0x111   :  { %v464_v45 = vsel %vm2474_vm2, %v458_v33, 0.0  ;;  %v3438_v33 = vmov 48   ;;  %vm2632_vm11 = vcmp.eq.s32.totalorder %v607_v35, 1  ;;  %v1881_v35 = vmov 58  }
 0x112   :  { %v466_v57 = vadd.f32 %v464_v45, %v432_v18 }
 0x114   :  { %v2518_v55 = vadd.f32 %v498_v60, %v466_v57  ;;  %1730 = vset.pattern.permute.xlu1 %v3425_v61  ;;  %v2594_v60 = vld [vmem:[%s3340_s1] sm:$0xff]  ;;  %v590_v61 = vrot.slane %v2225_v6, %v2366_v9 }
 0x115   :  { %801 = vperm.xlu1 %1730, %v1928_v3   ;;  %v475_v58 = vpop.permute.xlu1 %474 }
 0x116   :  { %v481_v1 = vsel %vm2533_vm6, %v475_v58, 0.0  ;;  %v1872_v58 = vmov 49   ;;  %vm2607_vm10 = vcmp.eq.s32.totalorder %v590_v61, 1 }
 0x117   :  { %v483_v51 = vadd.f32 %v481_v1, %v2458_v12  ;;  %v522_v12 = vrot.slane %v2219_v53, %v2366_v9  ;;  %v573_v1 = vrot.slane %v2144_v46, %v2366_v9  ;;  %v3446_v9 = vmov 51  }
 0x119   :  { %1731 = vset.pattern.permute.xlu1 %v3430_v11  ;;  %v479_v59 = vpop.permute.xlu1 %478  ;;  %vm2584_vm9 = vcmp.eq.s32.totalorder %v522_v12, 1  ;;  %vm2638_vm12 = vcmp.eq.s32.totalorder %v573_v1, 1 }
 0x11a   :  { %v482_v37 = vsel %vm2533_vm6, %v479_v59, 0.0  ;;  %814 = vperm.xlu1 %1731, %v1921_v2  }
 0x11b   :  { %v484_v5 = vadd.f32 %v482_v37, %v450_v47 }
 0x11d   :  { %v2543_v50 = vadd.f32 %v516_v63, %v484_v5  ;;  %v600_v63 = vsel %vm2607_vm10, %v594_v25, 0.0  ;;  %v624_v25 = vrot.slane %v2122_v26, %v2613_v0 }
 0x11e   :  { %1733 = vset.pattern.permute.xlu1 %v1869_v48  ;;  %v496_v21 = vpop.permute.xlu1 %495 }
 0x11f   :  { %831 = vperm.xlu1 %1733, %v1921_v2   ;;  %v2570_v2 = vld [vmem:[%s3340_s1 + $0x8] sm:$0xff]  ;;  %v499_v32 = vsel %vm2506_vm4, %v496_v21, 0.0  ;;  %v3441_v21 = vmov 50   ;;  %vm2684_vm15 = vcmp.eq.s32.totalorder %v624_v25, 1  ;;  %v3462_v25 = vmov 57  }
 0x120   :  { %1226 = vperm.xlu0 %1772, %v2570_v2   ;;  %v501_v43 = vadd.f32 %v499_v32, %v2495_v17  ;;  %v567_v17 = vsel %vm2578_vm8, %v564_v36, 0.0  ;;  %v1875_v32 = vmov 52  }
 0x123   :  { %835 = vperm.xlu1 %1733, %v1928_v3   ;;  %v509_v24 = vpop.permute.xlu1 %508 }
 0x124   :  { %v515_v41 = vsel %vm2527_vm5, %v509_v24, 0.0  ;;  %1774 = vset.pattern.permute.xlu0 %v1873_v7  ;;  %v615_v24 = vpop.permute.xlu0 %614 }
 0x125   :  { %v517_v40 = vadd.f32 %v515_v41, %v483_v51  ;;  %1256 = vperm.xlu0 %1774, %v2594_v60   ;;  %v1874_v51 = vmov 72   ;;  %v1878_v41 = vmov 55  }
 0x127   :  { %v2564_v13 = vadd.f32 %v549_v28, %v517_v40  ;;  %1735 = vset.pattern.permute.xlu1 %v3433_v22  ;;  %v618_v22 = vsel %vm2632_vm11, %v615_v24, 0.0 }
 0x128   :  { %852 = vperm.xlu1 %1735, %v2570_v2   ;;  %v526_v3 = vpop.permute.xlu1 %525  ;;  %v645_v18 = vpop.permute.xlu0 %644 }
 0x129   :  { %v532_v44 = vsel %vm2584_vm9, %v526_v3, 0.0  ;;  %1777 = vset.pattern.permute.xlu0 %v1874_v51 }
 0x12a   :  { %v534_v11 = vadd.f32 %v532_v44, %v2518_v55  ;;  %1277 = vperm.xlu0 %1777, %v2570_v2   ;;  %v3449_v44 = vmov 53  }
 0x12c   :  { %1736 = vset.pattern.permute.xlu1 %v3438_v33  ;;  %v530_v10 = vpop.permute.xlu1 %529 }
 0x12d   :  { %v533_v45 = vsel %vm2584_vm9, %v530_v10, 0.0  ;;  %865 = vperm.xlu1 %1736, %v2594_v60  }
 0x12e   :  { %v535_v57 = vadd.f32 %v533_v45, %v501_v43  ;;  %v1876_v43 = vmov 74  }
 0x12f   :  { %1779 = vset.pattern.permute.xlu0 %v1876_v43 }
 0x130   :  { %v2599_v31 = vadd.f32 %v567_v17, %v535_v57  ;;  %1307 = vperm.xlu0 %1779, %v2594_v60  }
 0x131   :  { %1738 = vset.pattern.permute.xlu1 %v1872_v58  ;;  %v547_v14 = vpop.permute.xlu1 %546  ;;  %v658_v58 = vrot.slane %v2104_v20, %v2613_v0 }
 0x132   :  { %882 = vperm.xlu1 %1738, %v2594_v60   ;;  %v550_v62 = vsel %vm2551_vm7, %v547_v14, 0.0 }
 0x133   :  { %v552_v28 = vadd.f32 %v550_v62, %v2543_v50  ;;  %v641_v50 = vrot.slane %v2181_v30, %v2613_v0  ;;  %vm2678_vm14 = vcmp.eq.s32.totalorder %v658_v58, 1 }
 0x135   :  { %vm2656_vm13 = vcmp.eq.s32.totalorder %v641_v50, 1 }
 0x136   :  { %886 = vperm.xlu1 %1738, %v2570_v2   ;;  %v560_v59 = vpop.permute.xlu1 %559  ;;  %v651_v57 = vsel %vm2656_vm13, %v645_v18, 0.0 }
 0x137   :  { %v566_v37 = vsel %vm2578_vm8, %v560_v59, 0.0  ;;  %v1877_v59 = vmov 75  }
 0x138   :  { %v568_v5 = vadd.f32 %v566_v37, %v534_v11  ;;  %1782 = vset.pattern.permute.xlu0 %v1877_v59  ;;  %v666_v37 = vpop.permute.xlu0 %665 }
 0x139   :  { %1328 = vperm.xlu0 %1782, %v2570_v2   ;;  %v669_v1 = vsel %vm2678_vm14, %v666_v37, 0.0 }
 0x13a   :  { %v2623_v48 = vadd.f32 %v600_v63, %v568_v5  ;;  %1740 = vset.pattern.permute.xlu1 %v3441_v21  ;;  %v3454_v21 = vmov 54  }
 0x13b   :  { %903 = vperm.xlu1 %1740, %v2570_v2   ;;  %v577_v55 = vpop.permute.xlu1 %576 }
 0x13c   :  { %v583_v54 = vsel %vm2638_vm12, %v577_v55, 0.0 }
 0x13d   :  { %v585_v10 = vadd.f32 %v583_v54, %v2564_v13  ;;  %v709_v54 = vrot.slane %v2219_v53, %v2613_v0 }
 0x13f   :  { %1741 = vset.pattern.permute.xlu1 %v3446_v9  ;;  %v581_v34 = vpop.permute.xlu1 %580  ;;  %v1879_v9 = vmov 77   ;;  %vm2724_vm1 = vcmp.eq.s32.totalorder %v709_v54, 1  ;;  %v1883_v54 = vmov 81  }
 0x140   :  { %v584_v52 = vsel %vm2638_vm12, %v581_v34, 0.0  ;;  %916 = vperm.xlu1 %1741, %v2594_v60   ;;  %1784 = vset.pattern.permute.xlu0 %v1879_v9  ;;  %v696_v34 = vpop.permute.xlu0 %695 }
 0x141   :  { %v586_v3 = vadd.f32 %v584_v52, %v552_v28  ;;  %1358 = vperm.xlu0 %1784, %v2594_v60  }
 0x143   :  { %v2648_v12 = vadd.f32 %v618_v22, %v586_v3 }
 0x144   :  { %1743 = vset.pattern.permute.xlu1 %v1875_v32  ;;  %v598_v36 = vpop.permute.xlu1 %597 }
 0x145   :  { %933 = vperm.xlu1 %1743, %v2594_v60   ;;  %v601_v11 = vsel %vm2607_vm10, %v598_v36, 0.0 }
 0x146   :  { %v603_v5 = vadd.f32 %v601_v11, %v2599_v31  ;;  %v692_v31 = vrot.slane %v2125_v27, %v2613_v0 }
 0x148   :  { %vm2702_vm0 = vcmp.eq.s32.totalorder %v692_v31, 1 }
 0x149   :  { %937 = vperm.xlu1 %1743, %v2570_v2   ;;  %v611_v45 = vpop.permute.xlu1 %610  ;;  %v702_v32 = vsel %vm2702_vm0, %v696_v34, 0.0 }
 0x14a   :  { %v617_v17 = vsel %vm2632_vm11, %v611_v45, 0.0  ;;  %v675_v45 = vrot.slane %v3422_v23, %v2613_v0 }
 0x14b   :  { %v619_v61 = vadd.f32 %v617_v17, %v585_v10  ;;  %v3457_v10 = vmov 56  }
 0x14c   :  { %vm2730_vm2 = vcmp.eq.s32.totalorder %v675_v45, 1 }
 0x14d   :  { %v2669_v14 = vadd.f32 %v651_v57, %v619_v61  ;;  %1745 = vset.pattern.permute.xlu1 %v3449_v44  ;;  %v1880_v57 = vmov 78   ;;  %v717_v61 = vpop.permute.xlu0 %716 }
 0x14e   :  { %954 = vperm.xlu1 %1745, %v2570_v2   ;;  %v628_v13 = vpop.permute.xlu1 %627  ;;  %1787 = vset.pattern.permute.xlu0 %v1880_v57  ;;  %v720_v37 = vsel %vm2724_vm1, %v717_v61, 0.0  ;;  %v2782_v61 = vsub.s32 4, %v2095_v16 }
 0x14f   :  { %v634_v40 = vsel %vm2684_vm15, %v628_v13, 0.0  ;;  %1379 = vperm.xlu0 %1787, %v2570_v2  }
 0x150   :  { %v636_v22 = vadd.f32 %v634_v40, %v2623_v48 }
 0x152   :  { %1746 = vset.pattern.permute.xlu1 %v3454_v21  ;;  %v632_v47 = vpop.permute.xlu1 %631 }
 0x153   :  { %v635_v55 = vsel %vm2684_vm15, %v632_v47, 0.0  ;;  %967 = vperm.xlu1 %1746, %v2594_v60  }
 0x154   :  { %v637_v62 = vadd.f32 %v635_v55, %v603_v5  ;;  %v1882_v55 = vmov 80  }
 0x155   :  { %1789 = vset.pattern.permute.xlu0 %v1882_v55 }
 0x156   :  { %v2694_v24 = vadd.f32 %v669_v1, %v637_v62  ;;  %v747_v1 = vpop.permute.xlu0 %746  ;;  %1409 = vperm.xlu0 %1789, %v2594_v60  }
 0x157   :  { %1748 = vset.pattern.permute.xlu1 %v1878_v41  ;;  %v649_v28 = vpop.permute.xlu1 %648 }
 0x158   :  { %984 = vperm.xlu1 %1748, %v2594_v60   ;;  %v652_v17 = vsel %vm2656_vm13, %v649_v28, 0.0 }
 0x159   :  { %v654_v44 = vadd.f32 %v652_v17, %v2648_v12  ;;  %v743_v12 = vrot.slane %v2222_v15, %v2613_v0 }
 0x15a   :  { %1792 = vset.pattern.permute.xlu0 %v1883_v54 }
 0x15b   :  { %vm2748_vm3 = vcmp.eq.s32.totalorder %v743_v12, 1  ;;  %1430 = vperm.xlu0 %1792, %v2570_v2  }
 0x15c   :  { %988 = vperm.xlu1 %1748, %v2570_v2   ;;  %v662_v3 = vpop.permute.xlu1 %661  ;;  %v753_v40 = vsel %vm2748_vm3, %v747_v1, 0.0 }
 0x15d   :  { %v668_v50 = vsel %vm2678_vm14, %v662_v3, 0.0 }
 0x15e   :  { %v670_v36 = vadd.f32 %v668_v50, %v636_v22  ;;  %v760_v22 = vrot.slane %v2144_v46, %v2613_v0  ;;  %v3465_v50 = vmov 59  }
 0x160   :  { %v2715_v18 = vadd.f32 %v702_v32, %v670_v36  ;;  %1750 = vset.pattern.permute.xlu1 %v3457_v10  ;;  %v726_v32 = vrot.slane %v2132_v29, %v2613_v0  ;;  %v768_v10 = vpop.permute.xlu0 %767  ;;  %vm2770_vm4 = vcmp.eq.s32.totalorder %v760_v22, 1  ;;  %v1886_v22 = vmov 84  }
 0x161   :  { %1005 = vperm.xlu1 %1750, %v2570_v2   ;;  %v679_v48 = vpop.permute.xlu1 %678 }
 0x162   :  { %v685_v47 = vsel %vm2730_vm2, %v679_v48, 0.0  ;;  %vm2776_vm5 = vcmp.eq.s32.totalorder %v726_v32, 1  ;;  %v1890_v32 = vmov 67  }
 0x163   :  { %v687_v31 = vadd.f32 %v685_v47, %v2669_v14 }
 0x165   :  { %1751 = vset.pattern.permute.xlu1 %v3462_v25  ;;  %v683_v33 = vpop.permute.xlu1 %682  ;;  %v794_v25 = vrot.slane %v2150_v4, %v2782_v61 }
 0x166   :  { %v686_v11 = vsel %vm2730_vm2, %v683_v33, 0.0  ;;  %1018 = vperm.xlu1 %1751, %v2594_v60   ;;  %v1884_v33 = vmov 61  }
 0x167   :  { %v688_v63 = vadd.f32 %v686_v11, %v654_v44  ;;  %v771_v44 = vsel %vm2770_vm4, %v768_v10, 0.0  ;;  %vm2797_vm6 = vcmp.eq.s32.totalorder %v794_v25, 1 }
 0x169   :  { %v2740_v5 = vadd.f32 %v720_v37, %v688_v63  ;;  %v1885_v37 = vmov 83   ;;  %v798_v63 = vpop.permute.xlu0 %797 }
 0x16a   :  { %1753 = vset.pattern.permute.xlu1 %v1881_v35  ;;  %v700_v21 = vpop.permute.xlu1 %699  ;;  %1794 = vset.pattern.permute.xlu0 %v1885_v37  ;;  %v804_v1 = vsel %vm2797_vm6, %v798_v63, 0.0  ;;  %v862_v63 = vrot.slane %v3422_v23, %v2782_v61 }
 0x16b   :  { %1035 = vperm.xlu1 %1753, %v2594_v60   ;;  %v703_v36 = vsel %vm2702_vm0, %v700_v21, 0.0  ;;  %1460 = vperm.xlu0 %1794, %v2594_v60  }
 0x16c   :  { %v705_v45 = vadd.f32 %v703_v36, %v2694_v24  ;;  %vm2865_vm10 = vcmp.eq.s32.totalorder %v862_v63, 1 }
 0x16f   :  { %1039 = vperm.xlu1 %1753, %v2570_v2   ;;  %v713_v41 = vpop.permute.xlu1 %712  ;;  %1797 = vset.pattern.permute.xlu0 %v1886_v22 }
 0x170   :  { %v719_v28 = vsel %vm2724_vm1, %v713_v41, 0.0  ;;  %v811_v41 = vrot.slane %v2122_v26, %v2782_v61  ;;  %1481 = vperm.xlu0 %1797, %v2570_v2  }
 0x171   :  { %v721_v34 = vadd.f32 %v719_v28, %v687_v31 }
 0x172   :  { %vm2819_vm7 = vcmp.eq.s32.totalorder %v811_v41, 1 }
 0x173   :  { %v2761_v3 = vadd.f32 %v753_v40, %v721_v34  ;;  %1755 = vset.pattern.permute.xlu1 %v3465_v50  ;;  %v777_v40 = vrot.slane %v2225_v6, %v2613_v0  ;;  %v819_v50 = vpop.permute.xlu0 %818 }
 0x174   :  { %1056 = vperm.xlu1 %1755, %v2570_v2   ;;  %v730_v14 = vpop.permute.xlu1 %729  ;;  %v822_v36 = vsel %vm2819_vm7, %v819_v50, 0.0 }
 0x175   :  { %v736_v11 = vsel %vm2776_vm5, %v730_v14, 0.0  ;;  %vm2825_vm8 = vcmp.eq.s32.totalorder %v777_v40, 1  ;;  %v3482_v14 = vmov 0  }
 0x176   :  { %v738_v35 = vadd.f32 %v736_v11, %v2715_v18 }
 0x178   :  { %1756 = vset.pattern.permute.xlu1 %v1862_v56  ;;  %v734_v52 = vpop.permute.xlu1 %733 }
 0x179   :  { %v737_v58 = vsel %vm2776_vm5, %v734_v52, 0.0  ;;  %1069 = vperm.xlu1 %1756, %v2594_v60   ;;  %v1888_v52 = vmov 86  }
 0x17a   :  { %v739_v13 = vadd.f32 %v737_v58, %v705_v45  ;;  %v1887_v45 = vmov 64   ;;  %1799 = vset.pattern.permute.xlu0 %v1888_v52  ;;  %v849_v58 = vpop.permute.xlu0 %848 }
 0x17b   :  { %1511 = vperm.xlu0 %1799, %v2594_v60  }
 0x17c   :  { %v2789_v24 = vadd.f32 %v771_v44, %v739_v13 }
 0x17d   :  { %1758 = vset.pattern.permute.xlu1 %v1884_v33  ;;  %v751_v56 = vpop.permute.xlu1 %750 }
 0x17e   :  { %1086 = vperm.xlu1 %1758, %v2594_v60   ;;  %v754_v34 = vsel %vm2748_vm3, %v751_v56, 0.0 }
 0x182   :  { %1090 = vperm.xlu1 %1758, %v2570_v2   ;;  %v764_v21 = vpop.permute.xlu1 %763 }
 0x183   :  { %v770_v47 = vsel %vm2770_vm4, %v764_v21, 0.0  ;;  %v828_v21 = vrot.slane %v2181_v30, %v2782_v61 }
 0x184   :  { %v772_v31 = vadd.f32 %v770_v47, %v738_v35 }
 0x185   :  { %vm2871_vm11 = vcmp.eq.s32.totalorder %v828_v21, 1 }
 0x186   :  { %v2810_v28 = vadd.f32 %v804_v1, %v772_v31  ;;  %1760 = vset.pattern.permute.xlu1 %v1864_v8  ;;  %v756_v8 = vadd.f32 %v754_v34, %v2740_v5  ;;  %v845_v5 = vrot.slane %v2104_v20, %v2782_v61  ;;  %v1889_v1 = vmov 87   ;;  %v870_v31 = vpop.permute.xlu0 %869 }
 0x187   :  { %1107 = vperm.xlu1 %1760, %v2570_v2   ;;  %v781_v18 = vpop.permute.xlu1 %780  ;;  %1802 = vset.pattern.permute.xlu0 %v1889_v1  ;;  %v873_v34 = vsel %vm2865_vm10, %v870_v31, 0.0 }
 0x188   :  { %vm2843_vm9 = vcmp.eq.s32.totalorder %v845_v5, 1  ;;  %1532 = vperm.xlu0 %1802, %v2570_v2  }
 0x189   :  { %v855_v56 = vsel %vm2843_vm9, %v849_v58, 0.0 }
 0x18b   :  { %1761 = vset.pattern.permute.xlu1 %v1865_v42  ;;  %v785_v0 = vpop.permute.xlu1 %784  ;;  %v787_v42 = vsel %vm2825_vm8, %v781_v18, 0.0 }
 0x18c   :  { %v788_v62 = vsel %vm2825_vm8, %v785_v0, 0.0  ;;  %1120 = vperm.xlu1 %1761, %v2594_v60   ;;  %v789_v13 = vadd.f32 %v787_v42, %v2761_v3  ;;  %1804 = vset.pattern.permute.xlu0 %v3482_v14 }
 0x18d   :  { %v790_v10 = vadd.f32 %v788_v62, %v756_v8  ;;  %v900_v62 = vpop.permute.xlu0 %899 }
 0x18f   :  { %v2835_v48 = vadd.f32 %v822_v36, %v790_v10 }
 0x190   :  { %1763 = vset.pattern.permute.xlu1 %v1887_v45  ;;  %v802_v17 = vpop.permute.xlu1 %801 }
 0x191   :  { %1137 = vperm.xlu1 %1763, %v2594_v60   ;;  %v805_v47 = vsel %vm2797_vm6, %v802_v17, 0.0  ;;  %v921_v44 = vpop.permute.xlu0 %920 }
 0x195   :  { %1141 = vperm.xlu1 %1763, %v2570_v2   ;;  %v815_v25 = vpop.permute.xlu1 %814 }
 0x196   :  { %v821_v33 = vsel %vm2819_vm7, %v815_v25, 0.0 }
 0x197   :  { %v823_v11 = vadd.f32 %v821_v33, %v789_v13 }
 0x199   :  { %v2856_v35 = vadd.f32 %v855_v56, %v823_v11  ;;  %1765 = vset.pattern.permute.xlu1 %v1867_v38  ;;  %v807_v38 = vadd.f32 %v805_v47, %v2789_v24  ;;  %v896_v24 = vrot.slane %v2219_v53, %v2782_v61  ;;  %v879_v11 = vrot.slane %v2125_v27, %v2782_v61 }
 0x19a   :  { %1158 = vperm.xlu1 %1765, %v2570_v2   ;;  %v832_v3 = vpop.permute.xlu1 %831 }
 0x19b   :  { %vm2887_vm12 = vcmp.eq.s32.totalorder %v896_v24, 1  ;;  %vm2913_vm13 = vcmp.eq.s32.totalorder %v879_v11, 1 }
 0x19c   :  { %v906_v17 = vsel %vm2887_vm12, %v900_v62, 0.0  ;;  %v964_v62 = vrot.slane %v2225_v6, %v2782_v61 }
 0x19e   :  { %1766 = vset.pattern.permute.xlu1 %v1868_v39  ;;  %v836_v12 = vpop.permute.xlu1 %835  ;;  %v838_v39 = vsel %vm2871_vm11, %v832_v3, 0.0  ;;  %v930_v3 = vrot.slane %v2222_v15, %v2782_v61  ;;  %vm2959_vm1 = vcmp.eq.s32.totalorder %v964_v62, 1 }
 0x19f   :  { %v839_v40 = vsel %vm2871_vm11, %v836_v12, 0.0  ;;  %1171 = vperm.xlu1 %1766, %v2594_v60   ;;  %v840_v10 = vadd.f32 %v838_v39, %v2810_v28  ;;  %v1891_v28 = vmov 70  }
 0x1a0   :  { %v841_v50 = vadd.f32 %v839_v40, %v807_v38  ;;  %vm2927_vm15 = vcmp.eq.s32.totalorder %v930_v3, 1 }
 0x1a2   :  { %v875_v8 = vadd.f32 %v873_v34, %v841_v50  ;;  %v947_v34 = vrot.slane %v2144_v46, %v2782_v61 }
 0x1a3   :  { %1768 = vset.pattern.permute.xlu1 %v1890_v32  ;;  %v853_v0 = vpop.permute.xlu1 %852  ;;  %v1892_v32 = vmov 73  }
 0x1a4   :  { %1188 = vperm.xlu1 %1768, %v2594_v60   ;;  %vm2938_vm0 = vcmp.eq.s32.totalorder %v947_v34, 1 }
 0x1a8   :  { %1192 = vperm.xlu1 %1768, %v2570_v2   ;;  %v866_v5 = vpop.permute.xlu1 %865 }
 0x1a9   :  { %v872_v45 = vsel %vm2865_vm10, %v866_v5, 0.0 }
 0x1aa   :  { %v874_v42 = vadd.f32 %v872_v45, %v840_v10  ;;  %v2952_v45 = vsub.s32 5, %v2095_v16 }
 0x1ac   :  { %v908_v58 = vadd.f32 %v906_v17, %v874_v42  ;;  %1770 = vset.pattern.permute.xlu1 %v1870_v49  ;;  %v913_v49 = vrot.slane %v2132_v29, %v2782_v61  ;;  %v981_v61 = vrot.slane %v2150_v4, %v2952_v45 }
 0x1ad   :  { %1209 = vperm.xlu1 %1770, %v2570_v2   ;;  %v883_v13 = vpop.permute.xlu1 %882 }
 0x1ae   :  { %vm2922_vm14 = vcmp.eq.s32.totalorder %v913_v49, 1  ;;  %v889_v39 = vsel %vm2913_vm13, %v883_v13, 0.0  ;;  %v951_v13 = vpop.permute.xlu0 %950  ;;  %vm982_vm2 = vcmp.eq.s32.totalorder %v981_v61, 1 }
 0x1af   :  { %v924_v50 = vsel %vm2922_vm14, %v921_v44, 0.0  ;;  %v891_v42 = vadd.f32 %v889_v39, %v2856_v35 }
 0x1b1   :  { %1771 = vset.pattern.permute.xlu1 %v1871_v19  ;;  %v887_v25 = vpop.permute.xlu1 %886  ;;  %v856_v19 = vsel %vm2843_vm9, %v853_v0, 0.0 }
 0x1b2   :  { %1222 = vperm.xlu1 %1771, %v2594_v60   ;;  %v890_v31 = vsel %vm2913_vm13, %v887_v25, 0.0 }
 0x1b6   :  { %1773 = vset.pattern.permute.xlu1 %v1891_v28  ;;  %v904_v33 = vpop.permute.xlu1 %903 }
 0x1b7   :  { %1239 = vperm.xlu1 %1773, %v2594_v60   ;;  %v907_v47 = vsel %vm2887_vm12, %v904_v33, 0.0 }
 0x1b8   :  { %v909_v38 = vadd.f32 %v907_v47, %v875_v8  ;;  %v972_v47 = vpop.permute.xlu0 %971 }
 0x1b9   :  { %v975_v44 = vsel %vm2959_vm1, %v972_v47, 0.0 }
 0x1bb   :  { %1243 = vperm.xlu1 %1773, %v2570_v2   ;;  %v917_v56 = vpop.permute.xlu1 %916 }
 0x1bc   :  { %v923_v17 = vsel %vm2922_vm14, %v917_v56, 0.0  ;;  %v957_v56 = vsel %vm2938_vm0, %v951_v13, 0.0 }
 0x1bd   :  { %v925_v11 = vadd.f32 %v923_v17, %v891_v42  ;;  %v1049_v42 = vrot.slane %v3422_v23, %v2952_v45 }
 0x1bf   :  { %1775 = vset.pattern.permute.xlu1 %v1873_v7  ;;  %v858_v7 = vadd.f32 %v856_v19, %v2835_v48  ;;  %v959_v19 = vadd.f32 %v957_v56, %v925_v11  ;;  %vm3004_vm6 = vcmp.eq.s32.totalorder %v1049_v42, 1 }
 0x1c0   :  { %1260 = vperm.xlu1 %1775, %v2570_v2   ;;  %v934_v63 = vpop.permute.xlu1 %933 }
 0x1c1   :  { %v892_v40 = vadd.f32 %v890_v31, %v858_v7  ;;  %v940_v10 = vsel %vm2927_vm15, %v934_v63, 0.0  ;;  %v998_v31 = vrot.slane %v2122_v26, %v2952_v45 }
 0x1c2   :  { %v942_v33 = vadd.f32 %v940_v10, %v908_v58 }
 0x1c3   :  { %v926_v24 = vadd.f32 %v924_v50, %v892_v40  ;;  %vm2976_vm3 = vcmp.eq.s32.totalorder %v998_v31, 1  ;;  %v1032_v50 = vrot.slane %v2104_v20, %v2952_v45 }
 0x1c4   :  { %1776 = vset.pattern.permute.xlu1 %v1874_v51  ;;  %v938_v18 = vpop.permute.xlu1 %937 }
 0x1c5   :  { %v941_v48 = vsel %vm2927_vm15, %v938_v18, 0.0  ;;  %1273 = vperm.xlu1 %1776, %v2594_v60   ;;  %v1893_v18 = vmov 76   ;;  %vm1033_vm5 = vcmp.eq.s32.totalorder %v1032_v50, 1 }
 0x1c6   :  { %v943_v8 = vadd.f32 %v941_v48, %v909_v38  ;;  %v1002_v48 = vpop.permute.xlu0 %1001 }
 0x1c8   :  { %v977_v41 = vadd.f32 %v975_v44, %v943_v8 }
 0x1c9   :  { %1778 = vset.pattern.permute.xlu1 %v1892_v32  ;;  %v955_v0 = vpop.permute.xlu1 %954  ;;  %v1008_v32 = vsel %vm2976_vm3, %v1002_v48, 0.0  ;;  %v1895_v48 = vmov 82  }
 0x1ca   :  { %v958_v36 = vsel %vm2938_vm0, %v955_v0, 0.0  ;;  %1290 = vperm.xlu1 %1778, %v2594_v60  }
 0x1cb   :  { %v960_v5 = vadd.f32 %v958_v36, %v926_v24 }
 0x1ce   :  { %1294 = vperm.xlu1 %1778, %v2570_v2   ;;  %v968_v28 = vpop.permute.xlu1 %967 }
 0x1cf   :  { %v974_v49 = vsel %vm2959_vm1, %v968_v28, 0.0 }
 0x1d0   :  { %v976_v35 = vadd.f32 %v974_v49, %v942_v33  ;;  %v1894_v33 = vmov 79  }
 0x1d2   :  { %1780 = vset.pattern.permute.xlu1 %v1876_v43  ;;  %v1010_v39 = vadd.f32 %v1008_v32, %v976_v35  ;;  %v1134_v32 = vrot.slane %v2144_v46, %v2952_v45 }
 0x1d3   :  { %1311 = vperm.xlu1 %1780, %v2570_v2   ;;  %v985_v63 = vpop.permute.xlu1 %984 }
 0x1d4   :  { %v991_v3 = vsel %vm982_vm2, %v985_v63, 0.0  ;;  %vm1135_vm11 = vcmp.eq.s32.totalorder %v1134_v32, 1 }
 0x1d5   :  { %v993_v21 = vadd.f32 %v991_v3, %v959_v19  ;;  %v1083_v19 = vrot.slane %v2219_v53, %v2952_v45 }
 0x1d7   :  { %1781 = vset.pattern.permute.xlu1 %v1877_v59  ;;  %v989_v58 = vpop.permute.xlu1 %988  ;;  %v1015_v59 = vrot.slane %v2181_v30, %v2952_v45  ;;  %vm1084_vm8 = vcmp.eq.s32.totalorder %v1083_v19, 1 }
 0x1d8   :  { %v992_v7 = vsel %vm982_vm2, %v989_v58, 0.0  ;;  %1324 = vperm.xlu1 %1781, %v2594_v60  }
 0x1d9   :  { %v994_v43 = vadd.f32 %v992_v7, %v960_v5  ;;  %vm2987_vm4 = vcmp.eq.s32.totalorder %v1015_v59, 1  ;;  %v1023_v5 = vpop.permute.xlu0 %1022 }
 0x1da   :  { %v1026_v61 = vsel %vm2987_vm4, %v1023_v5, 0.0 }
 0x1db   :  { %v1028_v25 = vadd.f32 %v1026_v61, %v994_v43 }
 0x1dc   :  { %1783 = vset.pattern.permute.xlu1 %v1893_v18  ;;  %v1006_v12 = vpop.permute.xlu1 %1005  ;;  %v1100_v18 = vrot.slane %v2132_v29, %v2952_v45 }
 0x1dd   :  { %v1009_v40 = vsel %vm2976_vm3, %v1006_v12, 0.0  ;;  %1341 = vperm.xlu1 %1783, %v2594_v60   ;;  %v1053_v35 = vpop.permute.xlu0 %1052 }
 0x1de   :  { %v1011_v34 = vadd.f32 %v1009_v40, %v977_v41  ;;  %v1059_v47 = vsel %vm3004_vm6, %v1053_v35, 0.0  ;;  %vm3032_vm9 = vcmp.eq.s32.totalorder %v1100_v18, 1 }
 0x1e1   :  { %1345 = vperm.xlu1 %1783, %v2570_v2   ;;  %v1019_v24 = vpop.permute.xlu1 %1018  ;;  %v1074_v41 = vpop.permute.xlu0 %1073 }
 0x1e2   :  { %v1025_v51 = vsel %vm2987_vm4, %v1019_v24, 0.0 }
 0x1e3   :  { %v1027_v0 = vadd.f32 %v1025_v51, %v993_v21 }
 0x1e5   :  { %1785 = vset.pattern.permute.xlu1 %v1879_v9  ;;  %v1061_v31 = vadd.f32 %v1059_v47, %v1027_v0  ;;  %v1104_v51 = vpop.permute.xlu0 %1103 }
 0x1e6   :  { %1362 = vperm.xlu1 %1785, %v2570_v2   ;;  %v1036_v62 = vpop.permute.xlu1 %1035 }
 0x1e7   :  { %v1042_v36 = vsel %vm1033_vm5, %v1036_v62, 0.0 }
 0x1e8   :  { %v1044_v10 = vadd.f32 %v1042_v36, %v1010_v39  ;;  %v1110_v36 = vsel %vm3032_vm9, %v1104_v51, 0.0 }
 0x1e9   :  { %v1125_v61 = vpop.permute.xlu0 %1124 }
 0x1ea   :  { %1786 = vset.pattern.permute.xlu1 %v1880_v57  ;;  %v1040_v17 = vpop.permute.xlu1 %1039  ;;  %v1066_v57 = vrot.slane %v2125_v27, %v2952_v45 }
 0x1eb   :  { %v1043_v13 = vsel %vm1033_vm5, %v1040_v17, 0.0  ;;  %1375 = vperm.xlu1 %1786, %v2594_v60  }
 0x1ec   :  { %v1045_v9 = vadd.f32 %v1043_v13, %v1011_v34  ;;  %vm3015_vm7 = vcmp.eq.s32.totalorder %v1066_v57, 1 }
 0x1ed   :  { %v1077_v59 = vsel %vm3015_vm7, %v1074_v41, 0.0  ;;  %v1155_v63 = vpop.permute.xlu0 %1154 }
 0x1ee   :  { %v1079_v40 = vadd.f32 %v1077_v59, %v1045_v9 }
 0x1ef   :  { %1788 = vset.pattern.permute.xlu1 %v1894_v33  ;;  %v1057_v11 = vpop.permute.xlu1 %1056 }
 0x1f0   :  { %v1060_v49 = vsel %vm3004_vm6, %v1057_v11, 0.0  ;;  %1392 = vperm.xlu1 %1788, %v2594_v60   ;;  %v3061_v11 = vsub.s32 6, %v2095_v16 }
 0x1f1   :  { %v1062_v56 = vadd.f32 %v1060_v49, %v1028_v25  ;;  %v1151_v25 = vrot.slane %v2225_v6, %v2952_v45  ;;  %v1176_v18 = vpop.permute.xlu0 %1175 }
 0x1f2   :  { %v1202_v59 = vrot.slane %v2181_v30, %v3061_v11  ;;  %v1236_v51 = vrot.slane %v3422_v23, %v3061_v11  ;;  %v1270_v49 = vrot.slane %v2219_v53, %v3061_v11 }
 0x1f3   :  { %vm3063_vm12 = vcmp.eq.s32.totalorder %v1151_v25, 1 }
 0x1f4   :  { %1396 = vperm.xlu1 %1788, %v2570_v2   ;;  %v1070_v3 = vpop.permute.xlu1 %1069  ;;  %vm3094_vm15 = vcmp.eq.s32.totalorder %v1202_v59, 1  ;;  %vm1237_vm1 = vcmp.eq.s32.totalorder %v1236_v51, 1  ;;  %vm3130_vm3 = vcmp.eq.s32.totalorder %v1270_v49, 1 }
 0x1f5   :  { %v1076_v21 = vsel %vm3015_vm7, %v1070_v3, 0.0  ;;  %v1185_v3 = vrot.slane %v2122_v26, %v3061_v11 }
 0x1f6   :  { %v1078_v58 = vadd.f32 %v1076_v21, %v1044_v10 }
 0x1f7   :  { %vm1186_vm14 = vcmp.eq.s32.totalorder %v1185_v3, 1 }
 0x1f8   :  { %1790 = vset.pattern.permute.xlu1 %v1882_v55  ;;  %v1112_v5 = vadd.f32 %v1110_v36, %v1078_v58 }
 0x1f9   :  { %1413 = vperm.xlu1 %1790, %v2570_v2   ;;  %v1087_v7 = vpop.permute.xlu1 %1086 }
 0x1fa   :  { %v1093_v44 = vsel %vm1084_vm8, %v1087_v7, 0.0 }
 0x1fb   :  { %v1095_v43 = vadd.f32 %v1093_v44, %v1061_v31  ;;  %v1161_v31 = vsel %vm3063_vm12, %v1155_v63, 0.0 }
 0x1fd   :  { %1791 = vset.pattern.permute.xlu1 %v1883_v54  ;;  %v1091_v38 = vpop.permute.xlu1 %1090  ;;  %v1117_v54 = vrot.slane %v2222_v15, %v2952_v45  ;;  %v1168_v45 = vrot.slane %v2150_v4, %v3061_v11 }
 0x1fe   :  { %v1094_v12 = vsel %vm1084_vm8, %v1091_v38, 0.0  ;;  %1426 = vperm.xlu1 %1791, %v2594_v60  }
 0x1ff   :  { %v1096_v55 = vadd.f32 %v1094_v12, %v1062_v56  ;;  %vm3043_vm10 = vcmp.eq.s32.totalorder %v1117_v54, 1  ;;  %vm3074_vm13 = vcmp.eq.s32.totalorder %v1168_v45, 1 }
 0x200   :  { %v1128_v33 = vsel %vm3043_vm10, %v1125_v61, 0.0  ;;  %v1253_v61 = vrot.slane %v2125_v27, %v3061_v11 }
 0x201   :  { %v1130_v57 = vadd.f32 %v1128_v33, %v1096_v55 }
 0x202   :  { %1793 = vset.pattern.permute.xlu1 %v1895_v48  ;;  %v1108_v50 = vpop.permute.xlu1 %1107  ;;  %vm3122_vm2 = vcmp.eq.s32.totalorder %v1253_v61, 1 }
 0x203   :  { %v1111_v8 = vsel %vm3032_vm9, %v1108_v50, 0.0  ;;  %1443 = vperm.xlu1 %1793, %v2594_v60   ;;  %v1219_v50 = vrot.slane %v2104_v20, %v3061_v11 }
 0x204   :  { %v1113_v24 = vadd.f32 %v1111_v8, %v1079_v40  ;;  %v1179_v40 = vsel %vm3074_vm13, %v1176_v18, 0.0  ;;  %v18_v8 = vld [vmem:[%s3342_s2 + $0x8] sm:$0xff] }
 0x205   :  { %vm3108_vm0 = vcmp.eq.s32.totalorder %v1219_v50, 1  ;;  %v1287_v50 = vrot.slane %v2132_v29, %v3061_v11 }
 0x207   :  { %1447 = vperm.xlu1 %1793, %v2570_v2   ;;  %v1121_v39 = vpop.permute.xlu1 %1120  ;;  %vm3175_vm4 = vcmp.eq.s32.totalorder %v1287_v50, 1 }
 0x208   :  { %v1127_v62 = vsel %vm3043_vm10, %v1121_v39, 0.0 }
 0x209   :  { %v1129_v10 = vadd.f32 %v1127_v62, %v1095_v43 }
 0x20b   :  { %1795 = vset.pattern.permute.xlu1 %v1885_v37  ;;  %v1163_v44 = vadd.f32 %v1161_v31, %v1129_v10 }
 0x20c   :  { %1464 = vperm.xlu1 %1795, %v2570_v2   ;;  %v1138_v17 = vpop.permute.xlu1 %1137 }
 0x20d   :  { %v1144_v42 = vsel %vm1135_vm11, %v1138_v17, 0.0 }
 0x20e   :  { %v1146_v13 = vadd.f32 %v1144_v42, %v1112_v5 }
 0x210   :  { %1796 = vset.pattern.permute.xlu1 %v1886_v22  ;;  %v1142_v9 = vpop.permute.xlu1 %1141  ;;  %v1896_v22 = vmov 85  }
 0x211   :  { %v1145_v28 = vsel %vm1135_vm11, %v1142_v9, 0.0  ;;  %1477 = vperm.xlu1 %1796, %v2594_v60  }
 0x212   :  { %v1147_v37 = vadd.f32 %v1145_v28, %v1113_v24  ;;  %v1206_v24 = vpop.permute.xlu0 %1205 }
 0x213   :  { %v1212_v39 = vsel %vm3094_vm15, %v1206_v24, 0.0  ;;  %v1304_v24 = vrot.slane %v2222_v15, %v3061_v11 }
 0x214   :  { %v1181_v34 = vadd.f32 %v1179_v40, %v1147_v37 }
 0x215   :  { %1798 = vset.pattern.permute.xlu1 %v1896_v22  ;;  %v1159_v56 = vpop.permute.xlu1 %1158  ;;  %vm3189_vm6 = vcmp.eq.s32.totalorder %v1304_v24, 1 }
 0x216   :  { %v1162_v35 = vsel %vm3063_vm12, %v1159_v56, 0.0  ;;  %1494 = vperm.xlu1 %1798, %v2594_v60   ;;  %v1227_v42 = vpop.permute.xlu0 %1226 }
 0x217   :  { %v1164_v19 = vadd.f32 %v1162_v35, %v1130_v57  ;;  %v1230_v25 = vsel %vm3108_vm0, %v1227_v42, 0.0 }
 0x21a   :  { %1498 = vperm.xlu1 %1798, %v2570_v2   ;;  %v1172_v47 = vpop.permute.xlu1 %1171 }
 0x21b   :  { %v1178_v58 = vsel %vm3074_vm13, %v1172_v47, 0.0 }
 0x21c   :  { %v1180_v7 = vadd.f32 %v1178_v58, %v1146_v13 }
 0x21e   :  { %1800 = vset.pattern.permute.xlu1 %v1888_v52  ;;  %v1214_v36 = vadd.f32 %v1212_v39, %v1180_v7  ;;  %v1338_v39 = vrot.slane %v2225_v6, %v3061_v11 }
 0x21f   :  { %1515 = vperm.xlu1 %1800, %v2570_v2   ;;  %v1189_v43 = vpop.permute.xlu1 %1188  ;;  %v17_v2 = vld [vmem:[%s3342_s2] sm:$0xff] }
 0x220   :  { %v1195_v41 = vsel %vm1186_vm14, %v1189_v43, 0.0  ;;  %vm3219_vm8 = vcmp.eq.s32.totalorder %v1338_v39, 1 }
 0x221   :  { %v1197_v38 = vadd.f32 %v1195_v41, %v1163_v44  ;;  %v1257_v41 = vpop.permute.xlu0 %1256 }
 0x222   :  { %v1263_v61 = vsel %vm3122_vm2, %v1257_v41, 0.0 }
 0x223   :  { %1801 = vset.pattern.permute.xlu1 %v1889_v1  ;;  %v1193_v12 = vpop.permute.xlu1 %1192 }
 0x224   :  { %v1196_v55 = vsel %vm1186_vm14, %v1193_v12, 0.0  ;;  %1528 = vperm.xlu1 %1801, %v2594_v60  }
 0x225   :  { %v1198_v52 = vadd.f32 %v1196_v55, %v1164_v19  ;;  %v1278_v18 = vpop.permute.xlu0 %1277 }
 0x227   :  { %v1232_v33 = vadd.f32 %v1230_v25, %v1198_v52 }
 0x228   :  { %1803 = vset.pattern.permute.xlu1 %v3482_v14  ;;  %v1210_v1 = vpop.permute.xlu1 %1209 }
 0x229   :  { %v1213_v60 = vsel %vm3094_vm15, %v1210_v1, 0.0  ;;  %1545 = vperm.xlu1 %1803, %v17_v2   ;;  %v3148_v59 = vpop.permute.xlu0 %1307  ;;  %v3161_v1 = vsub.s32 7, %v2095_v16 }
 0x22a   :  { %v1215_v54 = vadd.f32 %v1213_v60, %v1181_v34  ;;  %v1321_v60 = vrot.slane %v2144_v46, %v3061_v11 }
 0x22b   :  { %v1355_v51 = vrot.slane %v2150_v4, %v3161_v1  ;;  %v1389_v11 = vrot.slane %v2181_v30, %v3161_v1  ;;  %v1491_v24 = vrot.slane %v2222_v15, %v3161_v1 }
 0x22c   :  { %vm3183_vm5 = vcmp.eq.s32.totalorder %v1321_v60, 1 }
 0x22d   :  { %1550 = vperm.xlu1 %1803, %v18_v8   ;;  %v1223_v14 = vpop.permute.xlu1 %1222  ;;  %v1329_v40 = vpop.permute.xlu0 %1328  ;;  %vm3193_vm7 = vcmp.eq.s32.totalorder %v1355_v51, 1  ;;  %vm3240_vm11 = vcmp.eq.s32.totalorder %v1389_v11, 1 }
 0x22e   :  { %v1229_v0 = vsel %vm3108_vm0, %v1223_v14, 0.0  ;;  %v1281_v14 = vsel %vm3130_vm3, %v1278_v18, 0.0  ;;  %vm3307_vm0 = vcmp.eq.s32.totalorder %v1491_v24, 1 }
 0x22f   :  { %v3116_v62 = vadd.f32 %v1229_v0, %v1197_v38 }
 0x231   :  { %v3154_v2 = vpop.permute.xlu0 %1358 }
 0x232   :  { %v1240_v10 = vpop.permute.xlu1 %1239  ;;  %v1365_v30 = vsel %vm3193_vm7, %v3154_v2, 0.0 }
 0x233   :  { %v1246_v5 = vsel %vm1237_vm1, %v1240_v10, 0.0  ;;  %v1508_v10 = vrot.slane %v2144_v46, %v3161_v1 }
 0x234   :  { %v1248_v17 = vadd.f32 %v1246_v5, %v1214_v36  ;;  %v1372_v5 = vrot.slane %v2122_v26, %v3161_v1  ;;  %v1423_v26 = vrot.slane %v3422_v23, %v3161_v1 }
 0x235   :  { %v3156_v34 = vpop.permute.xlu0 %1379 }
 0x236   :  { %v1244_v13 = vpop.permute.xlu1 %1243  ;;  %vm3227_vm9 = vcmp.eq.s32.totalorder %v1372_v5, 1  ;;  %vm3249_vm12 = vcmp.eq.s32.totalorder %v1423_v26, 1 }
 0x237   :  { %v1247_v9 = vsel %vm1237_vm1, %v1244_v13, 0.0 }
 0x238   :  { %v1249_v28 = vadd.f32 %v1247_v9, %v1215_v54  ;;  %v1332_v9 = vsel %vm3183_vm5, %v1329_v40, 0.0  ;;  %v1440_v40 = vrot.slane %v2125_v27, %v3161_v1 }
 0x239   :  { %v3167_v54 = vpop.permute.xlu0 %1409 }
 0x23a   :  { %vm3288_vm14 = vcmp.eq.s32.totalorder %v1440_v40, 1 }
 0x23b   :  { %v1261_v57 = vpop.permute.xlu1 %1260 }
 0x23c   :  { %v1264_v22 = vsel %vm3122_vm2, %v1261_v57, 0.0  ;;  %vm1509_vm2 = vcmp.eq.s32.totalorder %v1508_v10, 1 }
 0x23d   :  { %v1266_v56 = vadd.f32 %v1264_v22, %v1232_v33  ;;  %v1431_v36 = vpop.permute.xlu0 %1430  ;;  %v1283_v33 = vadd.f32 %v1281_v14, %v1249_v28 }
 0x23e   :  { %v1434_v27 = vsel %vm3249_vm12, %v1431_v36, 0.0 }
 0x240   :  { %v1274_v35 = vpop.permute.xlu1 %1273 }
 0x241   :  { %v1280_v19 = vsel %vm3130_vm3, %v1274_v35, 0.0  ;;  %v3223_v57 = vpop.permute.xlu0 %1460 }
 0x242   :  { %v3136_v63 = vadd.f32 %v1280_v19, %v1248_v17  ;;  %v1406_v17 = vrot.slane %v2104_v20, %v3161_v1  ;;  %v1314_v20 = vsel %vm3189_vm6, %v3148_v59, 0.0 }
 0x244   :  { %vm3233_vm10 = vcmp.eq.s32.totalorder %v1406_v17, 1 }
 0x245   :  { %v3138_v3 = vpop.permute.xlu1 %1290  ;;  %v1416_v50 = vsel %vm3233_vm10, %v3167_v54, 0.0 }
 0x249   :  { %v1295_v21 = vpop.permute.xlu1 %1294 }
 0x24a   :  { %v1298_v16 = vsel %vm3175_vm4, %v1295_v21, 0.0 }
 0x24b   :  { %v1300_v13 = vadd.f32 %v1298_v16, %v1266_v56  ;;  %v1297_v56 = vsel %vm3175_vm4, %v3138_v3, 0.0  ;;  %v1457_v3 = vrot.slane %v2219_v53, %v3161_v1  ;;  %v1474_v53 = vrot.slane %v2132_v29, %v3161_v1 }
 0x24c   :  { %v1525_v29 = vrot.slane %v2225_v6, %v3161_v1 }
 0x24d   :  { %v1334_v45 = vadd.f32 %v1332_v9, %v1300_v13  ;;  %vm3284_vm13 = vcmp.eq.s32.totalorder %v1457_v3, 1  ;;  %vm3295_vm15 = vcmp.eq.s32.totalorder %v1474_v53, 1 }
 0x24e   :  { %v1312_v47 = vpop.permute.xlu1 %1311  ;;  %vm3311_vm1 = vcmp.eq.s32.totalorder %v1525_v29, 1  ;;  %v1467_v37 = vsel %vm3284_vm13, %v3223_v57, 0.0 }
 0x24f   :  { %v1315_v25 = vsel %vm3189_vm6, %v1312_v47, 0.0  ;;  %v1265_v47 = vadd.f32 %v1263_v61, %v3116_v62  ;;  %v1482_v62 = vpop.permute.xlu0 %1481 }
 0x250   :  { %v1317_v35 = vadd.f32 %v1315_v25, %v1283_v33  ;;  %v1485_v25 = vsel %vm3295_vm15, %v1482_v62, 0.0 }
 0x251   :  { %v1299_v2 = vadd.f32 %v1297_v56, %v1265_v47 }
 0x253   :  { %v3140_v58 = vpop.permute.xlu1 %1324 }
 0x254   :  { %v1331_v41 = vsel %vm3183_vm5, %v3140_v58, 0.0 }
 0x255   :  { %v1333_v51 = vadd.f32 %v1331_v41, %v1299_v2 }
 0x257   :  { %v1367_v5 = vadd.f32 %v1365_v30, %v1333_v51 }
 0x258   :  { %v3142_v31 = vpop.permute.xlu1 %1341 }
 0x259   :  { %v1348_v58 = vsel %vm3219_vm8, %v3142_v31, 0.0 }
 0x25c   :  { %v1346_v7 = vpop.permute.xlu1 %1345 }
 0x25d   :  { %v1349_v49 = vsel %vm3219_vm8, %v1346_v7, 0.0 }
 0x25e   :  { %v1351_v18 = vadd.f32 %v1349_v49, %v1317_v35 }
 0x261   :  { %v1363_v44 = vpop.permute.xlu1 %1362 }
 0x262   :  { %v1366_v28 = vsel %vm3193_vm7, %v1363_v44, 0.0 }
 0x263   :  { %v1368_v59 = vadd.f32 %v1366_v28, %v1334_v45 }
 0x266   :  { %v3144_v43 = vpop.permute.xlu1 %1375 }
 0x267   :  { %v1382_v31 = vsel %vm3227_vm9, %v3144_v43, 0.0 }
 0x26b   :  { %v3146_v38 = vpop.permute.xlu1 %1392 }
 0x26c   :  { %v1399_v39 = vsel %vm3240_vm11, %v3146_v38, 0.0 }
 0x26d   :  { %v1401_v9 = vadd.f32 %v1399_v39, %v1367_v5 }
 0x26f   :  { %v1397_v12 = vpop.permute.xlu1 %1396 }
 0x270   :  { %v1400_v7 = vsel %vm3240_vm11, %v1397_v12, 0.0  ;;  %v1383_v12 = vsel %vm3227_vm9, %v3156_v34, 0.0  ;;  %v1316_v34 = vadd.f32 %v1314_v20, %v3136_v63  ;;  %v1512_v63 = vpop.permute.xlu0 %1511 }
 0x271   :  { %v1402_v60 = vadd.f32 %v1400_v7, %v1368_v59  ;;  %v1385_v16 = vadd.f32 %v1383_v12, %v1351_v18  ;;  %v1518_v7 = vsel %vm1509_vm2, %v1512_v63, 0.0 }
 0x272   :  { %v1350_v0 = vadd.f32 %v1348_v58, %v1316_v34 }
 0x273   :  { %v1436_v36 = vadd.f32 %v1434_v27, %v1402_v60 }
 0x274   :  { %v3150_v55 = vpop.permute.xlu1 %1413  ;;  %v1384_v17 = vadd.f32 %v1382_v31, %v1350_v0  ;;  %v1533_v1 = vpop.permute.xlu0 %1532 }
 0x275   :  { %v1417_v54 = vsel %vm3233_vm10, %v3150_v55, 0.0 }
 0x276   :  { %v1419_v4 = vadd.f32 %v1417_v54, %v1385_v16  ;;  %v1418_v20 = vadd.f32 %v1416_v50, %v1384_v17 }
 0x279   :  { %v3152_v52 = vpop.permute.xlu1 %1426 }
 0x27a   :  { %v1433_v38 = vsel %vm3249_vm12, %v3152_v52, 0.0  ;;  %v1536_v52 = vsel %vm3311_vm1, %v1533_v1, 0.0 }
 0x27b   :  { %v1435_v30 = vadd.f32 %v1433_v38, %v1401_v9 }
 0x27d   :  { %v1469_v19 = vadd.f32 %v1467_v37, %v1435_v30 }
 0x27e   :  { %v3158_v48 = vpop.permute.xlu1 %1443 }
 0x27f   :  { %v1450_v26 = vsel %vm3288_vm14, %v3158_v48, 0.0 }
 0x280   :  { %v1452_v22 = vadd.f32 %v1450_v26, %v1418_v20 }
 0x282   :  { %v3169_v8 = vpop.permute.xlu1 %1447 }
 0x283   :  { %v1451_v55 = vsel %vm3288_vm14, %v3169_v8, 0.0 }
 0x287   :  { %v3201_v42 = vpop.permute.xlu1 %1464 }
 0x288   :  { %v1468_v43 = vsel %vm3284_vm13, %v3201_v42, 0.0  ;;  %v1453_v42 = vadd.f32 %v1451_v55, %v1419_v4 }
 0x289   :  { %v1470_v61 = vadd.f32 %v1468_v43, %v1436_v36 }
 0x28a   :  { %v1487_v49 = vadd.f32 %v1485_v25, %v1453_v42 }
 0x28c   :  { %v3244_v21 = vpop.permute.xlu1 %1477 }
 0x28d   :  { %v1484_v23 = vsel %vm3295_vm15, %v3244_v21, 0.0 }
 0x28e   :  { %v1486_v47 = vadd.f32 %v1484_v23, %v1452_v22 }
 0x290   :  { %v1520_v18 = vadd.f32 %v1518_v7, %v1486_v47 }
 0x291   :  { %v1495_v32 = vpop.permute.xlu1 %1494 }
 0x292   :  { %v1501_v48 = vsel %vm3307_vm0, %v1495_v32, 0.0 }
 0x293   :  { %v1503_v3 = vadd.f32 %v1501_v48, %v1469_v19 }
 0x295   :  { %v1499_v13 = vpop.permute.xlu1 %1498 }
 0x296   :  { %v1502_v46 = vsel %vm3307_vm0, %v1499_v13, 0.0 }
 0x297   :  { %v1504_v33 = vadd.f32 %v1502_v46, %v1470_v61 }
 0x299   :  { %v1538_v45 = vadd.f32 %v1536_v52, %v1504_v33 }
 0x29a   :  { %v1516_v28 = vpop.permute.xlu1 %1515 }
 0x29b   :  { %v1519_v56 = vsel %vm1509_vm2, %v1516_v28, 0.0 }
 0x29c   :  { %v1521_v35 = vadd.f32 %v1519_v56, %v1487_v49 }
 0x29e   :  { %v1540_v44 = vadd.f32 %v1538_v45, %v1521_v35 }
 0x29f   :  { %v1529_v57 = vpop.permute.xlu1 %1528 }
 0x2a0   :  { %v1535_v41 = vsel %vm3311_vm1, %v1529_v57, 0.0  ;;  %v1542_v2 = vmax.f32 %v1540_v44, 0.0 }
 0x2a1   :  { %v1537_v21 = vadd.f32 %v1535_v41, %v1503_v3 }
 0x2a3   :  { %v1539_v59 = vadd.f32 %v1537_v21, %v1520_v18 }
 0x2a4   :  { %v1546_v40 = vpop.permute.xlu1 %1545 }
 0x2a5   :  { %v1541_v62 = vmax.f32 %v1539_v59, 0.0 }
 0x2a7   :  { %v1553_v50 = vmul.f32 %v1546_v40, %v1541_v62 }
 0x2a8   :  { %v1551_v12 = vpop.permute.xlu1 %1550 }
 0x2a9   :  { %v1554_v53 = vmul.f32 %v1551_v12, %v1542_v2 }
 0x2ab   :  { %v1555_v58 = vadd.f32 %v1554_v53, %v1553_v50 }
 0x2ad   :  { %v1556_v60 = vrot.slane %v1555_v58, 4 }
 0x2af   :  { %v1557_v27 = vadd.f32 %v1556_v60, %v1555_v58 }
 0x2b1   :  { %v1558_v24 = vrot.slane %v1557_v27, 2 }
 0x2b3   :  { %v1559_v34 = vadd.f32 %v1558_v24, %v1557_v27 }
 0x2b5   :  { %v1560_v51 = vrot.slane %v1559_v34, 1 }
 0x2b7   :  { %v1561_v54 = vadd.f32 %v1560_v51, %v1559_v34 }
 0x2b9   :  { %v1562_v32 = vmul.f32 1.442695, %v1561_v54 }
 0x2bb   :  { %1805 = vpow2.f32 %v1562_v32 }
 0x2c8   :  { %v1806_v29 = vpop.eup %1805 }
 0x2c9   :  { %1564 = vst [vmem:[%s3343_s3] sm:$0x1] %v1806_v29 }

</bundles_post_ra>
